<compile_context>
chip_gen: v6e
topology: v6e:2x2x1
jax: 0.10.0
libtpu: 0.0.40
codegen_flags: <defaults>
</compile_context>

<pallas_src>
import functools

import jax
import jax.numpy as jnp
from jax.experimental import pallas as pl
from jax.experimental.pallas import tpu as pltpu


# ---------------------------------------------------------------------------
# small helpers
# ---------------------------------------------------------------------------
def _round_up(x, m):
    return (x + m - 1) // m * m


def _pick_tile(dim_pad, target):
    """Largest multiple of 128 <= target that divides dim_pad (dim_pad % 128 == 0)."""
    t = max(128, (min(target, dim_pad) // 128) * 128)
    while dim_pad % t:
        t -= 128
    return t


def _pad2(x, rows, cols):
    return jnp.pad(x, ((0, rows - x.shape[0]), (0, cols - x.shape[1])))


# ---------------------------------------------------------------------------
# Kernel 2: batched feature transform  HB[b] = h @ wb[b]  (wb = bases + self-loop)
#   grid = (dst/node tiles [parallel], K tiles [arbitrary]); x fetched once per (m,k)
# ---------------------------------------------------------------------------
def _feat_transform_kernel(x_ref, w_ref, out_ref, acc_ref, *, num_mats):
    k = pl.program_id(1)

    @pl.when(k == 0)
    def _():
        acc_ref[...] = jnp.zeros_like(acc_ref)

    x = x_ref[...]
    for b in range(num_mats):                       # static, small (num_bases + 1)
        acc_ref[b] += jnp.dot(x, w_ref[b], preferred_element_type=jnp.float32)

    @pl.when(k == pl.num_programs(1) - 1)
    def _():
        out_ref[...] = acc_ref[...].astype(out_ref.dtype)


def feat_transform(x, wb, *, tile_m=512, tile_k=512):
    M, K = x.shape
    B1, _, F = wb.shape
    tm = _pick_tile(M, tile_m)
    tk = _pick_tile(K, tile_k)
    kernel = functools.partial(_feat_transform_kernel, num_mats=B1)
    return pl.pallas_call(
        kernel,
        out_shape=jax.ShapeDtypeStruct((B1, M, F), jnp.bfloat16),
        grid_spec=pltpu.PrefetchScalarGridSpec(
            num_scalar_prefetch=0,
            grid=(M // tm, K // tk),
            in_specs=[
                pl.BlockSpec((tm, tk), lambda m, k: (m, k)),        # h tile
                pl.BlockSpec((B1, tk, F), lambda m, k: (0, k, 0)),  # all weight k-slabs
            ],
            out_specs=pl.BlockSpec((B1, tm, F), lambda m, k: (0, m, 0)),
            scratch_shapes=[pltpu.VMEM((B1, tm, F), jnp.float32)],
        ),
        compiler_params=pltpu.CompilerParams(
            dimension_semantics=("parallel", "arbitrary")),
    )(x, wb)


# ---------------------------------------------------------------------------
# Kernel 3: aggregation with fused basis combine, self-loop, bias (+relu)
#   grid = (dst tiles [parallel], relations, src tiles) -- reductions innermost
#   HB is VMEM-resident (constant index_map); comp scalars live in SMEM.
# ---------------------------------------------------------------------------
def _aggregate_kernel(comp_ref, adj_ref, hb_ref, bias_ref, out_ref,
                      acc_ref, hw_ref, *, apply_relu, num_bases, tile_m, tile_k):
    m = pl.program_id(0)
    r = pl.program_id(1)
    k = pl.program_id(2)

    @pl.when(jnp.logical_and(r == 0, k == 0))
    def _():
        # Self-loop slab for this dst tile (last HB channel) + bias, in f32.
        off_m = pl.multiple_of(m * tile_m, tile_m)
        sl = hb_ref[num_bases, pl.ds(off_m, tile_m), :].astype(jnp.float32)
        acc_ref[...] = sl + bias_ref[...].astype(jnp.float32)

    # On-the-fly basis combine on the VPU (tiny vs. the MXU matmul below):
    #   HW_r[k-slab] = sum_b comp[r,b] * HB[b, k-slab]
    off_k = pl.multiple_of(k * tile_k, tile_k)
    hw = comp_ref[r, 0] * hb_ref[0, pl.ds(off_k, tile_k), :].astype(jnp.float32)
    for b in range(1, num_bases):                   # static, small loop
        hw = hw + comp_ref[r, b] * hb_ref[b, pl.ds(off_k, tile_k), :].astype(jnp.float32)
    hw_ref[...] = hw.astype(jnp.bfloat16)

    # bf16 x bf16 -> f32 accumulate on the MXU; adj is the dominant HBM stream.
    acc_ref[...] += jnp.dot(adj_ref[...], hw_ref[...],
                            preferred_element_type=jnp.float32)

    @pl.when(jnp.logical_and(r == pl.num_programs(1) - 1,
                             k == pl.num_programs(2) - 1))
    def _():
        res = acc_ref[...]
        if apply_relu:
            res = jnp.maximum(res, 0.0)
        out_ref[...] = res.astype(out_ref.dtype)


def rgcn_aggregate(comp, adj_bf16, hb, bias_p, *, num_bases, apply_relu, out_dtype):
    R, Np, _ = adj_bf16.shape
    B1, _, F = hb.shape
    # Big adj tiles (review): keep >= 2 blocks on the parallel dst axis for megacore.
    tm = _pick_tile(Np, min(512, max(128, Np // 2)))
    tk = _pick_tile(Np, 2048)
    kernel = functools.partial(_aggregate_kernel, apply_relu=apply_relu,
                               num_bases=num_bases, tile_m=tm, tile_k=tk)
    return pl.pallas_call(
        kernel,
        out_shape=jax.ShapeDtypeStruct((Np, F), out_dtype),
        grid_spec=pltpu.PrefetchScalarGridSpec(
            num_scalar_prefetch=0,
            grid=(Np // tm, R, Np // tk),
            in_specs=[
                pl.BlockSpec(memory_space=pltpu.MemorySpace.SMEM),              # comp
                pl.BlockSpec((pl.Squeezed(), tm, tk), lambda m, r, k: (r, m, k)),  # adj
                pl.BlockSpec((B1, Np, F), lambda m, r, k: (0, 0, 0)),           # HB resident
                pl.BlockSpec((1, F), lambda m, r, k: (0, 0)),                   # bias
            ],
            out_specs=pl.BlockSpec((tm, F), lambda m, r, k: (m, 0)),
            scratch_shapes=[pltpu.VMEM((tm, F), jnp.float32),     # f32 accumulator
                            pltpu.VMEM((tk, F), jnp.bfloat16)],   # combined HW slab
        ),
        compiler_params=pltpu.CompilerParams(
            dimension_semantics=("parallel", "arbitrary", "arbitrary"),
            vmem_limit_bytes=48 * 1024 * 1024),     # explicit; safe on v5e/v6e/v7x
    )(comp, adj_bf16, hb, bias_p)


# ---------------------------------------------------------------------------
# Layer / model wrappers
# ---------------------------------------------------------------------------
def rgcn_layer(adj_bf16, h_pad, bases, comp, w_loop, bias, *, apply_relu,
               h_is_identity, out_dtype):
    B, f_in, f_out = bases.shape
    Np = adj_bf16.shape[1]
    f_out_pad = _round_up(f_out, 128)

    # Stack bases with the self-loop weight: one batched transform feeds both the
    # message-passing path and the self-loop path (work scales with B, not R).
    wb = jnp.concatenate([bases, w_loop[None]], axis=0)            # (B+1, f_in, f_out)

    if h_is_identity:
        # h == I  ->  HB[b] = wb[b]; just pad rows to Np and cols to f_out_pad.
        hb = jnp.pad(wb, ((0, 0), (0, Np - f_in),
                          (0, f_out_pad - f_out))).astype(jnp.bfloat16)
    else:
        f_in_pad = h_pad.shape[1]
        wb_p = jnp.pad(wb, ((0, 0), (0, f_in_pad - f_in),
                            (0, f_out_pad - f_out))).astype(jnp.bfloat16)
        hb = feat_transform(h_pad, wb_p)                           # (B+1, Np, F) bf16

    bias_p = _pad2(bias, 1, f_out_pad)
    return rgcn_aggregate(comp, adj_bf16, hb, bias_p,
                          num_bases=B, apply_relu=apply_relu, out_dtype=out_dtype)


def rgcn_forward(adj_pad_bf16, h, params, *, num_nodes, first_layer_onehot=True):
    """Forward pass.  `adj_pad_bf16` must already be padded to (R, Np, Np) bf16
    (the pad + cast is hoisted out of the jitted path, per the perf review)."""
    Np = adj_pad_bf16.shape[1]
    n_layers = len(params)
    if first_layer_onehot:
        h_pad = None                                # first layer uses h == I shortcut
    else:
        f_in0_pad = _round_up(h.shape[1], 128)
        h_pad = _pad2(h.astype(jnp.float32), Np, f_in0_pad).astype(jnp.bfloat16)

    for i, p in enumerate(params):
        last = (i == n_layers - 1)
        h_pad = rgcn_layer(
            adj_pad_bf16, h_pad, p["bases"], p["comp"], p["w_loop"], p["bias"],
            apply_relu=not last,
            h_is_identity=(first_layer_onehot and i == 0),
            out_dtype=jnp.float32 if last else jnp.bfloat16,   # bf16 between layers
        )
    out_feat = params[-1]["bases"].shape[2]
    return h_pad[:num_nodes, :out_feat]


def rgcn_reference(adj, h, params):
    """Pure-JAX f32 reference for numerical sanity checking."""
    n_layers = len(params)
    for i, p in enumerate(params):
        w = jnp.einsum("rb,bio->rio", p["comp"], p["bases"])
        hw = jnp.einsum("ni,rio->rno", h, w)
        agg = jnp.einsum("rds,rso->do", adj, hw)
        h = agg + h @ p["w_loop"] + p["bias"]
        if i < n_layers - 1:
            h = jax.nn.relu(h)
    return h


def init_params(key, layer_dims, num_rels, num_bases):
    params = []
    for (in_feat, out_feat) in layer_dims:
        key, k1, k2, k3, k4 = jax.random.split(key, 5)
        params.append({
            "bases": 0.1 * jax.random.normal(k1, (num_bases, in_feat, out_feat),
                                             jnp.float32),
            "comp": 0.1 * jax.random.normal(k2, (num_rels, num_bases), jnp.float32),
            "w_loop": 0.1 * jax.random.normal(k3, (in_feat, out_feat), jnp.float32),
            "bias": 0.1 * jax.random.normal(k4, (1, out_feat), jnp.float32),
        })
    return params


if __name__ == "__main__":
    # Small configuration consistent with RGCN(num_nodes, n_hidden, num_classes,
    # num_rels, num_bases, num_hidden_layers, dropout).
    num_nodes = 16
    n_hidden = 32
    num_classes = 8
    num_rels = 4
    num_bases = 2
    num_hidden_layers = 1

    key = jax.random.PRNGKey(0)
    k_src, k_dst, k_rel, k_par = jax.random.split(key, 4)

    # Deterministic random graph (edge list) -> dense per-relation adjacency.
    E = 64
    src = jax.random.randint(k_src, (E,), 0, num_nodes)
    dst = jax.random.randint(k_dst, (E,), 0, num_nodes)
    rel = jax.random.randint(k_rel, (E,), 0, num_rels)
    in_deg = jnp.zeros((num_nodes,), jnp.float32).at[dst].add(1.0)
    norm = 1.0 / jnp.maximum(in_deg[dst], 1.0)              # per-edge norm (1/in-degree)
    adj = jnp.zeros((num_rels, num_nodes, num_nodes), jnp.float32)
    adj = adj.at[rel, dst, src].add(norm)                   # adj[r, dst, src] = norm_e

    # First layer input dim == num_nodes -> one-hot node-id features.
    h = jnp.eye(num_nodes, dtype=jnp.float32)

    layer_dims = ([(num_nodes, n_hidden)]
                  + [(n_hidden, n_hidden)] * num_hidden_layers
                  + [(n_hidden, num_classes)])
    params = init_params(k_par, layer_dims, num_rels, num_bases)

    # Hoist adjacency pad + bf16 cast out of the jitted forward (done once, reused).
    Np = _round_up(num_nodes, 256)
    adj_p = jnp.pad(adj, ((0, 0), (0, Np - num_nodes),
                          (0, Np - num_nodes))).astype(jnp.bfloat16)

    fwd = jax.jit(functools.partial(rgcn_forward, num_nodes=num_nodes,
                                    first_layer_onehot=True))
    out = jax.block_until_ready(fwd(adj_p, h, params))

    assert out.shape == (num_nodes, num_classes)
    assert bool(jnp.all(jnp.isfinite(out)))

    ref = rgcn_reference(adj, h, params)
    # Loose tolerance: adj / HB / inter-layer activations stream in bf16
    # (all MXU accumulation and epilogues stay f32).
    assert bool(jnp.allclose(out, ref, rtol=1e-1, atol=2e-2)), (
        float(jnp.max(jnp.abs(out - ref))))
    print("KERNEL_OK")
</pallas_src>

<mosaic_0001>
module attributes {stable_mosaic.version = 11 : i64} {
  func.func @_aggregate_kernel(%arg0: i32, %arg1: i32, %arg2: i32, %arg3: memref<4x2xf32, #tpu.memory_space<smem>>, %arg4: memref<1x128x256xbf16, #tpu.memory_space<vmem>>, %arg5: memref<3x256x128xbf16, #tpu.memory_space<vmem>>, %arg6: memref<1x128xf32, #tpu.memory_space<vmem>>, %arg7: memref<128x128xbf16, #tpu.memory_space<vmem>>, %arg8: memref<128x128xf32, #tpu.memory_space<vmem>>, %arg9: memref<256x128xbf16, #tpu.memory_space<vmem>>) attributes {dimension_semantics = [#tpu.dimension_semantics<parallel>, #tpu.dimension_semantics<arbitrary>, #tpu.dimension_semantics<arbitrary>], iteration_bounds = array<i64: 2, 4, 1>, scalar_prefetch = 0 : i64, scratch_operands = 2 : i64, tpu.core_type = #tpu.core_type<tc>, window_params = [{transform_indices = @transform_0, window_bounds = array<i64: 4, 2>}, {transform_indices = @transform_1, window_bounds = array<i64: 1, 128, 256>}, {pipeline_mode = #tpu.pipeline_mode<synchronous>, transform_indices = @transform_2, window_bounds = array<i64: 3, 256, 128>}, {pipeline_mode = #tpu.pipeline_mode<synchronous>, transform_indices = @transform_3, window_bounds = array<i64: 1, 128>}, {transform_indices = @transform_4, window_bounds = array<i64: 128, 128>}]} {
    %c0_i32 = arith.constant 0 : i32
    %0 = arith.cmpi eq, %arg1, %c0_i32 : i32
    %c0_i32_0 = arith.constant 0 : i32
    %1 = arith.cmpi eq, %arg2, %c0_i32_0 : i32
    %2 = arith.andi %0, %1 : i1
    %3 = arith.extui %2 : i1 to i32
    %c0_i32_1 = arith.constant 0 : i32
    %4 = arith.cmpi ne, %3, %c0_i32_1 : i32
    scf.if %4 {
      %c128_i32 = arith.constant 128 : i32
      %38 = arith.muli %arg0, %c128_i32 : i32
      %39 = tpu.assume_multiple %38, 128 : i32
      %c2 = arith.constant 2 : index
      %40 = arith.index_cast %39 : i32 to index
      %c0_19 = arith.constant 0 : index
      %41 = vector.load %arg5[%c2, %40, %c0_19] : memref<3x256x128xbf16, #tpu.memory_space<vmem>>, vector<1x128x128xbf16>
      %42 = vector.shape_cast %41 : vector<1x128x128xbf16> to vector<128x128xbf16>
      %43 = arith.extf %42 : vector<128x128xbf16> to vector<128x128xf32>
      %c0_20 = arith.constant 0 : index
      %c0_21 = arith.constant 0 : index
      %44 = vector.load %arg6[%c0_20, %c0_21] : memref<1x128xf32, #tpu.memory_space<vmem>>, vector<1x128xf32>
      %45 = vector.broadcast %44 : vector<1x128xf32> to vector<128x128xf32>
      %46 = arith.addf %43, %45 : vector<128x128xf32>
      %c0_22 = arith.constant 0 : index
      %c0_23 = arith.constant 0 : index
      %47 = vector.load %arg8[%c0_22, %c0_23] : memref<128x128xf32, #tpu.memory_space<vmem>>, vector<128x128xf32>
      tpu.vector_store %arg8[%c0_22, %c0_23], %46 {strides = array<i32>} : memref<128x128xf32, #tpu.memory_space<vmem>>, vector<128x128xf32>,
    } else {
    }
    %c256_i32 = arith.constant 256 : i32
    %5 = arith.muli %arg2, %c256_i32 : i32
    %6 = tpu.assume_multiple %5, 256 : i32
    %7 = arith.index_cast %arg1 : i32 to index
    %c0 = arith.constant 0 : index
    %8 = memref.load %arg3[%7, %c0] : memref<4x2xf32, #tpu.memory_space<smem>>
    %c0_2 = arith.constant 0 : index
    %9 = arith.index_cast %6 : i32 to index
    %c0_3 = arith.constant 0 : index
    %10 = vector.load %arg5[%c0_2, %9, %c0_3] : memref<3x256x128xbf16, #tpu.memory_space<vmem>>, vector<1x256x128xbf16>
    %11 = vector.shape_cast %10 : vector<1x256x128xbf16> to vector<256x128xbf16>
    %12 = arith.extf %11 : vector<256x128xbf16> to vector<256x128xf32>
    %13 = vector.broadcast %8 : f32 to vector<256x128xf32>
    %14 = arith.mulf %13, %12 : vector<256x128xf32>
    %15 = arith.index_cast %arg1 : i32 to index
    %c1 = arith.constant 1 : index
    %16 = memref.load %arg3[%15, %c1] : memref<4x2xf32, #tpu.memory_space<smem>>
    %c1_4 = arith.constant 1 : index
    %17 = arith.index_cast %6 : i32 to index
    %c0_5 = arith.constant 0 : index
    %18 = vector.load %arg5[%c1_4, %17, %c0_5] : memref<3x256x128xbf16, #tpu.memory_space<vmem>>, vector<1x256x128xbf16>
    %19 = vector.shape_cast %18 : vector<1x256x128xbf16> to vector<256x128xbf16>
    %20 = arith.extf %19 : vector<256x128xbf16> to vector<256x128xf32>
    %21 = vector.broadcast %16 : f32 to vector<256x128xf32>
    %22 = arith.mulf %21, %20 : vector<256x128xf32>
    %23 = arith.addf %14, %22 : vector<256x128xf32>
    %24 = arith.truncf %23 : vector<256x128xf32> to vector<256x128xbf16>
    %c0_6 = arith.constant 0 : index
    %c0_7 = arith.constant 0 : index
    %25 = vector.load %arg9[%c0_6, %c0_7] : memref<256x128xbf16, #tpu.memory_space<vmem>>, vector<256x128xbf16>
    tpu.vector_store %arg9[%c0_6, %c0_7], %24 {strides = array<i32>} : memref<256x128xbf16, #tpu.memory_space<vmem>>, vector<256x128xbf16>,
    %c0_8 = arith.constant 0 : index
    %c0_9 = arith.constant 0 : index
    %26 = vector.load %arg8[%c0_8, %c0_9] : memref<128x128xf32, #tpu.memory_space<vmem>>, vector<128x128xf32>
    %c0_10 = arith.constant 0 : index
    %c0_11 = arith.constant 0 : index
    %c0_12 = arith.constant 0 : index
    %27 = vector.load %arg4[%c0_10, %c0_11, %c0_12] : memref<1x128x256xbf16, #tpu.memory_space<vmem>>, vector<1x128x256xbf16>
    %28 = vector.shape_cast %27 : vector<1x128x256xbf16> to vector<128x256xbf16>
    %c0_13 = arith.constant 0 : index
    %c0_14 = arith.constant 0 : index
    %29 = vector.load %arg9[%c0_13, %c0_14] : memref<256x128xbf16, #tpu.memory_space<vmem>>, vector<256x128xbf16>
    %cst = arith.constant dense<0.000000e+00> : vector<128x128xf32>
    %30 = tpu.matmul %28, %29, %cst {dimension_numbers = #tpu.dot_dimension_numbers<[1], [0], [0], [1], [0, 0, 1, 1], [], []>} : vector<128x256xbf16>, vector<256x128xbf16>, vector<128x128xf32> -> vector<128x128xf32>
    %31 = arith.addf %26, %30 : vector<128x128xf32>
    %c0_15 = arith.constant 0 : index
    %c0_16 = arith.constant 0 : index
    %32 = vector.load %arg8[%c0_15, %c0_16] : memref<128x128xf32, #tpu.memory_space<vmem>>, vector<128x128xf32>
    tpu.vector_store %arg8[%c0_15, %c0_16], %31 {strides = array<i32>} : memref<128x128xf32, #tpu.memory_space<vmem>>, vector<128x128xf32>,
    %c3_i32 = arith.constant 3 : i32
    %33 = arith.cmpi eq, %arg1, %c3_i32 : i32
    %c0_i32_17 = arith.constant 0 : i32
    %34 = arith.cmpi eq, %arg2, %c0_i32_17 : i32
    %35 = arith.andi %33, %34 : i1
    %36 = arith.extui %35 : i1 to i32
    %c0_i32_18 = arith.constant 0 : i32
    %37 = arith.cmpi ne, %36, %c0_i32_18 : i32
    scf.if %37 {
      %c0_19 = arith.constant 0 : index
      %c0_20 = arith.constant 0 : index
      %38 = vector.load %arg8[%c0_19, %c0_20] : memref<128x128xf32, #tpu.memory_space<vmem>>, vector<128x128xf32>
      %cst_21 = arith.constant 0.000000e+00 : f32
      %39 = vector.broadcast %cst_21 : f32 to vector<128x128xf32>
      %40 = arith.maximumf %38, %39 : vector<128x128xf32>
      %41 = arith.truncf %40 : vector<128x128xf32> to vector<128x128xbf16>
      %c0_22 = arith.constant 0 : index
      %c0_23 = arith.constant 0 : index
      %42 = vector.load %arg7[%c0_22, %c0_23] : memref<128x128xbf16, #tpu.memory_space<vmem>>, vector<128x128xbf16>
      tpu.vector_store %arg7[%c0_22, %c0_23], %41 {strides = array<i32>} : memref<128x128xbf16, #tpu.memory_space<vmem>>, vector<128x128xbf16>,
    } else {
    }
    return
  }
  func.func @transform_0(%arg0: i32, %arg1: i32, %arg2: i32) -> (i32, i32) {
    %c0_i32 = arith.constant 0 : i32
    %c0_i32_0 = arith.constant 0 : i32
    %c0_i32_1 = arith.constant 0 : i32
    return %c0_i32, %c0_i32_0 : i32, i32
  }
  func.func @transform_1(%arg0: i32, %arg1: i32, %arg2: i32) -> (i32, i32, i32) {
    %c0_i32 = arith.constant 0 : i32
    return %arg1, %arg0, %arg2 : i32, i32, i32
  }
  func.func @transform_2(%arg0: i32, %arg1: i32, %arg2: i32) -> (i32, i32, i32) {
    %c0_i32 = arith.constant 0 : i32
    %c0_i32_0 = arith.constant 0 : i32
    %c0_i32_1 = arith.constant 0 : i32
    %c0_i32_2 = arith.constant 0 : i32
    return %c0_i32, %c0_i32_0, %c0_i32_1 : i32, i32, i32
  }
  func.func @transform_3(%arg0: i32, %arg1: i32, %arg2: i32) -> (i32, i32) {
    %c0_i32 = arith.constant 0 : i32
    %c0_i32_0 = arith.constant 0 : i32
    %c0_i32_1 = arith.constant 0 : i32
    return %c0_i32, %c0_i32_0 : i32, i32
  }
  func.func @transform_4(%arg0: i32, %arg1: i32, %arg2: i32) -> (i32, i32) {
    %c0_i32 = arith.constant 0 : i32
    %c0_i32_0 = arith.constant 0 : i32
    return %arg0, %c0_i32 : i32, i32
  }
}

module attributes {stable_mosaic.version = 11 : i64} {
  func.func @_feat_transform_kernel(%arg0: i32, %arg1: i32, %arg2: memref<256x128xbf16, #tpu.memory_space<vmem>>, %arg3: memref<3x128x128xbf16, #tpu.memory_space<vmem>>, %arg4: memref<3x256x128xbf16, #tpu.memory_space<vmem>>, %arg5: memref<3x256x128xf32, #tpu.memory_space<vmem>>) attributes {dimension_semantics = [#tpu.dimension_semantics<parallel>, #tpu.dimension_semantics<arbitrary>], iteration_bounds = array<i64: 1, 1>, scalar_prefetch = 0 : i64, scratch_operands = 1 : i64, tpu.core_type = #tpu.core_type<tc>, window_params = [{transform_indices = @transform_0, window_bounds = array<i64: 256, 128>}, {transform_indices = @transform_1, window_bounds = array<i64: 3, 128, 128>}, {transform_indices = @transform_2, window_bounds = array<i64: 3, 256, 128>}]} {
    %c0_i32 = arith.constant 0 : i32
    %0 = arith.cmpi eq, %arg1, %c0_i32 : i32
    %1 = arith.extui %0 : i1 to i32
    %c0_i32_0 = arith.constant 0 : i32
    %2 = arith.cmpi ne, %1, %c0_i32_0 : i32
    scf.if %2 {
      %cst_31 = arith.constant 0.000000e+00 : f32
      %34 = vector.broadcast %cst_31 : f32 to vector<3x256x128xf32>
      %c0_32 = arith.constant 0 : index
      %c0_33 = arith.constant 0 : index
      %c0_34 = arith.constant 0 : index
      %35 = vector.load %arg5[%c0_32, %c0_33, %c0_34] : memref<3x256x128xf32, #tpu.memory_space<vmem>>, vector<3x256x128xf32>
      tpu.vector_store %arg5[%c0_32, %c0_33, %c0_34], %34 {strides = array<i32>} : memref<3x256x128xf32, #tpu.memory_space<vmem>>, vector<3x256x128xf32>,
    } else {
    }
    %c0 = arith.constant 0 : index
    %c0_1 = arith.constant 0 : index
    %3 = vector.load %arg2[%c0, %c0_1] : memref<256x128xbf16, #tpu.memory_space<vmem>>, vector<256x128xbf16>
    %c0_2 = arith.constant 0 : index
    %c0_3 = arith.constant 0 : index
    %c0_4 = arith.constant 0 : index
    %4 = vector.load %arg5[%c0_2, %c0_3, %c0_4] : memref<3x256x128xf32, #tpu.memory_space<vmem>>, vector<1x256x128xf32>
    %5 = vector.shape_cast %4 : vector<1x256x128xf32> to vector<256x128xf32>
    %c0_5 = arith.constant 0 : index
    %c0_6 = arith.constant 0 : index
    %c0_7 = arith.constant 0 : index
    %6 = vector.load %arg3[%c0_5, %c0_6, %c0_7] : memref<3x128x128xbf16, #tpu.memory_space<vmem>>, vector<1x128x128xbf16>
    %7 = vector.shape_cast %6 : vector<1x128x128xbf16> to vector<128x128xbf16>
    %cst = arith.constant dense<0.000000e+00> : vector<256x128xf32>
    %8 = tpu.matmul %3, %7, %cst {dimension_numbers = #tpu.dot_dimension_numbers<[1], [0], [0], [1], [0, 0, 1, 1], [], []>} : vector<256x128xbf16>, vector<128x128xbf16>, vector<256x128xf32> -> vector<256x128xf32>
    %9 = arith.addf %5, %8 : vector<256x128xf32>
    %c0_8 = arith.constant 0 : index
    %c0_9 = arith.constant 0 : index
    %c0_10 = arith.constant 0 : index
    %10 = vector.load %arg5[%c0_8, %c0_9, %c0_10] : memref<3x256x128xf32, #tpu.memory_space<vmem>>, vector<1x256x128xf32>
    %11 = vector.shape_cast %10 : vector<1x256x128xf32> to vector<256x128xf32>
    %12 = vector.shape_cast %9 : vector<256x128xf32> to vector<1x256x128xf32>
    tpu.vector_store %arg5[%c0_8, %c0_9, %c0_10], %12 {strides = array<i32>} : memref<3x256x128xf32, #tpu.memory_space<vmem>>, vector<1x256x128xf32>,
    %c1 = arith.constant 1 : index
    %c0_11 = arith.constant 0 : index
    %c0_12 = arith.constant 0 : index
    %13 = vector.load %arg5[%c1, %c0_11, %c0_12] : memref<3x256x128xf32, #tpu.memory_space<vmem>>, vector<1x256x128xf32>
    %14 = vector.shape_cast %13 : vector<1x256x128xf32> to vector<256x128xf32>
    %c1_13 = arith.constant 1 : index
    %c0_14 = arith.constant 0 : index
    %c0_15 = arith.constant 0 : index
    %15 = vector.load %arg3[%c1_13, %c0_14, %c0_15] : memref<3x128x128xbf16, #tpu.memory_space<vmem>>, vector<1x128x128xbf16>
    %16 = vector.shape_cast %15 : vector<1x128x128xbf16> to vector<128x128xbf16>
    %cst_16 = arith.constant dense<0.000000e+00> : vector<256x128xf32>
    %17 = tpu.matmul %3, %16, %cst_16 {dimension_numbers = #tpu.dot_dimension_numbers<[1], [0], [0], [1], [0, 0, 1, 1], [], []>} : vector<256x128xbf16>, vector<128x128xbf16>, vector<256x128xf32> -> vector<256x128xf32>
    %18 = arith.addf %14, %17 : vector<256x128xf32>
    %c1_17 = arith.constant 1 : index
    %c0_18 = arith.constant 0 : index
    %c0_19 = arith.constant 0 : index
    %19 = vector.load %arg5[%c1_17, %c0_18, %c0_19] : memref<3x256x128xf32, #tpu.memory_space<vmem>>, vector<1x256x128xf32>
    %20 = vector.shape_cast %19 : vector<1x256x128xf32> to vector<256x128xf32>
    %21 = vector.shape_cast %18 : vector<256x128xf32> to vector<1x256x128xf32>
    tpu.vector_store %arg5[%c1_17, %c0_18, %c0_19], %21 {strides = array<i32>} : memref<3x256x128xf32, #tpu.memory_space<vmem>>, vector<1x256x128xf32>,
    %c2 = arith.constant 2 : index
    %c0_20 = arith.constant 0 : index
    %c0_21 = arith.constant 0 : index
    %22 = vector.load %arg5[%c2, %c0_20, %c0_21] : memref<3x256x128xf32, #tpu.memory_space<vmem>>, vector<1x256x128xf32>
    %23 = vector.shape_cast %22 : vector<1x256x128xf32> to vector<256x128xf32>
    %c2_22 = arith.constant 2 : index
    %c0_23 = arith.constant 0 : index
    %c0_24 = arith.constant 0 : index
    %24 = vector.load %arg3[%c2_22, %c0_23, %c0_24] : memref<3x128x128xbf16, #tpu.memory_space<vmem>>, vector<1x128x128xbf16>
    %25 = vector.shape_cast %24 : vector<1x128x128xbf16> to vector<128x128xbf16>
    %cst_25 = arith.constant dense<0.000000e+00> : vector<256x128xf32>
    %26 = tpu.matmul %3, %25, %cst_25 {dimension_numbers = #tpu.dot_dimension_numbers<[1], [0], [0], [1], [0, 0, 1, 1], [], []>} : vector<256x128xbf16>, vector<128x128xbf16>, vector<256x128xf32> -> vector<256x128xf32>
    %27 = arith.addf %23, %26 : vector<256x128xf32>
    %c2_26 = arith.constant 2 : index
    %c0_27 = arith.constant 0 : index
    %c0_28 = arith.constant 0 : index
    %28 = vector.load %arg5[%c2_26, %c0_27, %c0_28] : memref<3x256x128xf32, #tpu.memory_space<vmem>>, vector<1x256x128xf32>
    %29 = vector.shape_cast %28 : vector<1x256x128xf32> to vector<256x128xf32>
    %30 = vector.shape_cast %27 : vector<256x128xf32> to vector<1x256x128xf32>
    tpu.vector_store %arg5[%c2_26, %c0_27, %c0_28], %30 {strides = array<i32>} : memref<3x256x128xf32, #tpu.memory_space<vmem>>, vector<1x256x128xf32>,
    %c0_i32_29 = arith.constant 0 : i32
    %31 = arith.cmpi eq, %arg1, %c0_i32_29 : i32
    %32 = arith.extui %31 : i1 to i32
    %c0_i32_30 = arith.constant 0 : i32
    %33 = arith.cmpi ne, %32, %c0_i32_30 : i32
    scf.if %33 {
      %c0_31 = arith.constant 0 : index
      %c0_32 = arith.constant 0 : index
      %c0_33 = arith.constant 0 : index
      %34 = vector.load %arg5[%c0_31, %c0_32, %c0_33] : memref<3x256x128xf32, #tpu.memory_space<vmem>>, vector<3x256x128xf32>
      %35 = arith.truncf %34 : vector<3x256x128xf32> to vector<3x256x128xbf16>
      %c0_34 = arith.constant 0 : index
      %c0_35 = arith.constant 0 : index
      %c0_36 = arith.constant 0 : index
      %36 = vector.load %arg4[%c0_34, %c0_35, %c0_36] : memref<3x256x128xbf16, #tpu.memory_space<vmem>>, vector<3x256x128xbf16>
      tpu.vector_store %arg4[%c0_34, %c0_35, %c0_36], %35 {strides = array<i32>} : memref<3x256x128xbf16, #tpu.memory_space<vmem>>, vector<3x256x128xbf16>,
    } else {
    }
    return
  }
  func.func @transform_0(%arg0: i32, %arg1: i32) -> (i32, i32) {
    %c0_i32 = arith.constant 0 : i32
    return %arg0, %arg1 : i32, i32
  }
  func.func @transform_1(%arg0: i32, %arg1: i32) -> (i32, i32, i32) {
    %c0_i32 = arith.constant 0 : i32
    %c0_i32_0 = arith.constant 0 : i32
    %c0_i32_1 = arith.constant 0 : i32
    return %c0_i32, %arg1, %c0_i32_0 : i32, i32, i32
  }
  func.func @transform_2(%arg0: i32, %arg1: i32) -> (i32, i32, i32) {
    %c0_i32 = arith.constant 0 : i32
    %c0_i32_0 = arith.constant 0 : i32
    %c0_i32_1 = arith.constant 0 : i32
    return %c0_i32, %arg0, %c0_i32_0 : i32, i32, i32
  }
}

module attributes {stable_mosaic.version = 11 : i64} {
  func.func @_aggregate_kernel(%arg0: i32, %arg1: i32, %arg2: i32, %arg3: memref<4x2xf32, #tpu.memory_space<smem>>, %arg4: memref<1x128x256xbf16, #tpu.memory_space<vmem>>, %arg5: memref<3x256x128xbf16, #tpu.memory_space<vmem>>, %arg6: memref<1x128xf32, #tpu.memory_space<vmem>>, %arg7: memref<128x128xbf16, #tpu.memory_space<vmem>>, %arg8: memref<128x128xf32, #tpu.memory_space<vmem>>, %arg9: memref<256x128xbf16, #tpu.memory_space<vmem>>) attributes {dimension_semantics = [#tpu.dimension_semantics<parallel>, #tpu.dimension_semantics<arbitrary>, #tpu.dimension_semantics<arbitrary>], iteration_bounds = array<i64: 2, 4, 1>, scalar_prefetch = 0 : i64, scratch_operands = 2 : i64, tpu.core_type = #tpu.core_type<tc>, window_params = [{transform_indices = @transform_0, window_bounds = array<i64: 4, 2>}, {transform_indices = @transform_1, window_bounds = array<i64: 1, 128, 256>}, {pipeline_mode = #tpu.pipeline_mode<synchronous>, transform_indices = @transform_2, window_bounds = array<i64: 3, 256, 128>}, {pipeline_mode = #tpu.pipeline_mode<synchronous>, transform_indices = @transform_3, window_bounds = array<i64: 1, 128>}, {transform_indices = @transform_4, window_bounds = array<i64: 128, 128>}]} {
    %c0_i32 = arith.constant 0 : i32
    %0 = arith.cmpi eq, %arg1, %c0_i32 : i32
    %c0_i32_0 = arith.constant 0 : i32
    %1 = arith.cmpi eq, %arg2, %c0_i32_0 : i32
    %2 = arith.andi %0, %1 : i1
    %3 = arith.extui %2 : i1 to i32
    %c0_i32_1 = arith.constant 0 : i32
    %4 = arith.cmpi ne, %3, %c0_i32_1 : i32
    scf.if %4 {
      %c128_i32 = arith.constant 128 : i32
      %38 = arith.muli %arg0, %c128_i32 : i32
      %39 = tpu.assume_multiple %38, 128 : i32
      %c2 = arith.constant 2 : index
      %40 = arith.index_cast %39 : i32 to index
      %c0_19 = arith.constant 0 : index
      %41 = vector.load %arg5[%c2, %40, %c0_19] : memref<3x256x128xbf16, #tpu.memory_space<vmem>>, vector<1x128x128xbf16>
      %42 = vector.shape_cast %41 : vector<1x128x128xbf16> to vector<128x128xbf16>
      %43 = arith.extf %42 : vector<128x128xbf16> to vector<128x128xf32>
      %c0_20 = arith.constant 0 : index
      %c0_21 = arith.constant 0 : index
      %44 = vector.load %arg6[%c0_20, %c0_21] : memref<1x128xf32, #tpu.memory_space<vmem>>, vector<1x128xf32>
      %45 = vector.broadcast %44 : vector<1x128xf32> to vector<128x128xf32>
      %46 = arith.addf %43, %45 : vector<128x128xf32>
      %c0_22 = arith.constant 0 : index
      %c0_23 = arith.constant 0 : index
      %47 = vector.load %arg8[%c0_22, %c0_23] : memref<128x128xf32, #tpu.memory_space<vmem>>, vector<128x128xf32>
      tpu.vector_store %arg8[%c0_22, %c0_23], %46 {strides = array<i32>} : memref<128x128xf32, #tpu.memory_space<vmem>>, vector<128x128xf32>,
    } else {
    }
    %c256_i32 = arith.constant 256 : i32
    %5 = arith.muli %arg2, %c256_i32 : i32
    %6 = tpu.assume_multiple %5, 256 : i32
    %7 = arith.index_cast %arg1 : i32 to index
    %c0 = arith.constant 0 : index
    %8 = memref.load %arg3[%7, %c0] : memref<4x2xf32, #tpu.memory_space<smem>>
    %c0_2 = arith.constant 0 : index
    %9 = arith.index_cast %6 : i32 to index
    %c0_3 = arith.constant 0 : index
    %10 = vector.load %arg5[%c0_2, %9, %c0_3] : memref<3x256x128xbf16, #tpu.memory_space<vmem>>, vector<1x256x128xbf16>
    %11 = vector.shape_cast %10 : vector<1x256x128xbf16> to vector<256x128xbf16>
    %12 = arith.extf %11 : vector<256x128xbf16> to vector<256x128xf32>
    %13 = vector.broadcast %8 : f32 to vector<256x128xf32>
    %14 = arith.mulf %13, %12 : vector<256x128xf32>
    %15 = arith.index_cast %arg1 : i32 to index
    %c1 = arith.constant 1 : index
    %16 = memref.load %arg3[%15, %c1] : memref<4x2xf32, #tpu.memory_space<smem>>
    %c1_4 = arith.constant 1 : index
    %17 = arith.index_cast %6 : i32 to index
    %c0_5 = arith.constant 0 : index
    %18 = vector.load %arg5[%c1_4, %17, %c0_5] : memref<3x256x128xbf16, #tpu.memory_space<vmem>>, vector<1x256x128xbf16>
    %19 = vector.shape_cast %18 : vector<1x256x128xbf16> to vector<256x128xbf16>
    %20 = arith.extf %19 : vector<256x128xbf16> to vector<256x128xf32>
    %21 = vector.broadcast %16 : f32 to vector<256x128xf32>
    %22 = arith.mulf %21, %20 : vector<256x128xf32>
    %23 = arith.addf %14, %22 : vector<256x128xf32>
    %24 = arith.truncf %23 : vector<256x128xf32> to vector<256x128xbf16>
    %c0_6 = arith.constant 0 : index
    %c0_7 = arith.constant 0 : index
    %25 = vector.load %arg9[%c0_6, %c0_7] : memref<256x128xbf16, #tpu.memory_space<vmem>>, vector<256x128xbf16>
    tpu.vector_store %arg9[%c0_6, %c0_7], %24 {strides = array<i32>} : memref<256x128xbf16, #tpu.memory_space<vmem>>, vector<256x128xbf16>,
    %c0_8 = arith.constant 0 : index
    %c0_9 = arith.constant 0 : index
    %26 = vector.load %arg8[%c0_8, %c0_9] : memref<128x128xf32, #tpu.memory_space<vmem>>, vector<128x128xf32>
    %c0_10 = arith.constant 0 : index
    %c0_11 = arith.constant 0 : index
    %c0_12 = arith.constant 0 : index
    %27 = vector.load %arg4[%c0_10, %c0_11, %c0_12] : memref<1x128x256xbf16, #tpu.memory_space<vmem>>, vector<1x128x256xbf16>
    %28 = vector.shape_cast %27 : vector<1x128x256xbf16> to vector<128x256xbf16>
    %c0_13 = arith.constant 0 : index
    %c0_14 = arith.constant 0 : index
    %29 = vector.load %arg9[%c0_13, %c0_14] : memref<256x128xbf16, #tpu.memory_space<vmem>>, vector<256x128xbf16>
    %cst = arith.constant dense<0.000000e+00> : vector<128x128xf32>
    %30 = tpu.matmul %28, %29, %cst {dimension_numbers = #tpu.dot_dimension_numbers<[1], [0], [0], [1], [0, 0, 1, 1], [], []>} : vector<128x256xbf16>, vector<256x128xbf16>, vector<128x128xf32> -> vector<128x128xf32>
    %31 = arith.addf %26, %30 : vector<128x128xf32>
    %c0_15 = arith.constant 0 : index
    %c0_16 = arith.constant 0 : index
    %32 = vector.load %arg8[%c0_15, %c0_16] : memref<128x128xf32, #tpu.memory_space<vmem>>, vector<128x128xf32>
    tpu.vector_store %arg8[%c0_15, %c0_16], %31 {strides = array<i32>} : memref<128x128xf32, #tpu.memory_space<vmem>>, vector<128x128xf32>,
    %c3_i32 = arith.constant 3 : i32
    %33 = arith.cmpi eq, %arg1, %c3_i32 : i32
    %c0_i32_17 = arith.constant 0 : i32
    %34 = arith.cmpi eq, %arg2, %c0_i32_17 : i32
    %35 = arith.andi %33, %34 : i1
    %36 = arith.extui %35 : i1 to i32
    %c0_i32_18 = arith.constant 0 : i32
    %37 = arith.cmpi ne, %36, %c0_i32_18 : i32
    scf.if %37 {
      %c0_19 = arith.constant 0 : index
      %c0_20 = arith.constant 0 : index
      %38 = vector.load %arg8[%c0_19, %c0_20] : memref<128x128xf32, #tpu.memory_space<vmem>>, vector<128x128xf32>
      %cst_21 = arith.constant 0.000000e+00 : f32
      %39 = vector.broadcast %cst_21 : f32 to vector<128x128xf32>
      %40 = arith.maximumf %38, %39 : vector<128x128xf32>
      %41 = arith.truncf %40 : vector<128x128xf32> to vector<128x128xbf16>
      %c0_22 = arith.constant 0 : index
      %c0_23 = arith.constant 0 : index
      %42 = vector.load %arg7[%c0_22, %c0_23] : memref<128x128xbf16, #tpu.memory_space<vmem>>, vector<128x128xbf16>
      tpu.vector_store %arg7[%c0_22, %c0_23], %41 {strides = array<i32>} : memref<128x128xbf16, #tpu.memory_space<vmem>>, vector<128x128xbf16>,
    } else {
    }
    return
  }
  func.func @transform_0(%arg0: i32, %arg1: i32, %arg2: i32) -> (i32, i32) {
    %c0_i32 = arith.constant 0 : i32
    %c0_i32_0 = arith.constant 0 : i32
    %c0_i32_1 = arith.constant 0 : i32
    return %c0_i32, %c0_i32_0 : i32, i32
  }
  func.func @transform_1(%arg0: i32, %arg1: i32, %arg2: i32) -> (i32, i32, i32) {
    %c0_i32 = arith.constant 0 : i32
    return %arg1, %arg0, %arg2 : i32, i32, i32
  }
  func.func @transform_2(%arg0: i32, %arg1: i32, %arg2: i32) -> (i32, i32, i32) {
    %c0_i32 = arith.constant 0 : i32
    %c0_i32_0 = arith.constant 0 : i32
    %c0_i32_1 = arith.constant 0 : i32
    %c0_i32_2 = arith.constant 0 : i32
    return %c0_i32, %c0_i32_0, %c0_i32_1 : i32, i32, i32
  }
  func.func @transform_3(%arg0: i32, %arg1: i32, %arg2: i32) -> (i32, i32) {
    %c0_i32 = arith.constant 0 : i32
    %c0_i32_0 = arith.constant 0 : i32
    %c0_i32_1 = arith.constant 0 : i32
    return %c0_i32, %c0_i32_0 : i32, i32
  }
  func.func @transform_4(%arg0: i32, %arg1: i32, %arg2: i32) -> (i32, i32) {
    %c0_i32 = arith.constant 0 : i32
    %c0_i32_0 = arith.constant 0 : i32
    return %arg0, %c0_i32 : i32, i32
  }
}

module attributes {stable_mosaic.version = 11 : i64} {
  func.func @_aggregate_kernel(%arg0: i32, %arg1: i32, %arg2: i32, %arg3: memref<4x2xf32, #tpu.memory_space<smem>>, %arg4: memref<1x128x256xbf16, #tpu.memory_space<vmem>>, %arg5: memref<3x256x128xbf16, #tpu.memory_space<vmem>>, %arg6: memref<1x128xf32, #tpu.memory_space<vmem>>, %arg7: memref<128x128xf32, #tpu.memory_space<vmem>>, %arg8: memref<128x128xf32, #tpu.memory_space<vmem>>, %arg9: memref<256x128xbf16, #tpu.memory_space<vmem>>) attributes {dimension_semantics = [#tpu.dimension_semantics<parallel>, #tpu.dimension_semantics<arbitrary>, #tpu.dimension_semantics<arbitrary>], iteration_bounds = array<i64: 2, 4, 1>, scalar_prefetch = 0 : i64, scratch_operands = 2 : i64, tpu.core_type = #tpu.core_type<tc>, window_params = [{transform_indices = @transform_0, window_bounds = array<i64: 4, 2>}, {transform_indices = @transform_1, window_bounds = array<i64: 1, 128, 256>}, {pipeline_mode = #tpu.pipeline_mode<synchronous>, transform_indices = @transform_2, window_bounds = array<i64: 3, 256, 128>}, {pipeline_mode = #tpu.pipeline_mode<synchronous>, transform_indices = @transform_3, window_bounds = array<i64: 1, 128>}, {transform_indices = @transform_4, window_bounds = array<i64: 128, 128>}]} {
    %c0_i32 = arith.constant 0 : i32
    %0 = arith.cmpi eq, %arg1, %c0_i32 : i32
    %c0_i32_0 = arith.constant 0 : i32
    %1 = arith.cmpi eq, %arg2, %c0_i32_0 : i32
    %2 = arith.andi %0, %1 : i1
    %3 = arith.extui %2 : i1 to i32
    %c0_i32_1 = arith.constant 0 : i32
    %4 = arith.cmpi ne, %3, %c0_i32_1 : i32
    scf.if %4 {
      %c128_i32 = arith.constant 128 : i32
      %38 = arith.muli %arg0, %c128_i32 : i32
      %39 = tpu.assume_multiple %38, 128 : i32
      %c2 = arith.constant 2 : index
      %40 = arith.index_cast %39 : i32 to index
      %c0_19 = arith.constant 0 : index
      %41 = vector.load %arg5[%c2, %40, %c0_19] : memref<3x256x128xbf16, #tpu.memory_space<vmem>>, vector<1x128x128xbf16>
      %42 = vector.shape_cast %41 : vector<1x128x128xbf16> to vector<128x128xbf16>
      %43 = arith.extf %42 : vector<128x128xbf16> to vector<128x128xf32>
      %c0_20 = arith.constant 0 : index
      %c0_21 = arith.constant 0 : index
      %44 = vector.load %arg6[%c0_20, %c0_21] : memref<1x128xf32, #tpu.memory_space<vmem>>, vector<1x128xf32>
      %45 = vector.broadcast %44 : vector<1x128xf32> to vector<128x128xf32>
      %46 = arith.addf %43, %45 : vector<128x128xf32>
      %c0_22 = arith.constant 0 : index
      %c0_23 = arith.constant 0 : index
      %47 = vector.load %arg8[%c0_22, %c0_23] : memref<128x128xf32, #tpu.memory_space<vmem>>, vector<128x128xf32>
      tpu.vector_store %arg8[%c0_22, %c0_23], %46 {strides = array<i32>} : memref<128x128xf32, #tpu.memory_space<vmem>>, vector<128x128xf32>,
    } else {
    }
    %c256_i32 = arith.constant 256 : i32
    %5 = arith.muli %arg2, %c256_i32 : i32
    %6 = tpu.assume_multiple %5, 256 : i32
    %7 = arith.index_cast %arg1 : i32 to index
    %c0 = arith.constant 0 : index
    %8 = memref.load %arg3[%7, %c0] : memref<4x2xf32, #tpu.memory_space<smem>>
    %c0_2 = arith.constant 0 : index
    %9 = arith.index_cast %6 : i32 to index
    %c0_3 = arith.constant 0 : index
    %10 = vector.load %arg5[%c0_2, %9, %c0_3] : memref<3x256x128xbf16, #tpu.memory_space<vmem>>, vector<1x256x128xbf16>
    %11 = vector.shape_cast %10 : vector<1x256x128xbf16> to vector<256x128xbf16>
    %12 = arith.extf %11 : vector<256x128xbf16> to vector<256x128xf32>
    %13 = vector.broadcast %8 : f32 to vector<256x128xf32>
    %14 = arith.mulf %13, %12 : vector<256x128xf32>
    %15 = arith.index_cast %arg1 : i32 to index
    %c1 = arith.constant 1 : index
    %16 = memref.load %arg3[%15, %c1] : memref<4x2xf32, #tpu.memory_space<smem>>
    %c1_4 = arith.constant 1 : index
    %17 = arith.index_cast %6 : i32 to index
    %c0_5 = arith.constant 0 : index
    %18 = vector.load %arg5[%c1_4, %17, %c0_5] : memref<3x256x128xbf16, #tpu.memory_space<vmem>>, vector<1x256x128xbf16>
    %19 = vector.shape_cast %18 : vector<1x256x128xbf16> to vector<256x128xbf16>
    %20 = arith.extf %19 : vector<256x128xbf16> to vector<256x128xf32>
    %21 = vector.broadcast %16 : f32 to vector<256x128xf32>
    %22 = arith.mulf %21, %20 : vector<256x128xf32>
    %23 = arith.addf %14, %22 : vector<256x128xf32>
    %24 = arith.truncf %23 : vector<256x128xf32> to vector<256x128xbf16>
    %c0_6 = arith.constant 0 : index
    %c0_7 = arith.constant 0 : index
    %25 = vector.load %arg9[%c0_6, %c0_7] : memref<256x128xbf16, #tpu.memory_space<vmem>>, vector<256x128xbf16>
    tpu.vector_store %arg9[%c0_6, %c0_7], %24 {strides = array<i32>} : memref<256x128xbf16, #tpu.memory_space<vmem>>, vector<256x128xbf16>,
    %c0_8 = arith.constant 0 : index
    %c0_9 = arith.constant 0 : index
    %26 = vector.load %arg8[%c0_8, %c0_9] : memref<128x128xf32, #tpu.memory_space<vmem>>, vector<128x128xf32>
    %c0_10 = arith.constant 0 : index
    %c0_11 = arith.constant 0 : index
    %c0_12 = arith.constant 0 : index
    %27 = vector.load %arg4[%c0_10, %c0_11, %c0_12] : memref<1x128x256xbf16, #tpu.memory_space<vmem>>, vector<1x128x256xbf16>
    %28 = vector.shape_cast %27 : vector<1x128x256xbf16> to vector<128x256xbf16>
    %c0_13 = arith.constant 0 : index
    %c0_14 = arith.constant 0 : index
    %29 = vector.load %arg9[%c0_13, %c0_14] : memref<256x128xbf16, #tpu.memory_space<vmem>>, vector<256x128xbf16>
    %cst = arith.constant dense<0.000000e+00> : vector<128x128xf32>
    %30 = tpu.matmul %28, %29, %cst {dimension_numbers = #tpu.dot_dimension_numbers<[1], [0], [0], [1], [0, 0, 1, 1], [], []>} : vector<128x256xbf16>, vector<256x128xbf16>, vector<128x128xf32> -> vector<128x128xf32>
    %31 = arith.addf %26, %30 : vector<128x128xf32>
    %c0_15 = arith.constant 0 : index
    %c0_16 = arith.constant 0 : index
    %32 = vector.load %arg8[%c0_15, %c0_16] : memref<128x128xf32, #tpu.memory_space<vmem>>, vector<128x128xf32>
    tpu.vector_store %arg8[%c0_15, %c0_16], %31 {strides = array<i32>} : memref<128x128xf32, #tpu.memory_space<vmem>>, vector<128x128xf32>,
    %c3_i32 = arith.constant 3 : i32
    %33 = arith.cmpi eq, %arg1, %c3_i32 : i32
    %c0_i32_17 = arith.constant 0 : i32
    %34 = arith.cmpi eq, %arg2, %c0_i32_17 : i32
    %35 = arith.andi %33, %34 : i1
    %36 = arith.extui %35 : i1 to i32
    %c0_i32_18 = arith.constant 0 : i32
    %37 = arith.cmpi ne, %36, %c0_i32_18 : i32
    scf.if %37 {
      %c0_19 = arith.constant 0 : index
      %c0_20 = arith.constant 0 : index
      %38 = vector.load %arg8[%c0_19, %c0_20] : memref<128x128xf32, #tpu.memory_space<vmem>>, vector<128x128xf32>
      %c0_21 = arith.constant 0 : index
      %c0_22 = arith.constant 0 : index
      %39 = vector.load %arg7[%c0_21, %c0_22] : memref<128x128xf32, #tpu.memory_space<vmem>>, vector<128x128xf32>
      tpu.vector_store %arg7[%c0_21, %c0_22], %38 {strides = array<i32>} : memref<128x128xf32, #tpu.memory_space<vmem>>, vector<128x128xf32>,
    } else {
    }
    return
  }
  func.func @transform_0(%arg0: i32, %arg1: i32, %arg2: i32) -> (i32, i32) {
    %c0_i32 = arith.constant 0 : i32
    %c0_i32_0 = arith.constant 0 : i32
    %c0_i32_1 = arith.constant 0 : i32
    return %c0_i32, %c0_i32_0 : i32, i32
  }
  func.func @transform_1(%arg0: i32, %arg1: i32, %arg2: i32) -> (i32, i32, i32) {
    %c0_i32 = arith.constant 0 : i32
    return %arg1, %arg0, %arg2 : i32, i32, i32
  }
  func.func @transform_2(%arg0: i32, %arg1: i32, %arg2: i32) -> (i32, i32, i32) {
    %c0_i32 = arith.constant 0 : i32
    %c0_i32_0 = arith.constant 0 : i32
    %c0_i32_1 = arith.constant 0 : i32
    %c0_i32_2 = arith.constant 0 : i32
    return %c0_i32, %c0_i32_0, %c0_i32_1 : i32, i32, i32
  }
  func.func @transform_3(%arg0: i32, %arg1: i32, %arg2: i32) -> (i32, i32) {
    %c0_i32 = arith.constant 0 : i32
    %c0_i32_0 = arith.constant 0 : i32
    %c0_i32_1 = arith.constant 0 : i32
    return %c0_i32, %c0_i32_0 : i32, i32
  }
  func.func @transform_4(%arg0: i32, %arg1: i32, %arg2: i32) -> (i32, i32) {
    %c0_i32 = arith.constant 0 : i32
    %c0_i32_0 = arith.constant 0 : i32
    return %arg0, %c0_i32 : i32, i32
  }
}

</mosaic_0001>

<bundles_post_ra>
// kernel: rgcn_forward.5
= control target key start
LH: loop header
LB: loop body
LE: loop exit
PB: predicated region body
PF: predicated region fallthrough
CT: control target
= control target key end

     0   :  { %s2588_s0 = inlined_call_operand.vmem [shape: f32[4,2], index: 0, kind: input, shape index: {}]   ;;  %s2589_s1 = inlined_call_operand.hbm [shape: bf16[4,256,256], index: 1, kind: input, shape index: {}]   ;;  %s2590_s2 = inlined_call_operand.vmem [shape: bf16[3,256,128], index: 2, kind: input, shape index: {}]   ;;  %s2591_s3 = inlined_call_operand.vmem [shape: f32[1,128], index: 3, kind: input, shape index: {}]   ;;  %s2592_s4 = inlined_call_operand.vmem [shape: bf16[256,128], index: 4, kind: output, shape index: {}]  }
   0x1   :  { %2597 = sst [smem:[#allocation12_spill]] %s2588_s0 }
   0x2   :  { %2598 = sst [smem:[#allocation13_spill]] %s2591_s3 }
   0x3   :  { %9 = vsyncpa [#allocation6], 0 }
   0x4   :  { %10 = vsyncpa [#allocation5], 0 }
   0x5   :  { %12 = vsyncpa [#allocation5 + $0x1], 0  ;;  %s2229_s15 = smov 0   ;;  %s2231_s16 = smov 0  }
   0x6   :  { %s2233_s17 = smov 0   ;;  %s2235_s18 = smov 0  }
   0x7   :  { %s2237_s19 = smov 0   ;;  %s2239_s20 = smov 0  }
   0x8   :  { %s2241_s21 = smov 0   ;;  %s2243_s22 = smov 0  }
   0x9 LB: > { %2599 = sst [smem:[#allocation10_spill]] %s2198_s22  ;;  %s1338_s23 = sadd.s32 4294967295, %s2198_s22   ;;  %s2198_s22 = sphi %s2243_s22, %s2619_s22   ;;  %s2194_s21 = sphi %s2241_s21, %s2618_s21   ;;  %s2190_s20 = sphi %s2239_s20, %s2617_s20   ;;  %s2186_s19 = sphi %s2237_s19, %s2616_s19   ;;  %s2182_s18 = sphi %s2235_s18, %s2615_s18   ;;  %s2178_s17 = sphi %s2233_s17, %s2614_s17   ;;  %s2174_s16 = sphi %s2231_s16, %s2613_s16   ;;  %s2170_s15 = sphi %s2229_s15, %s2612_s15  }
   0xa   : > { %p76_p0 = scmp.ne.s32.totalorder %s2178_s17, %s2174_s16  ;;  %p77_p1 = scmp.eq.s32.totalorder %s2198_s22, 0 }
   0xb   : > { %p82_p2 = scmp.ne.s32.totalorder %s2174_s16, %s2170_s15  ;;  %p2273_p3 = scmp.eq.s32.totalorder %s1338_s23, 0 }
   0xc   : > { %p78_p4 = por %p77_p1, %p76_p0  ;;  %p1340_p5 = scmp.ge.s32.totalorder %s2198_s22, 1 }
   0xd   : > { %p2280_p6 = por %p2273_p3, %p82_p2  ;;  %p161_p7 = scmp.lt.s32.totalorder %s2198_s22, 9 }
   0xe   : > { %s2602_s0 = sld [smem:[#allocation12_spill]]  ;;  %p1976_p10 = scmp.lt.s32.totalorder %s2198_s22, 8 }
   0xf   : > { %s2601_s26 = scalar_select %p2280_p6, 1, 0 }
  0x10   : > { %p2288_p8 = pnand %p1340_p5, %p161_p7  ;;  %p2297_p12 = pnand %p1976_p10, %p78_p4 }
  0x12   : > { %s2603_s30 = scalar_select %p2288_p8, 1, 0 }
  0x13   : > { %p1967_p9 = pneg %p2288_p8 }
  0x14   : > { %s174_s29 = sshll.u32 %s2602_s0, 4  ;;  %s175_s29 = int_to_ptr.vmem [resolvable:$true] %s174_s29 }
  0x15   : > { %p1968_p11 = pnand %p1967_p9, %p2273_p3  ;;  %s2085_s6 = scalar_lea.vmem %s175_s29, 64 }
  0x16   : > { %p2086_p13 = scmp.ne.s32.totalorder %s175_s29, %s2085_s6  ;;  %p2093_p5 = scmp.lt.s32.totalorder %s175_s29, %s175_s29 }
  0x17   : > { %p2087_p0 = pneg %p1968_p11  ;;  %p2094_p7 = scmp.lt.s32.totalorder %s2085_s6, %s2085_s6 }
  0x19   : > { %p2088_p1 = pnand %p2087_p0, %p2086_p13  ;;  %p2095_p6 = por %p2094_p7, %p2093_p5 }
  0x1b   : > { %p2089_p2 = pneg %p2088_p1 }
  0x1d   : > { %p2096_p8 = pnand %p2095_p6, %p2089_p2 }
  0x1f   : > { %2099 = shalt.err (!%p2096_p8)
}
  0x20   : > { %s2200_s7 = smov [#allocation4]   ;;  %s33_s8 = sadd.s32 1, %s2190_s20 }
  0x21   : > { %1970 = dma.vmem_to_smem (!%p1968_p11), %s175_s29, 64, %s2200_s7, [#allocation6]  }
  0x22   : > { %s37_s9 = sadd.s32 1, %s2194_s21  ;;  %p35_p4 = scmp.ge.s32.totalorder %s33_s8, 4 }
  0x23   : > { %s191_s10 = sand.u32 1, %s2178_s17   ;;  %s1489_s13 = sshll.u32 %s2194_s21, 5 }
  0x24   : > { %s1343_s11 = sshll.u32 %s191_s10, 7  ;;  %s2621_s8 = smov (%p35_p4, %s33_s8), 0 }
  0x25   : > { %2605 = sst [smem:[#allocation11_spill]] %s2621_s8  ;;  %s2623_s9 = smov (!%p35_p4, %s37_s9), %s2194_s21 }
  0x26   : > { %s62_s12 = ssub.s32 %s2190_s20, %s2621_s8  ;;  %p39_p6 = scmp.ge.s32.totalorder %s2623_s9, 2 }
  0x27   : > { %s1346_s14 = sshll.u32 %s2190_s20, 6  ;;  %s195_s15 = scalar_lea.vmem [#allocation7], %s1343_s11 }
  0x28   : > { %s207_s23 = sshll.u32 %s195_s15, 4  ;;  %s2625_s9 = smov (%p39_p6, %s2623_s9), 0  ;;  %s208_s23 = int_to_ptr.vmem [resolvable:$true] %s207_s23 }
  0x29   : > { %s204_s27 = sadd.s32 %s1489_s13, %s1346_s14  ;;  %s63_s28 = ssub.s32 %s2194_s21, %s2625_s9 }
  0x2a   : > { %s1347_s29 = sshll.u32 %s204_s27, 6  ;;  %s64_s6 = sor.u32 %s63_s28, %s62_s12 }
  0x2b   : > { %s206_s0 = scalar_lea.hbm %s2589_s1, %s1347_s29  ;;  %p67_p8 = scmp.eq.s32.totalorder %s64_s6, 0 }
  0x2c   : > { %s2606_s8 = sadd.s32 1, %s2178_s17  ;;  %s192_s3 = scalar_lea.sflag [#allocation5], %s191_s10 }
  0x2d   : > { %s2321_s22 = scalar_select %p67_p8, %s2178_s17, %s2606_s8  }
  0x2e   : > { %p2102_p9 = pneg %p2297_p12  ;;  %s2113_s11 = scalar_lea.vmem %s208_s23, 2048 }
  0x2f   : > { %p2114_p10 = scmp.ne.s32.totalorder %s208_s23, %s2113_s11  ;;  %s2201_s13 = smov [#allocation7]  }
  0x30   : > { %s2118_s14 = sshll.u32 %s2201_s13, 4  ;;  %s2119_s14 = int_to_ptr.vmem [resolvable:$false] %s2118_s14 }
  0x31   : > { %p2116_p11 = pnand %p2114_p10, %p2102_p9  ;;  %s2120_s15 = scalar_lea.vmem %s2119_s14, 4096 }
  0x32   : > { %p2121_p0 = scmp.lt.s32.totalorder %s208_s23, %s2119_s14  ;;  %p2122_p1 = scmp.lt.s32.totalorder %s2120_s15, %s2113_s11 }
  0x33   : > { %p2117_p13 = pneg %p2116_p11 }
  0x34   : > { %p2123_p2 = por %p2122_p1, %p2121_p0 }
  0x36   : > { %p2124_p5 = pnand %p2123_p2, %p2117_p13 }
  0x38   : > { %2127 = shalt.err (!%p2124_p5)
}
  0x39   : > { %s2202_s24 = smov 128   ;;  %s2203_s8 = smov 8  }
  0x3a   : > { %1974 = dma.hbm_to_vmem [thread:$0]  (!%p2297_p12), %s206_s0, 2048, %s208_s23, %s192_s3, %s2202_s24, %s2202_s24, %s2203_s8  }
  0x3b   : > { %p2607_p7 = scmp.ne.s32.totalorder %s2603_s30, 0 }
  0x3d   : > { %219 = sbr.rel (%p2607_p7) target bundleno = 397 (0x18d), region = 36 }
  0x42   : > { %2161 = dma.done.wait (%p2273_p3), [#allocation6], 64  }
  0x43   : > { %2163 = vsyncadd (%p2273_p3), [#allocation6], 4294967232  ;;  %s225_s10 = sand.u32 1, %s2174_s16   ;;  %p2608_p4 = scmp.ne.s32.totalorder %s2601_s26, 0 }
  0x44   : > { %s1350_s12 = sshll.u32 %s225_s10, 7  ;;  %s226_s27 = scalar_lea.sflag [#allocation5], %s225_s10 }
  0x45   : > { %s2334_s28 = scalar_lea.vmem [#allocation7], %s1350_s12 }
  0x46   : > { %2165 = dma.done.wait (%p2608_p4), %s226_s27, 2048  }
  0x47   : > { %2167 = vsyncadd (%p2608_p4), %s226_s27, 4294965248 }
  0x48   : > { %234 = sfence }
  0x49   : > { %s1351_s0 = sshll.u32 %s2186_s19, 4  ;;  %p264_p12 = scmp.eq.s32.totalorder %s2182_s18, 0 }
  0x4a   : > { %p258_p6 = scmp.lt.s32.totalorder %s1351_s0, 31  ;;  %s1354_s23 = sshll.u32 (%p264_p12), %s2186_s19, 7 }
  0x4b   : > { %269 = sbr.rel (!%p264_p12) target bundleno = 95 (0x5f), region = 48  ;;  %s271_s29 = sshra.s32 (%p264_p12), %s1354_s23, 3 }
  0x4c   : > { %s2627_s0 = smov (!%p258_p6, %s1351_s0), 31  ;;  %s1355_s6 = sshll.u32 (%p264_p12), %s271_s29, 2 }
  0x4d   : > { %s1352_s3 = sshll.u32 %s2627_s0, 2  ;;  %s1280_s11 = scalar_lea.vmem (%p264_p12), %s2590_s2, %s1355_s6 }
  0x4e   : > { %s2345_s5 = scalar_lea.vmem %s2592_s4, %s1352_s3  ;;  %s2609_s15 = sld [smem:[#allocation13_spill]] (%p264_p12)  ;;  %v1820_v1 = vld [vmem:[%s1280_s11 + $0x100] sm:$0xff] (%p264_p12)   ;;  %v1821_v2 = vld [vmem:[%s1280_s11 + $0x108] sm:$0xff] (%p264_p12)   ;;  %v1822_v3 = vld [vmem:[%s1280_s11 + $0x110] sm:$0xff] (%p264_p12)  }
  0x4f   : > { %v1542_v4 = vunpack.c.l.bf16 (%p264_p12), %v1820_v1  ;;  %v1543_v5 = vunpack.c.h.bf16 (%p264_p12), %v1820_v1  ;;  %v1546_v6 = vunpack.c.l.bf16 (%p264_p12), %v1821_v2  ;;  %v1547_v7 = vunpack.c.h.bf16 (%p264_p12), %v1821_v2  ;;  %v1823_v8 = vld [vmem:[%s1280_s11 + $0x118] sm:$0xff] (%p264_p12)   ;;  %v1824_v13 = vld [vmem:[%s1280_s11 + $0x120] sm:$0xff] (%p264_p12)   ;;  %v1825_v14 = vld [vmem:[%s1280_s11 + $0x128] sm:$0xff] (%p264_p12)  }
  0x50   : > { %v1550_v9 = vunpack.c.l.bf16 %v1822_v3  ;;  %v1551_v10 = vunpack.c.h.bf16 %v1822_v3  ;;  %v1554_v11 = vunpack.c.l.bf16 %v1823_v8  ;;  %v1555_v12 = vunpack.c.h.bf16 %v1823_v8  ;;  %v1826_v19 = vld [vmem:[%s1280_s11 + $0x130] sm:$0xff]   ;;  %v1827_v20 = vld [vmem:[%s1280_s11 + $0x138] sm:$0xff]  }
  0x51   : > { %v1558_v25 = vunpack.c.l.bf16 %v1824_v13  ;;  %v1559_v26 = vunpack.c.h.bf16 %v1824_v13  ;;  %v1562_v27 = vunpack.c.l.bf16 %v1825_v14  ;;  %v1563_v28 = vunpack.c.h.bf16 %v1825_v14 }
  0x52   : > { %v1566_v29 = vunpack.c.l.bf16 %v1826_v19  ;;  %v1567_v30 = vunpack.c.h.bf16 %v1826_v19  ;;  %v1570_v31 = vunpack.c.l.bf16 %v1827_v20  ;;  %v1571_v32 = vunpack.c.h.bf16 %v1827_v20 }
  0x54   : > { %v1372_v0 = vld [vmem:[%s2609_s15] ss:$0 sm:$0xff] }
  0x55   : > { %v315_v15 = vadd.f32 %v1542_v4, %v1372_v0  ;;  %v316_v16 = vadd.f32 %v1543_v5, %v1372_v0  ;;  %v317_v17 = vadd.f32 %v1546_v6, %v1372_v0  ;;  %v318_v18 = vadd.f32 %v1547_v7, %v1372_v0 }
  0x56   : > { %v319_v21 = vadd.f32 %v1550_v9, %v1372_v0  ;;  %v320_v22 = vadd.f32 %v1551_v10, %v1372_v0  ;;  %v321_v23 = vadd.f32 %v1554_v11, %v1372_v0  ;;  %v322_v24 = vadd.f32 %v1555_v12, %v1372_v0 }
  0x57   : > { %331 = vst [vmem:[#allocation2 + $0x30] sm:$0xff] %v315_v15  ;;  %332 = vst [vmem:[#allocation2] sm:$0xff] %v316_v16  ;;  %v323_v33 = vadd.f32 %v1558_v25, %v1372_v0  ;;  %v324_v34 = vadd.f32 %v1559_v26, %v1372_v0  ;;  %v325_v35 = vadd.f32 %v1562_v27, %v1372_v0 }
  0x58   : > { %333 = vst [vmem:[#allocation2 + $0x58] sm:$0xff] %v317_v17  ;;  %334 = vst [vmem:[#allocation2 + $0x18] sm:$0xff] %v318_v18  ;;  %v326_v36 = vadd.f32 %v1563_v28, %v1372_v0  ;;  %v327_v37 = vadd.f32 %v1566_v29, %v1372_v0  ;;  %v328_v38 = vadd.f32 %v1567_v30, %v1372_v0 }
  0x59   : > { %335 = vst [vmem:[#allocation2 + $0x50] sm:$0xff] %v319_v21  ;;  %336 = vst [vmem:[#allocation2 + $0x68] sm:$0xff] %v320_v22  ;;  %v329_v39 = vadd.f32 %v1570_v31, %v1372_v0  ;;  %v330_v40 = vadd.f32 %v1571_v32, %v1372_v0 }
  0x5a   : > { %337 = vst [vmem:[#allocation2 + $0x8] sm:$0xff] %v321_v23  ;;  %338 = vst [vmem:[#allocation2 + $0x48] sm:$0xff] %v322_v24 }
  0x5b   : > { %339 = vst [vmem:[#allocation2 + $0x40] sm:$0xff] %v323_v33  ;;  %340 = vst [vmem:[#allocation2 + $0x20] sm:$0xff] %v324_v34 }
  0x5c   : > { %341 = vst [vmem:[#allocation2 + $0x10] sm:$0xff] %v325_v35  ;;  %342 = vst [vmem:[#allocation2 + $0x38] sm:$0xff] %v326_v36 }
  0x5d   : > { %343 = vst [vmem:[#allocation2 + $0x60] sm:$0xff] %v327_v37  ;;  %344 = vst [vmem:[#allocation2 + $0x70] sm:$0xff] %v328_v38 }
  0x5e   : > { %345 = vst [vmem:[#allocation2 + $0x78] sm:$0xff] %v329_v39  ;;  %346 = vst [vmem:[#allocation2 + $0x28] sm:$0xff] %v330_v40 }
  0x5f PF: > { %s1373_s19 = sshll.u32 %s2182_s18, 7  ;;  %v1842_v41 = vld [vmem:[%s2590_s2 + $0x78] sm:$0xff]   ;;  %v1841_v49 = vld [vmem:[%s2590_s2 + $0x70] sm:$0xff]   ;;  %v1840_v57 = vld [vmem:[%s2590_s2 + $0x68] sm:$0xff]   ;;  %p1114_p3 = scmp.eq.s32.totalorder %s2182_s18, 3 }
  0x60   : > { %v1858_v42 = vld [vmem:[%s2590_s2 + $0xf8] sm:$0xff]   ;;  %s2364_s3 = sld [smem:[#allocation4 + %s1373_s19]]  ;;  %v1634_v44 = vunpack.c.l.bf16 %v1842_v41  ;;  %v1635_v45 = vunpack.c.h.bf16 %v1842_v41  ;;  %s451_s25 = sadd.s32 1, %s1373_s19  ;;  %v1857_v50 = vld [vmem:[%s2590_s2 + $0xf0] sm:$0xff]   ;;  %v1630_v58 = vunpack.c.l.bf16 %v1841_v49  ;;  %v1631_v59 = vunpack.c.h.bf16 %v1841_v49  ;;  %v1856_v62 = vld [vmem:[%s2590_s2 + $0xe8] sm:$0xff]  }
  0x61   : > { %v1834_v43 = vld [vmem:[%s2590_s2 + $0x38] sm:$0xff]   ;;  %v1698_v46 = vunpack.c.l.bf16 %v1858_v42  ;;  %v1699_v47 = vunpack.c.h.bf16 %v1858_v42  ;;  %s2375_s11 = sld [smem:[#allocation4 + %s451_s25]]  ;;  %v1833_v55 = vld [vmem:[%s2590_s2 + $0x30] sm:$0xff]   ;;  %v1694_v60 = vunpack.c.l.bf16 %v1857_v50  ;;  %v1695_v61 = vunpack.c.h.bf16 %v1857_v50  ;;  %v1832_v63 = vld [vmem:[%s2590_s2 + $0x28] sm:$0xff]  }
  0x62   : > { %v1850_v48 = vld [vmem:[%s2590_s2 + $0xb8] sm:$0xff]   ;;  %v1602_v51 = vunpack.c.l.bf16 %v1834_v43  ;;  %v1603_v52 = vunpack.c.h.bf16 %v1834_v43  ;;  %v1849_v56 = vld [vmem:[%s2590_s2 + $0xb0] sm:$0xff]   ;;  %v2395_v0 = vld [vmem:[%s2590_s2 + $0xa8] sm:$0xff]   ;;  %v1598_v1 = vunpack.c.l.bf16 %v1833_v55  ;;  %v1599_v2 = vunpack.c.h.bf16 %v1833_v55 }
  0x63   : > { %v1666_v53 = vunpack.c.l.bf16 %v1850_v48  ;;  %v1667_v54 = vunpack.c.h.bf16 %v1850_v48  ;;  %v1662_v3 = vunpack.c.l.bf16 %v1849_v56  ;;  %v1663_v4 = vunpack.c.h.bf16 %v1849_v56  ;;  %v2400_v5 = vld [vmem:[%s2590_s2 + $0x60] sm:$0xff]  }
  0x64   : > { %v2405_v6 = vld [vmem:[%s2590_s2 + $0xe0] sm:$0xff]   ;;  %v1626_v7 = vunpack.c.l.bf16 %v1840_v57  ;;  %v1627_v8 = vunpack.c.h.bf16 %v1840_v57  ;;  %v1690_v9 = vunpack.c.l.bf16 %v1856_v62  ;;  %v1691_v10 = vunpack.c.h.bf16 %v1856_v62 }
  0x65   : > { %v1594_v11 = vunpack.c.l.bf16 %v1832_v63  ;;  %v1595_v12 = vunpack.c.h.bf16 %v1832_v63  ;;  %v1658_v13 = vunpack.c.l.bf16 %v2395_v0  ;;  %v1659_v14 = vunpack.c.h.bf16 %v2395_v0  ;;  %v2063_v35 = vld [vmem:[%s2334_s28 + $0x4] ss:$8 sps:$4 sm:$0xff]  }
  0x66   : > { %v2410_v15 = vstv %s2364_s3  ;;  %v1622_v16 = vunpack.c.l.bf16 %v2400_v5  ;;  %v1623_v17 = vunpack.c.h.bf16 %v2400_v5  ;;  %v1686_v18 = vunpack.c.l.bf16 %v2405_v6  ;;  %1017 = vmatprep.mubr.bf16.mxu0 %v2063_v35  ;;  %v1831_v57 = vld [vmem:[%s2590_s2 + $0x20] sm:$0xff]  }
  0x67   : > { %v449_v19 = vmul.f32 %v1634_v44, %v2410_v15  ;;  %v450_v20 = vmul.f32 %v1635_v45, %v2410_v15  ;;  %v2418_v21 = vstv %s2375_s11  ;;  %v433_v22 = vmul.f32 %v1602_v51, %v2410_v15  ;;  %v2066_v44 = vld [vmem:[%s2334_s28 + $0x44] ss:$8 sps:$4 sm:$0xff]  }
  0x68   : > { %v551_v23 = vmul.f32 %v1698_v46, %v2418_v21  ;;  %v552_v24 = vmul.f32 %v1699_v47, %v2418_v21  ;;  %v434_v25 = vmul.f32 %v1603_v52, %v2410_v15  ;;  %v535_v26 = vmul.f32 %v1666_v53, %v2418_v21  ;;  %1049 = vmatprep.mubr.bf16.mxu1 %v2066_v44  ;;  %v1847_v62 = vld [vmem:[%s2590_s2 + $0xa0] sm:$0xff]  }
  0x69   : > { %v536_v27 = vmul.f32 %v1667_v54, %v2418_v21  ;;  %v447_v28 = vmul.f32 %v1630_v58, %v2410_v15  ;;  %v448_v29 = vmul.f32 %v1631_v59, %v2410_v15  ;;  %v549_v30 = vmul.f32 %v1694_v60, %v2418_v21 }
  0x6a   : > { %v583_v31 = vadd.f32 %v551_v23, %v449_v19  ;;  %v584_v32 = vadd.f32 %v552_v24, %v450_v20  ;;  %v567_v33 = vadd.f32 %v535_v26, %v433_v22  ;;  %v550_v34 = vmul.f32 %v1695_v61, %v2418_v21  ;;  %v1846_v19 = vld [vmem:[%s2590_s2 + $0x98] sm:$0xff]   ;;  %v1837_v26 = vld [vmem:[%s2590_s2 + $0x50] sm:$0xff]  }
  0x6b   : > { %v568_v36 = vadd.f32 %v536_v27, %v434_v25  ;;  %v581_v37 = vadd.f32 %v549_v30, %v447_v28  ;;  %v431_v38 = vmul.f32 %v1598_v1, %v2410_v15  ;;  %v432_v39 = vmul.f32 %v1599_v2, %v2410_v15 }
  0x6c   : > { %v1778_v40 = vpack.c.bf16 %v584_v32, %v583_v31  ;;  %v582_v41 = vadd.f32 %v550_v34, %v448_v29  ;;  %v533_v42 = vmul.f32 %v1662_v3, %v2418_v21  ;;  %v534_v43 = vmul.f32 %v1663_v4, %v2418_v21  ;;  %v1838_v3 = vld [vmem:[%s2590_s2 + $0x58] sm:$0xff]  }
  0x6d   : > { %v1738_v45 = vpack.c.bf16 %v568_v36, %v567_v33  ;;  %v445_v46 = vmul.f32 %v1626_v7, %v2410_v15  ;;  %v446_v47 = vmul.f32 %v1627_v8, %v2410_v15  ;;  %v547_v48 = vmul.f32 %v1690_v9, %v2418_v21 }
  0x6e   : > { %1873 = vst [vmem:[#allocation3 + $0x78] sm:$0xff] %v1778_v40   ;;  %v1773_v49 = vpack.c.bf16 %v582_v41, %v581_v37  ;;  %v565_v50 = vadd.f32 %v533_v42, %v431_v38  ;;  %v566_v51 = vadd.f32 %v534_v43, %v432_v39  ;;  %v548_v52 = vmul.f32 %v1691_v10, %v2418_v21  ;;  %v1853_v41 = vld [vmem:[%s2590_s2 + $0xd0] sm:$0xff]  }
  0x6f   : > { %1865 = vst [vmem:[#allocation3 + $0x38] sm:$0xff] %v1738_v45   ;;  %v579_v53 = vadd.f32 %v547_v48, %v445_v46  ;;  %v429_v54 = vmul.f32 %v1594_v11, %v2410_v15  ;;  %v430_v55 = vmul.f32 %v1595_v12, %v2410_v15  ;;  %v531_v56 = vmul.f32 %v1658_v13, %v2418_v21  ;;  %v1830_v13 = vld [vmem:[%s2590_s2 + $0x18] sm:$0xff]   ;;  %v1829_v42 = vld [vmem:[%s2590_s2 + $0x10] sm:$0xff]  }
  0x70   : > { %1872 = vst [vmem:[#allocation3 + $0x70] sm:$0xff] %v1773_v49   ;;  %v1733_v58 = vpack.c.bf16 %v566_v51, %v565_v50  ;;  %v580_v59 = vadd.f32 %v548_v52, %v446_v47  ;;  %v532_v60 = vmul.f32 %v1659_v14, %v2418_v21  ;;  %v443_v61 = vmul.f32 %v1622_v16, %v2410_v15  ;;  %v1845_v52 = vld [vmem:[%s2590_s2 + $0x90] sm:$0xff]  }
  0x71   : > { %v563_v63 = vadd.f32 %v531_v56, %v429_v54  ;;  %v444_v0 = vmul.f32 %v1623_v17, %v2410_v15  ;;  %v1687_v1 = vunpack.c.h.bf16 %v2405_v6  ;;  %v545_v2 = vmul.f32 %v1686_v18, %v2418_v21  ;;  %v1854_v6 = vld [vmem:[%s2590_s2 + $0xd8] sm:$0xff]  }
  0x72   : > { %1864 = vst [vmem:[#allocation3 + $0x30] sm:$0xff] %v1733_v58   ;;  %v1768_v4 = vpack.c.bf16 %v580_v59, %v579_v53  ;;  %v564_v5 = vadd.f32 %v532_v60, %v430_v55  ;;  %v1590_v7 = vunpack.c.l.bf16 %v1831_v57  ;;  %v1591_v8 = vunpack.c.h.bf16 %v1831_v57 }
  0x73   : > { %v546_v9 = vmul.f32 %v1687_v1, %v2418_v21  ;;  %v577_v10 = vadd.f32 %v545_v2, %v443_v61  ;;  %v1654_v11 = vunpack.c.l.bf16 %v1847_v62  ;;  %v1655_v12 = vunpack.c.h.bf16 %v1847_v62  ;;  %v1836_v62 = vld [vmem:[%s2590_s2 + $0x48] sm:$0xff]  }
  0x74   : > { %1871 = vst [vmem:[#allocation3 + $0x68] sm:$0xff] %v1768_v4   ;;  %v1728_v14 = vpack.c.bf16 %v564_v5, %v563_v63  ;;  %v427_v16 = vmul.f32 %v1590_v7, %v2410_v15  ;;  %v428_v17 = vmul.f32 %v1591_v8, %v2410_v15  ;;  %v1618_v18 = vunpack.c.l.bf16 %v1838_v3 }
  0x75   : > { %v2045_v20 = vld [vmem:[#allocation3 + $0x78] sm:$0xff]   ;;  %v578_v22 = vadd.f32 %v546_v9, %v444_v0  ;;  %v529_v23 = vmul.f32 %v1654_v11, %v2418_v21  ;;  %v530_v24 = vmul.f32 %v1655_v12, %v2418_v21  ;;  %v1619_v25 = vunpack.c.h.bf16 %v1838_v3  ;;  %v1852_v9 = vld [vmem:[%s2590_s2 + $0xc8] sm:$0xff]  }
  0x76   : > { %v2046_v27 = vld [vmem:[#allocation3 + $0x38] sm:$0xff]   ;;  %1863 = vst [vmem:[#allocation3 + $0x28] sm:$0xff] %v1728_v14   ;;  %v441_v28 = vmul.f32 %v1618_v18, %v2410_v15  ;;  %v1682_v29 = vunpack.c.l.bf16 %v1854_v6  ;;  %v1683_v30 = vunpack.c.h.bf16 %v1854_v6  ;;  %v1586_v31 = vunpack.c.l.bf16 %v1830_v13  ;;  %1881 = vmatprep.subr.bf16.mxu0 %v2045_v20  ;;  %1945 = vmatprep.subr.bf16.mxu1 %v2045_v20 }
  0x77   : > { %v2047_v32 = vld [vmem:[#allocation3 + $0x70] sm:$0xff]   ;;  %v1763_v33 = vpack.c.bf16 %v578_v22, %v577_v10  ;;  %v561_v34 = vadd.f32 %v529_v23, %v427_v16  ;;  %v562_v35 = vadd.f32 %v530_v24, %v428_v17  ;;  %v1587_v36 = vunpack.c.h.bf16 %v1830_v13  ;;  %1882 = vmatpush3.bf16.msra.mxu0 %v2046_v27  ;;  %1953 = vmatpush3.bf16.msra.mxu1 %v2046_v27  ;;  %v1828_v10 = vld [vmem:[%s2590_s2 + $0x8] sm:$0xff]  }
  0x78   : > { %v442_v37 = vmul.f32 %v1619_v25, %v2410_v15  ;;  %v543_v38 = vmul.f32 %v1682_v29, %v2418_v21  ;;  %v544_v39 = vmul.f32 %v1683_v30, %v2418_v21  ;;  %v1650_v40 = vunpack.c.l.bf16 %v1846_v19  ;;  %1883 = vmatprep.subr.bf16.mxu0 %v2047_v32  ;;  %1946 = vmatprep.subr.bf16.mxu1 %v2047_v32  ;;  %v1844_v25 = vld [vmem:[%s2590_s2 + $0x88] sm:$0xff]  }
  0x79   : > { %v2048_v43 = vld [vmem:[#allocation3 + $0x30] sm:$0xff]   ;;  %1870 = vst [vmem:[#allocation3 + $0x60] sm:$0xff] %v1763_v33   ;;  %v1723_v44 = vpack.c.bf16 %v562_v35, %v561_v34  ;;  %v425_v45 = vmul.f32 %v1586_v31, %v2410_v15  ;;  %v426_v46 = vmul.f32 %v1587_v36, %v2410_v15  ;;  %v1651_v47 = vunpack.c.h.bf16 %v1846_v19  ;;  %v1851_v36 = vld [vmem:[%s2590_s2 + $0xc0] sm:$0xff]  }
  0x7a   : > { %v575_v48 = vadd.f32 %v543_v38, %v441_v28  ;;  %v576_v49 = vadd.f32 %v544_v39, %v442_v37  ;;  %v527_v50 = vmul.f32 %v1650_v40, %v2418_v21  ;;  %v1614_v51 = vunpack.c.l.bf16 %v1837_v26 }
  0x7b   : > { %v2049_v53 = vld [vmem:[#allocation3 + $0x68] sm:$0xff]   ;;  %1862 = vst [vmem:[#allocation3 + $0x20] sm:$0xff] %v1723_v44   ;;  %v528_v54 = vmul.f32 %v1651_v47, %v2418_v21  ;;  %v1615_v55 = vunpack.c.h.bf16 %v1837_v26  ;;  %v1678_v56 = vunpack.c.l.bf16 %v1853_v41  ;;  %v1679_v57 = vunpack.c.h.bf16 %v1853_v41  ;;  %1884 = vmatpush3.bf16.msra.mxu0 %v2048_v43  ;;  %1954 = vmatpush3.bf16.msra.mxu1 %v2048_v43  ;;  %v1835_v26 = vld [vmem:[%s2590_s2 + $0x40] sm:$0xff]  }
  0x7c   : > { %v1758_v58 = vpack.c.bf16 %v576_v49, %v575_v48  ;;  %v559_v59 = vadd.f32 %v527_v50, %v425_v45  ;;  %v439_v60 = vmul.f32 %v1614_v51, %v2410_v15  ;;  %v1582_v61 = vunpack.c.l.bf16 %v1829_v42  ;;  %1885 = vmatprep.subr.bf16.mxu0 %v2049_v53  ;;  %1947 = vmatprep.subr.bf16.mxu1 %v2049_v53  ;;  %v1573_v41 = vld [vmem:[%s2590_s2] sm:$0xff]  }
  0x7d   : > { %v2050_v63 = vld [vmem:[#allocation3 + $0x28] sm:$0xff]   ;;  %v560_v0 = vadd.f32 %v528_v54, %v426_v46  ;;  %v440_v1 = vmul.f32 %v1615_v55, %v2410_v15  ;;  %v541_v2 = vmul.f32 %v1678_v56, %v2418_v21  ;;  %v1583_v3 = vunpack.c.h.bf16 %v1829_v42  ;;  %v1843_v51 = vld [vmem:[%s2590_s2 + $0x80] sm:$0xff]  }
  0x7e   : > { %1869 = vst [vmem:[#allocation3 + $0x58] sm:$0xff] %v1758_v58   ;;  %v542_v4 = vmul.f32 %v1679_v57, %v2418_v21  ;;  %v423_v5 = vmul.f32 %v1582_v61, %v2410_v15  ;;  %v1646_v7 = vunpack.c.l.bf16 %v1845_v52  ;;  %v1647_v8 = vunpack.c.h.bf16 %v1845_v52 }
  0x7f   : > { %v1718_v11 = vpack.c.bf16 %v560_v0, %v559_v59  ;;  %v573_v12 = vadd.f32 %v541_v2, %v439_v60  ;;  %v424_v6 = vmul.f32 %v1583_v3, %v2410_v15  ;;  %v1610_v13 = vunpack.c.l.bf16 %v1836_v62  ;;  %1886 = vmatpush3.bf16.msra.mxu0 %v2050_v63  ;;  %1955 = vmatpush3.bf16.msra.mxu1 %v2050_v63 }
  0x80   : > { %v2051_v14 = vld [vmem:[#allocation3 + $0x60] sm:$0xff]   ;;  %v574_v16 = vadd.f32 %v542_v4, %v440_v1  ;;  %v525_v17 = vmul.f32 %v1646_v7, %v2418_v21  ;;  %v526_v18 = vmul.f32 %v1647_v8, %v2418_v21  ;;  %v1611_v19 = vunpack.c.h.bf16 %v1836_v62 }
  0x81   : > { %1861 = vst [vmem:[#allocation3 + $0x18] sm:$0xff] %v1718_v11   ;;  %v437_v20 = vmul.f32 %v1610_v13, %v2410_v15  ;;  %v1674_v22 = vunpack.c.l.bf16 %v1852_v9  ;;  %v1675_v23 = vunpack.c.h.bf16 %v1852_v9  ;;  %v1578_v24 = vunpack.c.l.bf16 %v1828_v10  ;;  %1887 = vmatprep.subr.bf16.mxu0 %v2051_v14  ;;  %1948 = vmatprep.subr.bf16.mxu1 %v2051_v14 }
  0x82   : > { %v2052_v27 = vld [vmem:[#allocation3 + $0x20] sm:$0xff]   ;;  %v1753_v28 = vpack.c.bf16 %v574_v16, %v573_v12  ;;  %v557_v29 = vadd.f32 %v525_v17, %v423_v5  ;;  %v558_v30 = vadd.f32 %v526_v18, %v424_v6  ;;  %v1579_v31 = vunpack.c.h.bf16 %v1828_v10  ;;  %v2067_v18 = vld [vmem:[%s2334_s28 + $0x14] ss:$8 sps:$4 sm:$0xff]  }
  0x83   : > { %v438_v32 = vmul.f32 %v1611_v19, %v2410_v15  ;;  %v539_v33 = vmul.f32 %v1674_v22, %v2418_v21  ;;  %v540_v34 = vmul.f32 %v1675_v23, %v2418_v21  ;;  %v421_v35 = vmul.f32 %v1578_v24, %v2410_v15  ;;  %1888 = vmatpush3.bf16.msra.mxu0 %v2052_v27  ;;  %v2061_v16 = vld [vmem:[%s2334_s28] ss:$8 sps:$4 sm:$0xff]   ;;  %v2069_v19 = vld [vmem:[%s2334_s28 + $0x54] ss:$8 sps:$4 sm:$0xff]   ;;  %v2072_v22 = vld [vmem:[%s2334_s28 + $0x50] ss:$8 sps:$4 sm:$0xff]  }
  0x84   : > { %1956 = vmatpush3.bf16.msra.mxu1 %v2052_v27  ;;  %1868 = vst [vmem:[#allocation3 + $0x50] sm:$0xff] %v1753_v28   ;;  %v1713_v37 = vpack.c.bf16 %v558_v30, %v557_v29  ;;  %v422_v38 = vmul.f32 %v1579_v31, %v2410_v15  ;;  %v1642_v39 = vunpack.c.l.bf16 %v1844_v25  ;;  %v1643_v40 = vunpack.c.h.bf16 %v1844_v25  ;;  %v2064_v17 = vld [vmem:[%s2334_s28 + $0x40] ss:$8 sps:$4 sm:$0xff]   ;;  %v2073_v23 = vld [vmem:[%s2334_s28 + $0x24] ss:$8 sps:$4 sm:$0xff]  }
  0x85   : > { %v2053_v42 = vld [vmem:[#allocation3 + $0x58] sm:$0xff]   ;;  %v571_v43 = vadd.f32 %v539_v33, %v437_v20  ;;  %v572_v44 = vadd.f32 %v540_v34, %v438_v32  ;;  %v1606_v45 = vunpack.c.l.bf16 %v1835_v26  ;;  %v1607_v46 = vunpack.c.h.bf16 %v1835_v26  ;;  %v2075_v24 = vld [vmem:[%s2334_s28 + $0x64] ss:$8 sps:$4 sm:$0xff]   ;;  %v2077_v25 = vld [vmem:[%s2334_s28 + $0x20] ss:$8 sps:$4 sm:$0xff]  }
  0x86   : > { %1860 = vst [vmem:[#allocation3 + $0x10] sm:$0xff] %v1713_v37   ;;  %v523_v47 = vmul.f32 %v1642_v39, %v2418_v21  ;;  %v524_v48 = vmul.f32 %v1643_v40, %v2418_v21  ;;  %v1670_v49 = vunpack.c.l.bf16 %v1851_v36  ;;  %v1671_v50 = vunpack.c.h.bf16 %v1851_v36  ;;  %1889 = vmatprep.subr.bf16.mxu0 %v2053_v42  ;;  %1949 = vmatprep.subr.bf16.mxu1 %v2053_v42  ;;  %v2071_v20 = vld [vmem:[%s2334_s28 + $0x10] ss:$8 sps:$4 sm:$0xff]   ;;  %v2078_v26 = vld [vmem:[%s2334_s28 + $0x60] ss:$8 sps:$4 sm:$0xff]  }
  0x87   : > { %v1748_v52 = vpack.c.bf16 %v572_v44, %v571_v43  ;;  %v435_v53 = vmul.f32 %v1606_v45, %v2410_v15  ;;  %v436_v54 = vmul.f32 %v1607_v46, %v2410_v15  ;;  %v1574_v55 = vunpack.c.l.bf16 %v1573_v41  ;;  %v2079_v27 = vld [vmem:[%s2334_s28 + $0x34] ss:$8 sps:$4 sm:$0xff]   ;;  %v2083_v29 = vld [vmem:[%s2334_s28 + $0x30] ss:$8 sps:$4 sm:$0xff]   ;;  %v746_v43 = vld [vmem:[#allocation2] sm:$0xff] }
  0x88   : > { %v2054_v56 = vld [vmem:[#allocation3 + $0x18] sm:$0xff]   ;;  %v555_v57 = vadd.f32 %v523_v47, %v421_v35  ;;  %v556_v58 = vadd.f32 %v524_v48, %v422_v38  ;;  %v537_v59 = vmul.f32 %v1670_v49, %v2418_v21  ;;  %v538_v60 = vmul.f32 %v1671_v50, %v2418_v21  ;;  %v745_v33 = vld [vmem:[#allocation2 + $0x30] sm:$0xff]  ;;  %v753_v35 = vld [vmem:[#allocation2 + $0x40] sm:$0xff] }
  0x89   : > { %1867 = vst [vmem:[#allocation3 + $0x48] sm:$0xff] %v1748_v52   ;;  %v1575_v61 = vunpack.c.h.bf16 %v1573_v41  ;;  %v419_v62 = vmul.f32 %v1574_v55, %v2410_v15  ;;  %v1638_v63 = vunpack.c.l.bf16 %v1843_v51  ;;  %v1639_v0 = vunpack.c.h.bf16 %v1843_v51  ;;  %1890 = vmatpush3.bf16.msra.mxu0 %v2054_v56  ;;  %1957 = vmatpush3.bf16.msra.mxu1 %v2054_v56  ;;  %v2081_v28 = vld [vmem:[%s2334_s28 + $0x74] ss:$8 sps:$4 sm:$0xff]   ;;  %v2084_v30 = vld [vmem:[%s2334_s28 + $0x70] ss:$8 sps:$4 sm:$0xff]   ;;  %v754_v45 = vld [vmem:[#allocation2 + $0x20] sm:$0xff] }
  0x8a   : > { %v1708_v1 = vpack.c.bf16 %v556_v58, %v555_v57  ;;  %v569_v2 = vadd.f32 %v537_v59, %v435_v53  ;;  %v570_v3 = vadd.f32 %v538_v60, %v436_v54  ;;  %v747_v53 = vld [vmem:[#allocation2 + $0x58] sm:$0xff]  ;;  %v755_v55 = vld [vmem:[#allocation2 + $0x10] sm:$0xff] }
  0x8b   : > { %v2055_v4 = vld [vmem:[#allocation3 + $0x50] sm:$0xff]   ;;  %v420_v5 = vmul.f32 %v1575_v61, %v2410_v15  ;;  %v521_v7 = vmul.f32 %v1638_v63, %v2418_v21  ;;  %v522_v8 = vmul.f32 %v1639_v0, %v2418_v21  ;;  %v748_v63 = vld [vmem:[#allocation2 + $0x18] sm:$0xff] }
  0x8c   : > { %1859 = vst [vmem:[#allocation3 + $0x8] sm:$0xff] %v1708_v1   ;;  %v1743_v9 = vpack.c.bf16 %v570_v3, %v569_v2  ;;  %1891 = vmatprep.subr.bf16.mxu0 %v2055_v4  ;;  %1950 = vmatprep.subr.bf16.mxu1 %v2055_v4  ;;  %v756_v1 = vld [vmem:[#allocation2 + $0x38] sm:$0xff] }
  0x8d   : > { %v2056_v10 = vld [vmem:[#allocation3 + $0x10] sm:$0xff]   ;;  %v553_v11 = vadd.f32 %v521_v7, %v419_v62  ;;  %v554_v12 = vadd.f32 %v522_v8, %v420_v5 }
  0x8e   : > { %1866 = vst [vmem:[#allocation3 + $0x40] sm:$0xff] %v1743_v9   ;;  %1892 = vmatpush3.bf16.msra.mxu0 %v2056_v10  ;;  %1958 = vmatpush3.bf16.msra.mxu1 %v2056_v10  ;;  %v749_v10 = vld [vmem:[#allocation2 + $0x50] sm:$0xff] }
  0x8f   : > { %v1703_v6 = vpack.c.bf16 %v554_v12, %v553_v11  ;;  %v757_v12 = vld [vmem:[#allocation2 + $0x60] sm:$0xff] }
  0x90   : > { %v2057_v13 = vld [vmem:[#allocation3 + $0x48] sm:$0xff]  }
  0x91   : > { %1704 = vst [vmem:[#allocation3] sm:$0xff] %v1703_v6   ;;  %1893 = vmatprep.subr.bf16.mxu0 %v2057_v13  ;;  %1951 = vmatprep.subr.bf16.mxu1 %v2057_v13 }
  0x93   : > { %v2058_v15 = vld [vmem:[#allocation3 + $0x8] sm:$0xff]  }
  0x94   : > { %1894 = vmatpush3.bf16.msra.mxu0 %v2058_v15  ;;  %1959 = vmatpush3.bf16.msra.mxu1 %v2058_v15 }
  0x95   : > { %v2059_v21 = vld [vmem:[#allocation3 + $0x40] sm:$0xff]  }
  0x96   : > { %1895 = vmatprep.subr.bf16.mxu0 %v2059_v21  ;;  %1952 = vmatprep.subr.bf16.mxu1 %v2059_v21 }
  0x98   : > { %v2060_v14 = vld [vmem:[#allocation3] sm:$0xff]  }
  0x99   : > { %1896 = vmatpush3.bf16.msra.mxu0 %v2060_v14  ;;  %1960 = vmatpush3.bf16.msra.mxu1 %v2060_v14 }
  0x9c   : > { %1018 = vmatmul.mubr.bf16.vlgmr.msra.gmra.mxu0 %v2061_v16  ;;  %1050 = vmatmul.mubr.bf16.vlgmr.msra.gmra.mxu1 %v2064_v17 }
  0x9d   : > { %1025 = vmatprep.mubr.bf16.mxu0 %v2067_v18  ;;  %1057 = vmatprep.mubr.bf16.mxu1 %v2069_v19  ;;  %v750_v18 = vld [vmem:[#allocation2 + $0x68] sm:$0xff] }
  0xa4   : > { %1026 = vmatmul.mubr.bf16.gmra.mxu0 %v2071_v20  ;;  %1058 = vmatmul.mubr.bf16.gmra.mxu1 %v2072_v22  ;;  %v758_v20 = vld [vmem:[#allocation2 + $0x70] sm:$0xff] }
  0xa5   : > { %1033 = vmatprep.mubr.bf16.mxu0 %v2073_v23  ;;  %1065 = vmatprep.mubr.bf16.mxu1 %v2075_v24 }
  0xac   : > { %1034 = vmatmul.mubr.bf16.gmra.mxu0 %v2077_v25  ;;  %1066 = vmatmul.mubr.bf16.gmra.mxu1 %v2078_v26 }
  0xad   : > { %1041 = vmatprep.mubr.bf16.mxu0 %v2079_v27  ;;  %1073 = vmatprep.mubr.bf16.mxu1 %v2081_v28 }
  0xb4   : > { %1042 = vmatmul.mubr.bf16.gmra.mxu0 %v2083_v29  ;;  %1074 = vmatmul.mubr.bf16.gmra.mxu1 %v2084_v30  ;;  %v751_v29 = vld [vmem:[#allocation2 + $0x8] sm:$0xff] }
 0x15c   : > { %v1897_v31 = vpop.f32.mrf.mxu0  ;;  %v1921_v32 = vpop.f32.mrf.mxu1 }
 0x15e   : > { %v1898_v34 = vpop.f32.mrf.mxu0  ;;  %v1922_v36 = vpop.f32.mrf.mxu1 }
 0x15f   : > { %v1899_v37 = vadd.f32 %v1898_v34, %v1897_v31  ;;  %v1923_v38 = vadd.f32 %v1922_v36, %v1921_v32  ;;  %v759_v31 = vld [vmem:[#allocation2 + $0x78] sm:$0xff] }
 0x160   : > { %v1900_v39 = vpop.f32.mrf.mxu0  ;;  %v1924_v40 = vpop.f32.mrf.mxu1 }
 0x161   : > { %v1082_v41 = vadd.f32 %v1899_v37, %v745_v33  ;;  %v1090_v42 = vadd.f32 %v1923_v38, %v753_v35 }
 0x162   : > { %v1901_v44 = vpop.f32.mrf.mxu0  ;;  %v1925_v46 = vpop.f32.mrf.mxu1 }
 0x163   : > { %1098 = vst [vmem:[#allocation2 + $0x30] sm:$0xff] %v1082_v41  ;;  %1106 = vst [vmem:[#allocation2 + $0x40] sm:$0xff] %v1090_v42  ;;  %v1902_v47 = vadd.f32 %v1901_v44, %v1900_v39  ;;  %v1926_v48 = vadd.f32 %v1925_v46, %v1924_v40  ;;  %v752_v39 = vld [vmem:[#allocation2 + $0x48] sm:$0xff] }
 0x164   : > { %v1903_v49 = vpop.f32.mrf.mxu0  ;;  %v1927_v50 = vpop.f32.mrf.mxu1  ;;  %v760_v41 = vld [vmem:[#allocation2 + $0x28] sm:$0xff] }
 0x165   : > { %v1083_v51 = vadd.f32 %v1902_v47, %v746_v43  ;;  %v1091_v52 = vadd.f32 %v1926_v48, %v754_v45 }
 0x166   : > { %v1904_v54 = vpop.f32.mrf.mxu0  ;;  %v1928_v56 = vpop.f32.mrf.mxu1 }
 0x167   : > { %1099 = vst [vmem:[#allocation2] sm:$0xff] %v1083_v51  ;;  %1107 = vst [vmem:[#allocation2 + $0x20] sm:$0xff] %v1091_v52  ;;  %v1905_v57 = vadd.f32 %v1904_v54, %v1903_v49  ;;  %v1929_v58 = vadd.f32 %v1928_v56, %v1927_v50 }
 0x168   : > { %v1906_v59 = vpop.f32.mrf.mxu0  ;;  %v1930_v60 = vpop.f32.mrf.mxu1 }
 0x169   : > { %v1084_v61 = vadd.f32 %v1905_v57, %v747_v53  ;;  %v1092_v62 = vadd.f32 %v1929_v58, %v755_v55 }
 0x16a   : > { %v1907_v0 = vpop.f32.mrf.mxu0  ;;  %v1931_v2 = vpop.f32.mrf.mxu1  ;;  %v1119_v47 = vld [vmem:[#allocation2 + $0x30] sm:$0xff] (%p1114_p3) }
 0x16b   : > { %1100 = vst [vmem:[#allocation2 + $0x58] sm:$0xff] %v1084_v61  ;;  %1108 = vst [vmem:[#allocation2 + $0x10] sm:$0xff] %v1092_v62  ;;  %v1908_v3 = vadd.f32 %v1907_v0, %v1906_v59  ;;  %v1932_v4 = vadd.f32 %v1931_v2, %v1930_v60  ;;  %v1135_v50 = vmax.f32 (%p1114_p3), %v1119_v47, 0.0  ;;  %v1127_v61 = vld [vmem:[#allocation2 + $0x40] sm:$0xff] (%p1114_p3) }
 0x16c   : > { %v1909_v5 = vpop.f32.mrf.mxu0  ;;  %v1933_v7 = vpop.f32.mrf.mxu1  ;;  %v1143_v2 = vmax.f32 (%p1114_p3), %v1127_v61, 0.0 }
 0x16d   : > { %v1085_v8 = vadd.f32 %v1908_v3, %v748_v63  ;;  %v1093_v9 = vadd.f32 %v1932_v4, %v756_v1 }
 0x16e   : > { %v1910_v11 = vpop.f32.mrf.mxu0  ;;  %v1934_v6 = vpop.f32.mrf.mxu1  ;;  %v1120_v48 = vld [vmem:[#allocation2] sm:$0xff] (%p1114_p3) }
 0x16f   : > { %1101 = vst [vmem:[#allocation2 + $0x18] sm:$0xff] %v1085_v8  ;;  %1109 = vst [vmem:[#allocation2 + $0x38] sm:$0xff] %v1093_v9  ;;  %v1911_v13 = vadd.f32 %v1910_v11, %v1909_v5  ;;  %v1935_v15 = vadd.f32 %v1934_v6, %v1933_v7  ;;  %v1136_v51 = vmax.f32 (%p1114_p3), %v1120_v48, 0.0  ;;  %v1128_v1 = vld [vmem:[#allocation2 + $0x20] sm:$0xff] (%p1114_p3) }
 0x170   : > { %v1912_v21 = vpop.f32.mrf.mxu0  ;;  %v1936_v14 = vpop.f32.mrf.mxu1  ;;  %v1144_v8 = vmax.f32 (%p1114_p3), %v1128_v1, 0.0 }
 0x171   : > { %v1086_v16 = vadd.f32 %v1911_v13, %v749_v10  ;;  %v1094_v17 = vadd.f32 %v1935_v15, %v757_v12  ;;  %v1783_v62 = vpack.c.bf16 (%p1114_p3), %v1136_v51, %v1135_v50 }
 0x172   : > { %v1913_v19 = vpop.f32.mrf.mxu0  ;;  %v1937_v22 = vpop.f32.mrf.mxu1  ;;  %v1121_v49 = vld [vmem:[#allocation2 + $0x58] sm:$0xff] (%p1114_p3)  ;;  %v1129_v3 = vld [vmem:[#allocation2 + $0x10] sm:$0xff] (%p1114_p3) }
 0x173   : > { %1102 = vst [vmem:[#allocation2 + $0x50] sm:$0xff] %v1086_v16  ;;  %1110 = vst [vmem:[#allocation2 + $0x60] sm:$0xff] %v1094_v17  ;;  %v1914_v23 = vadd.f32 %v1913_v19, %v1912_v21  ;;  %v1938_v24 = vadd.f32 %v1937_v22, %v1936_v14  ;;  %v1137_v53 = vmax.f32 (%p1114_p3), %v1121_v49, 0.0  ;;  %v1145_v9 = vmax.f32 (%p1114_p3), %v1129_v3, 0.0 }
 0x174   : > { %v1915_v25 = vpop.f32.mrf.mxu0  ;;  %v1939_v26 = vpop.f32.mrf.mxu1  ;;  %1784 = vst [vmem:[%s2345_s5] sm:$0xff] (%p1114_p3), %v1783_v62   ;;  %v1803_v16 = vpack.c.bf16 (%p1114_p3), %v1144_v8, %v1143_v2 }
 0x175   : > { %v1087_v27 = vadd.f32 %v1914_v23, %v750_v18  ;;  %v1095_v28 = vadd.f32 %v1938_v24, %v758_v20 }
 0x176   : > { %v1916_v30 = vpop.f32.mrf.mxu0  ;;  %v1940_v32 = vpop.f32.mrf.mxu1  ;;  %v1122_v52 = vld [vmem:[#allocation2 + $0x18] sm:$0xff] (%p1114_p3)  ;;  %1877 = vst [vmem:[%s2345_s5 + $0x20] sm:$0xff] (%p1114_p3), %v1803_v16  }
 0x177   : > { %1103 = vst [vmem:[#allocation2 + $0x68] sm:$0xff] %v1087_v27  ;;  %1111 = vst [vmem:[#allocation2 + $0x70] sm:$0xff] %v1095_v28  ;;  %v1917_v33 = vadd.f32 %v1916_v30, %v1915_v25  ;;  %v1941_v34 = vadd.f32 %v1940_v32, %v1939_v26  ;;  %v1138_v56 = vmax.f32 (%p1114_p3), %v1122_v52, 0.0  ;;  %v1130_v4 = vld [vmem:[#allocation2 + $0x38] sm:$0xff] (%p1114_p3) }
 0x178   : > { %v1918_v35 = vpop.f32.mrf.mxu0  ;;  %v1942_v36 = vpop.f32.mrf.mxu1  ;;  %v1146_v13 = vmax.f32 (%p1114_p3), %v1130_v4, 0.0 }
 0x179   : > { %v1088_v37 = vadd.f32 %v1917_v33, %v751_v29  ;;  %v1096_v38 = vadd.f32 %v1941_v34, %v759_v31  ;;  %v1788_v5 = vpack.c.bf16 (%p1114_p3), %v1138_v56, %v1137_v53 }
 0x17a   : > { %v1919_v40 = vpop.f32.mrf.mxu0  ;;  %v1943_v42 = vpop.f32.mrf.mxu1  ;;  %v1123_v54 = vld [vmem:[#allocation2 + $0x50] sm:$0xff] (%p1114_p3)  ;;  %v1131_v10 = vld [vmem:[#allocation2 + $0x60] sm:$0xff] (%p1114_p3)  ;;  %v1808_v19 = vpack.c.bf16 (%p1114_p3), %v1146_v13, %v1145_v9 }
 0x17b   : > { %1104 = vst [vmem:[#allocation2 + $0x8] sm:$0xff] %v1088_v37  ;;  %1112 = vst [vmem:[#allocation2 + $0x78] sm:$0xff] %v1096_v38  ;;  %v1920_v43 = vadd.f32 %v1919_v40, %v1918_v35  ;;  %v1944_v44 = vadd.f32 %v1943_v42, %v1942_v36  ;;  %1118 = sbr.rel (!%p1114_p3) target bundleno = 397 (0x18d), region = 52  ;;  %v1139_v57 = vmax.f32 (%p1114_p3), %v1123_v54, 0.0  ;;  %v1147_v15 = vmax.f32 (%p1114_p3), %v1131_v10, 0.0 }
 0x17c   : > { %1874 = vst [vmem:[%s2345_s5 + $0x8] sm:$0xff] (%p1114_p3), %v1788_v5   ;;  %1878 = vst [vmem:[%s2345_s5 + $0x28] sm:$0xff] (%p1114_p3), %v1808_v19  }
 0x17d   : > { %v1089_v45 = vadd.f32 %v1920_v43, %v752_v39  ;;  %v1097_v46 = vadd.f32 %v1944_v44, %v760_v41 }
 0x17e   : > { %v1124_v55 = vld [vmem:[#allocation2 + $0x68] sm:$0xff] (%p1114_p3)  ;;  %v1132_v11 = vld [vmem:[#allocation2 + $0x70] sm:$0xff] (%p1114_p3) }
 0x17f   : > { %1105 = vst [vmem:[#allocation2 + $0x48] sm:$0xff] %v1089_v45  ;;  %1113 = vst [vmem:[#allocation2 + $0x28] sm:$0xff] %v1097_v46  ;;  %v1140_v58 = vmax.f32 (%p1114_p3), %v1124_v55, 0.0  ;;  %v1148_v21 = vmax.f32 (%p1114_p3), %v1132_v11, 0.0 }
 0x181   : > { %v1793_v7 = vpack.c.bf16 %v1140_v58, %v1139_v57  ;;  %v1813_v20 = vpack.c.bf16 %v1148_v21, %v1147_v15 }
 0x182   : > { %v1125_v59 = vld [vmem:[#allocation2 + $0x8] sm:$0xff]  ;;  %v1133_v12 = vld [vmem:[#allocation2 + $0x78] sm:$0xff] }
 0x183   : > { %v1141_v63 = vmax.f32 %v1125_v59, 0.0  ;;  %1875 = vst [vmem:[%s2345_s5 + $0x10] sm:$0xff] %v1793_v7   ;;  %v1149_v17 = vmax.f32 %v1133_v12, 0.0  ;;  %1879 = vst [vmem:[%s2345_s5 + $0x30] sm:$0xff] %v1813_v20  }
 0x186   : > { %v1126_v60 = vld [vmem:[#allocation2 + $0x48] sm:$0xff] }
 0x187   : > { %v1142_v0 = vmax.f32 %v1126_v60, 0.0  ;;  %v1134_v14 = vld [vmem:[#allocation2 + $0x28] sm:$0xff] }
 0x188   : > { %v1150_v18 = vmax.f32 %v1134_v14, 0.0 }
 0x189   : > { %v1798_v6 = vpack.c.bf16 %v1142_v0, %v1141_v63 }
 0x18a   : > { %v1818_v22 = vpack.c.bf16 %v1150_v18, %v1149_v17 }
 0x18b   : > { %1876 = vst [vmem:[%s2345_s5 + $0x18] sm:$0xff] %v1798_v6  }
 0x18c   : > { %1880 = vst [vmem:[%s2345_s5 + $0x38] sm:$0xff] %v1818_v22  }
 0x18d PF: > { %s2610_s18 = sld [smem:[#allocation10_spill]]  ;;  %s2612_s15 = smov %s2174_s16 }
 0x18e   : > { %s2611_s6 = sld [smem:[#allocation11_spill]]  ;;  %s2613_s16 = smov %s2178_s17 }
 0x18f   : > { %s2614_s17 = smov %s2321_s22  ;;  %s2616_s19 = smov %s2194_s21 }
 0x190   : > { %s2618_s21 = smov %s2625_s9 }
 0x193   : > { %s18_s28 = sadd.s32 1, %s2610_s18   ;;  %s2615_s18 = smov %s2190_s20 }
 0x194   : > { %p15_p8 = scmp.ge.s32.totalorder %s18_s28, 10   ;;  %s2617_s20 = smov %s2611_s6 }
 0x195   : > { %s2619_s22 = smov %s18_s28 }
 0x196   :  { %17 = sbr.rel (!%p15_p8) target bundleno = 9 (0x9), region = 92 }
 0x19b   :  { %1253 = vsyncpa [#allocation5], 1 }
 0x19c   :  { %1255 = vsyncpa [#allocation5 + $0x1], 1 }
 0x19d   :  { %1256 = vsyncpa [#allocation6], 1 }
 0x19e   :  { %1258 = vsyncpa [#allocation6 + $0x1], 1 }

// kernel: rgcn_forward.7
= control target key start
LH: loop header
LB: loop body
LE: loop exit
PB: predicated region body
PF: predicated region fallthrough
CT: control target
= control target key end

     0   :  { %9 = vsyncpa [#allocation5], 0  ;;  %s2134_s15 = smov 0   ;;  %s2136_s16 = smov 0   ;;  %s2436_s0 = inlined_call_operand.vmem [shape: f32[4,2], index: 0, kind: input, shape index: {}]   ;;  %s2437_s1 = inlined_call_operand.vmem [shape: bf16[4,256,256], index: 1, kind: input, shape index: {}]   ;;  %s2438_s2 = inlined_call_operand.vmem [shape: bf16[3,256,128], index: 2, kind: input, shape index: {}]   ;;  %s2439_s3 = inlined_call_operand.vmem [shape: f32[1,128], index: 3, kind: input, shape index: {}]   ;;  %s2440_s4 = inlined_call_operand.vmem [shape: bf16[256,128], index: 4, kind: output, shape index: {}]  }
   0x1   :  { %s2138_s17 = smov 0   ;;  %s2140_s18 = smov 0  }
   0x2   :  { %s2142_s19 = smov 0  }
   0x3 LB: > { %s1338_s20 = sadd.s32 4294967295, %s2106_s19   ;;  %s30_s21 = sadd.s32 1, %s2098_s17  ;;  %s2106_s19 = sphi %s2142_s19, %s15_s19   ;;  %s2102_s18 = sphi %s2140_s18, %s2446_s18   ;;  %s2098_s17 = sphi %s2138_s17, %s2445_s17   ;;  %s2094_s16 = sphi %s2136_s16, %s2444_s16   ;;  %s2090_s15 = sphi %s2134_s15, %s2443_s15  }
   0x4   : > { %p32_p0 = scmp.ge.s32.totalorder %s30_s21, 4  ;;  %s34_s22 = sadd.s32 1, %s2102_s18 }
   0x5   : > { %p1340_p1 = scmp.ge.s32.totalorder %s2106_s19, 1  ;;  %p158_p2 = scmp.lt.s32.totalorder %s2106_s19, 9 }
   0x6   : > { %s2448_s21 = smov (%p32_p0, %s30_s21), 0  ;;  %s2450_s22 = smov (!%p32_p0, %s34_s22), %s2102_s18 }
   0x7   : > { %p2167_p3 = pnand %p1340_p1, %p158_p2  ;;  %p36_p4 = scmp.ge.s32.totalorder %s2450_s22, 2 }
   0x8   : > { %p2171_p5 = scmp.eq.s32.totalorder %s1338_s20, 0  ;;  %s171_s27 = sshll.u32 %s2436_s0, 4  ;;  %s172_s27 = int_to_ptr.vmem [resolvable:$true] %s171_s27 }
   0x9   : > { %p1962_p6 = pneg %p2167_p3  ;;  %s2452_s22 = smov (%p36_p4, %s2450_s22), 0 }
   0xa   : > { %s2049_s28 = scalar_lea.vmem %s172_s27, 64  ;;  %p2057_p12 = scmp.lt.s32.totalorder %s172_s27, %s172_s27 }
   0xb   : > { %p1963_p7 = pnand %p2171_p5, %p1962_p6  ;;  %p2050_p8 = scmp.ne.s32.totalorder %s172_s27, %s2049_s28 }
   0xc   : > { %p2058_p13 = scmp.lt.s32.totalorder %s2049_s28, %s2049_s28 }
   0xd   : > { %p2051_p9 = pneg %p1963_p7 }
   0xe   : > { %p2059_p0 = por %p2058_p13, %p2057_p12 }
   0xf   : > { %p2052_p10 = pnand %p2051_p9, %p2050_p8 }
  0x11   : > { %p2053_p11 = pneg %p2052_p10 }
  0x13   : > { %p2060_p1 = pnand %p2059_p0, %p2053_p11 }
  0x15   : > { %2063 = shalt.err (!%p2060_p1)
}
  0x16   : > { %s2108_s29 = smov [#allocation4]   ;;  %209 = sbr.rel (%p2167_p3) target bundleno = 356 (0x164), region = 36 }
  0x17   : > { %1965 = dma.vmem_to_smem (!%p1963_p7), %s172_s27, 64, %s2108_s29, [#allocation5]  }
  0x1b   : > { %2085 = dma.done.wait (%p2171_p5), [#allocation5], 64  }
  0x1c   : > { %2087 = vsyncadd (%p2171_p5), [#allocation5], 4294967232 }
  0x1d   : > { %215 = sfence }
  0x1e   : > { %s1345_s30 = sshll.u32 %s2094_s16, 4  ;;  %p247_p2 = scmp.lt.s32.totalorder %s2090_s15, 3 }
  0x1f   : > { %p249_p4 = scmp.lt.s32.totalorder %s1345_s30, 31  ;;  %p268_p6 = scmp.eq.s32.totalorder %s2090_s15, 0 }
  0x20   : > { %s248_s5 = scalar_select %p247_p2, %s2090_s15, 3  ;;  %v1370_v0 = vld [vmem:[%s2439_s3] ss:$0 sm:$0xff] (%p268_p6) }
  0x21   : > { %s2454_s30 = smov (!%p249_p4, %s1345_s30), 31  ;;  %273 = sbr.rel (!%p268_p6) target bundleno = 54 (0x36), region = 44 }
  0x22   : > { %s1347_s6 = sshll.u32 %s248_s5, 6  ;;  %s1346_s7 = sshll.u32 %s2454_s30, 1 }
  0x23   : > { %s1350_s8 = sshll.u32 %s2454_s30, 2  ;;  %s256_s9 = sadd.s32 %s1347_s6, %s1346_s7 }
  0x24   : > { %s2197_s12 = scalar_lea.vmem %s2440_s4, %s1350_s8  ;;  %s1348_s13 = sshll.u32 %s256_s9, 2 }
  0x25   : > { %s2202_s23 = scalar_lea.vmem %s2437_s1, %s1348_s13  ;;  %s1352_s24 = sshll.u32 (%p268_p6), %s2094_s16, 7 }
  0x26   : > { %s275_s25 = sshra.s32 %s1352_s24, 3 }
  0x27   : > { %s1353_s26 = sshll.u32 %s275_s25, 2 }
  0x28   : > { %s1283_s29 = scalar_lea.vmem %s2438_s2, %s1353_s26 }
  0x29   : > { %v1817_v1 = vld [vmem:[%s1283_s29 + $0x100] sm:$0xff]   ;;  %v1818_v2 = vld [vmem:[%s1283_s29 + $0x108] sm:$0xff]   ;;  %v1819_v3 = vld [vmem:[%s1283_s29 + $0x110] sm:$0xff]  }
  0x2a   : > { %v1539_v4 = vunpack.c.l.bf16 %v1817_v1  ;;  %v1540_v5 = vunpack.c.h.bf16 %v1817_v1  ;;  %v1543_v6 = vunpack.c.l.bf16 %v1818_v2  ;;  %v1544_v7 = vunpack.c.h.bf16 %v1818_v2  ;;  %v1820_v8 = vld [vmem:[%s1283_s29 + $0x118] sm:$0xff]   ;;  %v1821_v13 = vld [vmem:[%s1283_s29 + $0x120] sm:$0xff]   ;;  %v1822_v14 = vld [vmem:[%s1283_s29 + $0x128] sm:$0xff]  }
  0x2b   : > { %v1547_v9 = vunpack.c.l.bf16 %v1819_v3  ;;  %v1548_v10 = vunpack.c.h.bf16 %v1819_v3  ;;  %v1551_v11 = vunpack.c.l.bf16 %v1820_v8  ;;  %v1552_v12 = vunpack.c.h.bf16 %v1820_v8  ;;  %v1823_v19 = vld [vmem:[%s1283_s29 + $0x130] sm:$0xff]   ;;  %v1824_v20 = vld [vmem:[%s1283_s29 + $0x138] sm:$0xff]  }
  0x2c   : > { %v319_v15 = vadd.f32 %v1539_v4, %v1370_v0  ;;  %v320_v16 = vadd.f32 %v1540_v5, %v1370_v0  ;;  %v321_v17 = vadd.f32 %v1543_v6, %v1370_v0  ;;  %v322_v18 = vadd.f32 %v1544_v7, %v1370_v0 }
  0x2d   : > { %v323_v21 = vadd.f32 %v1547_v9, %v1370_v0  ;;  %v324_v22 = vadd.f32 %v1548_v10, %v1370_v0  ;;  %v325_v23 = vadd.f32 %v1551_v11, %v1370_v0  ;;  %v326_v24 = vadd.f32 %v1552_v12, %v1370_v0 }
  0x2e   : > { %335 = vst [vmem:[#allocation2 + $0x30] sm:$0xff] %v319_v15  ;;  %336 = vst [vmem:[#allocation2] sm:$0xff] %v320_v16  ;;  %v1555_v25 = vunpack.c.l.bf16 %v1821_v13  ;;  %v1556_v26 = vunpack.c.h.bf16 %v1821_v13  ;;  %v1559_v27 = vunpack.c.l.bf16 %v1822_v14  ;;  %v1560_v28 = vunpack.c.h.bf16 %v1822_v14 }
  0x2f   : > { %337 = vst [vmem:[#allocation2 + $0x58] sm:$0xff] %v321_v17  ;;  %338 = vst [vmem:[#allocation2 + $0x18] sm:$0xff] %v322_v18  ;;  %v1563_v29 = vunpack.c.l.bf16 %v1823_v19  ;;  %v1564_v30 = vunpack.c.h.bf16 %v1823_v19  ;;  %v1567_v31 = vunpack.c.l.bf16 %v1824_v20  ;;  %v1568_v32 = vunpack.c.h.bf16 %v1824_v20 }
  0x30   : > { %339 = vst [vmem:[#allocation2 + $0x50] sm:$0xff] %v323_v21  ;;  %340 = vst [vmem:[#allocation2 + $0x68] sm:$0xff] %v324_v22  ;;  %v327_v33 = vadd.f32 %v1555_v25, %v1370_v0  ;;  %v328_v34 = vadd.f32 %v1556_v26, %v1370_v0  ;;  %v329_v35 = vadd.f32 %v1559_v27, %v1370_v0 }
  0x31   : > { %341 = vst [vmem:[#allocation2 + $0x8] sm:$0xff] %v325_v23  ;;  %342 = vst [vmem:[#allocation2 + $0x48] sm:$0xff] %v326_v24  ;;  %v330_v36 = vadd.f32 %v1560_v28, %v1370_v0  ;;  %v331_v37 = vadd.f32 %v1563_v29, %v1370_v0  ;;  %v332_v38 = vadd.f32 %v1564_v30, %v1370_v0 }
  0x32   : > { %v333_v39 = vadd.f32 %v1567_v31, %v1370_v0  ;;  %v334_v40 = vadd.f32 %v1568_v32, %v1370_v0  ;;  %343 = vst [vmem:[#allocation2 + $0x40] sm:$0xff] %v327_v33  ;;  %344 = vst [vmem:[#allocation2 + $0x20] sm:$0xff] %v328_v34 }
  0x33   : > { %345 = vst [vmem:[#allocation2 + $0x10] sm:$0xff] %v329_v35  ;;  %346 = vst [vmem:[#allocation2 + $0x38] sm:$0xff] %v330_v36 }
  0x34   : > { %347 = vst [vmem:[#allocation2 + $0x60] sm:$0xff] %v331_v37  ;;  %348 = vst [vmem:[#allocation2 + $0x70] sm:$0xff] %v332_v38 }
  0x35   : > { %349 = vst [vmem:[#allocation2 + $0x78] sm:$0xff] %v333_v39  ;;  %350 = vst [vmem:[#allocation2 + $0x28] sm:$0xff] %v334_v40 }
  0x36 PF: > { %s1371_s16 = sshll.u32 %s2090_s15, 7  ;;  %v1839_v41 = vld [vmem:[%s2438_s2 + $0x78] sm:$0xff]   ;;  %v1838_v49 = vld [vmem:[%s2438_s2 + $0x70] sm:$0xff]   ;;  %v1837_v57 = vld [vmem:[%s2438_s2 + $0x68] sm:$0xff]   ;;  %p1118_p3 = scmp.eq.s32.totalorder %s2090_s15, 3 }
  0x37   : > { %v1855_v42 = vld [vmem:[%s2438_s2 + $0xf8] sm:$0xff]   ;;  %s2221_s13 = sld [smem:[#allocation4 + %s1371_s16]]  ;;  %v1631_v44 = vunpack.c.l.bf16 %v1839_v41  ;;  %v1632_v45 = vunpack.c.h.bf16 %v1839_v41  ;;  %s455_s14 = sadd.s32 1, %s1371_s16  ;;  %v1854_v50 = vld [vmem:[%s2438_s2 + $0xf0] sm:$0xff]   ;;  %v1627_v58 = vunpack.c.l.bf16 %v1838_v49  ;;  %v1628_v59 = vunpack.c.h.bf16 %v1838_v49  ;;  %v1853_v62 = vld [vmem:[%s2438_s2 + $0xe8] sm:$0xff]  }
  0x38   : > { %v1831_v43 = vld [vmem:[%s2438_s2 + $0x38] sm:$0xff]   ;;  %v1695_v46 = vunpack.c.l.bf16 %v1855_v42  ;;  %v1696_v47 = vunpack.c.h.bf16 %v1855_v42  ;;  %s2232_s29 = sld [smem:[#allocation4 + %s455_s14]]  ;;  %v1830_v55 = vld [vmem:[%s2438_s2 + $0x30] sm:$0xff]   ;;  %v1691_v60 = vunpack.c.l.bf16 %v1854_v50  ;;  %v1692_v61 = vunpack.c.h.bf16 %v1854_v50  ;;  %v1829_v63 = vld [vmem:[%s2438_s2 + $0x28] sm:$0xff]  }
  0x39   : > { %v1847_v48 = vld [vmem:[%s2438_s2 + $0xb8] sm:$0xff]   ;;  %v1599_v51 = vunpack.c.l.bf16 %v1831_v43  ;;  %v1600_v52 = vunpack.c.h.bf16 %v1831_v43  ;;  %v1846_v56 = vld [vmem:[%s2438_s2 + $0xb0] sm:$0xff]   ;;  %v2252_v0 = vld [vmem:[%s2438_s2 + $0xa8] sm:$0xff]   ;;  %v1595_v1 = vunpack.c.l.bf16 %v1830_v55  ;;  %v1596_v2 = vunpack.c.h.bf16 %v1830_v55 }
  0x3a   : > { %v1663_v53 = vunpack.c.l.bf16 %v1847_v48  ;;  %v1664_v54 = vunpack.c.h.bf16 %v1847_v48  ;;  %v1659_v3 = vunpack.c.l.bf16 %v1846_v56  ;;  %v1660_v4 = vunpack.c.h.bf16 %v1846_v56  ;;  %v2257_v5 = vld [vmem:[%s2438_s2 + $0x60] sm:$0xff]  }
  0x3b   : > { %v2262_v6 = vld [vmem:[%s2438_s2 + $0xe0] sm:$0xff]   ;;  %v1623_v7 = vunpack.c.l.bf16 %v1837_v57  ;;  %v1624_v8 = vunpack.c.h.bf16 %v1837_v57  ;;  %v1687_v9 = vunpack.c.l.bf16 %v1853_v62  ;;  %v1688_v10 = vunpack.c.h.bf16 %v1853_v62 }
  0x3c   : > { %v1591_v11 = vunpack.c.l.bf16 %v1829_v63  ;;  %v1592_v12 = vunpack.c.h.bf16 %v1829_v63  ;;  %v1655_v13 = vunpack.c.l.bf16 %v2252_v0  ;;  %v1656_v14 = vunpack.c.h.bf16 %v2252_v0  ;;  %v2027_v35 = vld [vmem:[%s2202_s23 + $0x4] ss:$8 sps:$4 sm:$0xff]  }
  0x3d   : > { %v2267_v15 = vstv %s2221_s13  ;;  %v1619_v16 = vunpack.c.l.bf16 %v2257_v5  ;;  %v1620_v17 = vunpack.c.h.bf16 %v2257_v5  ;;  %v1683_v18 = vunpack.c.l.bf16 %v2262_v6  ;;  %1021 = vmatprep.mubr.bf16.mxu0 %v2027_v35  ;;  %v1828_v57 = vld [vmem:[%s2438_s2 + $0x20] sm:$0xff]  }
  0x3e   : > { %v453_v19 = vmul.f32 %v1631_v44, %v2267_v15  ;;  %v454_v20 = vmul.f32 %v1632_v45, %v2267_v15  ;;  %v2275_v21 = vstv %s2232_s29  ;;  %v437_v22 = vmul.f32 %v1599_v51, %v2267_v15  ;;  %v2030_v44 = vld [vmem:[%s2202_s23 + $0x44] ss:$8 sps:$4 sm:$0xff]  }
  0x3f   : > { %v555_v23 = vmul.f32 %v1695_v46, %v2275_v21  ;;  %v556_v24 = vmul.f32 %v1696_v47, %v2275_v21  ;;  %v438_v25 = vmul.f32 %v1600_v52, %v2267_v15  ;;  %v539_v26 = vmul.f32 %v1663_v53, %v2275_v21  ;;  %1053 = vmatprep.mubr.bf16.mxu1 %v2030_v44  ;;  %v1844_v62 = vld [vmem:[%s2438_s2 + $0xa0] sm:$0xff]  }
  0x40   : > { %v540_v27 = vmul.f32 %v1664_v54, %v2275_v21  ;;  %v451_v28 = vmul.f32 %v1627_v58, %v2267_v15  ;;  %v452_v29 = vmul.f32 %v1628_v59, %v2267_v15  ;;  %v553_v30 = vmul.f32 %v1691_v60, %v2275_v21 }
  0x41   : > { %v587_v31 = vadd.f32 %v555_v23, %v453_v19  ;;  %v588_v32 = vadd.f32 %v556_v24, %v454_v20  ;;  %v571_v33 = vadd.f32 %v539_v26, %v437_v22  ;;  %v554_v34 = vmul.f32 %v1692_v61, %v2275_v21  ;;  %v1843_v19 = vld [vmem:[%s2438_s2 + $0x98] sm:$0xff]   ;;  %v1834_v26 = vld [vmem:[%s2438_s2 + $0x50] sm:$0xff]  }
  0x42   : > { %v572_v36 = vadd.f32 %v540_v27, %v438_v25  ;;  %v585_v37 = vadd.f32 %v553_v30, %v451_v28  ;;  %v435_v38 = vmul.f32 %v1595_v1, %v2267_v15  ;;  %v436_v39 = vmul.f32 %v1596_v2, %v2267_v15 }
  0x43   : > { %v1775_v40 = vpack.c.bf16 %v588_v32, %v587_v31  ;;  %v586_v41 = vadd.f32 %v554_v34, %v452_v29  ;;  %v537_v42 = vmul.f32 %v1659_v3, %v2275_v21  ;;  %v538_v43 = vmul.f32 %v1660_v4, %v2275_v21  ;;  %v1835_v3 = vld [vmem:[%s2438_s2 + $0x58] sm:$0xff]  }
  0x44   : > { %v1735_v45 = vpack.c.bf16 %v572_v36, %v571_v33  ;;  %v449_v46 = vmul.f32 %v1623_v7, %v2267_v15  ;;  %v450_v47 = vmul.f32 %v1624_v8, %v2267_v15  ;;  %v551_v48 = vmul.f32 %v1687_v9, %v2275_v21 }
  0x45   : > { %1870 = vst [vmem:[#allocation3 + $0x78] sm:$0xff] %v1775_v40   ;;  %v1770_v49 = vpack.c.bf16 %v586_v41, %v585_v37  ;;  %v569_v50 = vadd.f32 %v537_v42, %v435_v38  ;;  %v570_v51 = vadd.f32 %v538_v43, %v436_v39  ;;  %v552_v52 = vmul.f32 %v1688_v10, %v2275_v21  ;;  %v1850_v41 = vld [vmem:[%s2438_s2 + $0xd0] sm:$0xff]  }
  0x46   : > { %1862 = vst [vmem:[#allocation3 + $0x38] sm:$0xff] %v1735_v45   ;;  %v583_v53 = vadd.f32 %v551_v48, %v449_v46  ;;  %v433_v54 = vmul.f32 %v1591_v11, %v2267_v15  ;;  %v434_v55 = vmul.f32 %v1592_v12, %v2267_v15  ;;  %v535_v56 = vmul.f32 %v1655_v13, %v2275_v21  ;;  %v1827_v13 = vld [vmem:[%s2438_s2 + $0x18] sm:$0xff]   ;;  %v1826_v42 = vld [vmem:[%s2438_s2 + $0x10] sm:$0xff]  }
  0x47   : > { %1869 = vst [vmem:[#allocation3 + $0x70] sm:$0xff] %v1770_v49   ;;  %v1730_v58 = vpack.c.bf16 %v570_v51, %v569_v50  ;;  %v584_v59 = vadd.f32 %v552_v52, %v450_v47  ;;  %v536_v60 = vmul.f32 %v1656_v14, %v2275_v21  ;;  %v447_v61 = vmul.f32 %v1619_v16, %v2267_v15  ;;  %v1842_v52 = vld [vmem:[%s2438_s2 + $0x90] sm:$0xff]  }
  0x48   : > { %v567_v63 = vadd.f32 %v535_v56, %v433_v54  ;;  %v448_v0 = vmul.f32 %v1620_v17, %v2267_v15  ;;  %v1684_v1 = vunpack.c.h.bf16 %v2262_v6  ;;  %v549_v2 = vmul.f32 %v1683_v18, %v2275_v21  ;;  %v1851_v6 = vld [vmem:[%s2438_s2 + $0xd8] sm:$0xff]  }
  0x49   : > { %1861 = vst [vmem:[#allocation3 + $0x30] sm:$0xff] %v1730_v58   ;;  %v1765_v4 = vpack.c.bf16 %v584_v59, %v583_v53  ;;  %v568_v5 = vadd.f32 %v536_v60, %v434_v55  ;;  %v1587_v7 = vunpack.c.l.bf16 %v1828_v57  ;;  %v1588_v8 = vunpack.c.h.bf16 %v1828_v57 }
  0x4a   : > { %v550_v9 = vmul.f32 %v1684_v1, %v2275_v21  ;;  %v581_v10 = vadd.f32 %v549_v2, %v447_v61  ;;  %v1651_v11 = vunpack.c.l.bf16 %v1844_v62  ;;  %v1652_v12 = vunpack.c.h.bf16 %v1844_v62  ;;  %v1833_v62 = vld [vmem:[%s2438_s2 + $0x48] sm:$0xff]  }
  0x4b   : > { %1868 = vst [vmem:[#allocation3 + $0x68] sm:$0xff] %v1765_v4   ;;  %v1725_v14 = vpack.c.bf16 %v568_v5, %v567_v63  ;;  %v431_v16 = vmul.f32 %v1587_v7, %v2267_v15  ;;  %v432_v17 = vmul.f32 %v1588_v8, %v2267_v15  ;;  %v1615_v18 = vunpack.c.l.bf16 %v1835_v3 }
  0x4c   : > { %v2009_v20 = vld [vmem:[#allocation3 + $0x78] sm:$0xff]   ;;  %v582_v22 = vadd.f32 %v550_v9, %v448_v0  ;;  %v533_v23 = vmul.f32 %v1651_v11, %v2275_v21  ;;  %v534_v24 = vmul.f32 %v1652_v12, %v2275_v21  ;;  %v1616_v25 = vunpack.c.h.bf16 %v1835_v3  ;;  %v1849_v9 = vld [vmem:[%s2438_s2 + $0xc8] sm:$0xff]  }
  0x4d   : > { %v2010_v27 = vld [vmem:[#allocation3 + $0x38] sm:$0xff]   ;;  %1860 = vst [vmem:[#allocation3 + $0x28] sm:$0xff] %v1725_v14   ;;  %v445_v28 = vmul.f32 %v1615_v18, %v2267_v15  ;;  %v1679_v29 = vunpack.c.l.bf16 %v1851_v6  ;;  %v1680_v30 = vunpack.c.h.bf16 %v1851_v6  ;;  %v1583_v31 = vunpack.c.l.bf16 %v1827_v13  ;;  %1878 = vmatprep.subr.bf16.mxu0 %v2009_v20  ;;  %1942 = vmatprep.subr.bf16.mxu1 %v2009_v20 }
  0x4e   : > { %v2011_v32 = vld [vmem:[#allocation3 + $0x70] sm:$0xff]   ;;  %v1760_v33 = vpack.c.bf16 %v582_v22, %v581_v10  ;;  %v565_v34 = vadd.f32 %v533_v23, %v431_v16  ;;  %v566_v35 = vadd.f32 %v534_v24, %v432_v17  ;;  %v1584_v36 = vunpack.c.h.bf16 %v1827_v13  ;;  %1879 = vmatpush3.bf16.msra.mxu0 %v2010_v27  ;;  %1950 = vmatpush3.bf16.msra.mxu1 %v2010_v27  ;;  %v1825_v10 = vld [vmem:[%s2438_s2 + $0x8] sm:$0xff]  }
  0x4f   : > { %v446_v37 = vmul.f32 %v1616_v25, %v2267_v15  ;;  %v547_v38 = vmul.f32 %v1679_v29, %v2275_v21  ;;  %v548_v39 = vmul.f32 %v1680_v30, %v2275_v21  ;;  %v1647_v40 = vunpack.c.l.bf16 %v1843_v19  ;;  %1880 = vmatprep.subr.bf16.mxu0 %v2011_v32  ;;  %1943 = vmatprep.subr.bf16.mxu1 %v2011_v32  ;;  %v1841_v25 = vld [vmem:[%s2438_s2 + $0x88] sm:$0xff]  }
  0x50   : > { %v2012_v43 = vld [vmem:[#allocation3 + $0x30] sm:$0xff]   ;;  %1867 = vst [vmem:[#allocation3 + $0x60] sm:$0xff] %v1760_v33   ;;  %v1720_v44 = vpack.c.bf16 %v566_v35, %v565_v34  ;;  %v429_v45 = vmul.f32 %v1583_v31, %v2267_v15  ;;  %v430_v46 = vmul.f32 %v1584_v36, %v2267_v15  ;;  %v1648_v47 = vunpack.c.h.bf16 %v1843_v19  ;;  %v1848_v36 = vld [vmem:[%s2438_s2 + $0xc0] sm:$0xff]  }
  0x51   : > { %v579_v48 = vadd.f32 %v547_v38, %v445_v28  ;;  %v580_v49 = vadd.f32 %v548_v39, %v446_v37  ;;  %v531_v50 = vmul.f32 %v1647_v40, %v2275_v21  ;;  %v1611_v51 = vunpack.c.l.bf16 %v1834_v26 }
  0x52   : > { %v2013_v53 = vld [vmem:[#allocation3 + $0x68] sm:$0xff]   ;;  %1859 = vst [vmem:[#allocation3 + $0x20] sm:$0xff] %v1720_v44   ;;  %v532_v54 = vmul.f32 %v1648_v47, %v2275_v21  ;;  %v1612_v55 = vunpack.c.h.bf16 %v1834_v26  ;;  %v1675_v56 = vunpack.c.l.bf16 %v1850_v41  ;;  %v1676_v57 = vunpack.c.h.bf16 %v1850_v41  ;;  %1881 = vmatpush3.bf16.msra.mxu0 %v2012_v43  ;;  %1951 = vmatpush3.bf16.msra.mxu1 %v2012_v43  ;;  %v1832_v26 = vld [vmem:[%s2438_s2 + $0x40] sm:$0xff]  }
  0x53   : > { %v1755_v58 = vpack.c.bf16 %v580_v49, %v579_v48  ;;  %v563_v59 = vadd.f32 %v531_v50, %v429_v45  ;;  %v443_v60 = vmul.f32 %v1611_v51, %v2267_v15  ;;  %v1579_v61 = vunpack.c.l.bf16 %v1826_v42  ;;  %1882 = vmatprep.subr.bf16.mxu0 %v2013_v53  ;;  %1944 = vmatprep.subr.bf16.mxu1 %v2013_v53  ;;  %v1570_v41 = vld [vmem:[%s2438_s2] sm:$0xff]  }
  0x54   : > { %v2014_v63 = vld [vmem:[#allocation3 + $0x28] sm:$0xff]   ;;  %v564_v0 = vadd.f32 %v532_v54, %v430_v46  ;;  %v444_v1 = vmul.f32 %v1612_v55, %v2267_v15  ;;  %v545_v2 = vmul.f32 %v1675_v56, %v2275_v21  ;;  %v1580_v3 = vunpack.c.h.bf16 %v1826_v42  ;;  %v1840_v51 = vld [vmem:[%s2438_s2 + $0x80] sm:$0xff]  }
  0x55   : > { %1866 = vst [vmem:[#allocation3 + $0x58] sm:$0xff] %v1755_v58   ;;  %v546_v4 = vmul.f32 %v1676_v57, %v2275_v21  ;;  %v427_v5 = vmul.f32 %v1579_v61, %v2267_v15  ;;  %v1643_v7 = vunpack.c.l.bf16 %v1842_v52  ;;  %v1644_v8 = vunpack.c.h.bf16 %v1842_v52 }
  0x56   : > { %v1715_v11 = vpack.c.bf16 %v564_v0, %v563_v59  ;;  %v577_v12 = vadd.f32 %v545_v2, %v443_v60  ;;  %v428_v6 = vmul.f32 %v1580_v3, %v2267_v15  ;;  %v1607_v13 = vunpack.c.l.bf16 %v1833_v62  ;;  %1883 = vmatpush3.bf16.msra.mxu0 %v2014_v63  ;;  %1952 = vmatpush3.bf16.msra.mxu1 %v2014_v63 }
  0x57   : > { %v2015_v14 = vld [vmem:[#allocation3 + $0x60] sm:$0xff]   ;;  %v578_v16 = vadd.f32 %v546_v4, %v444_v1  ;;  %v529_v17 = vmul.f32 %v1643_v7, %v2275_v21  ;;  %v530_v18 = vmul.f32 %v1644_v8, %v2275_v21  ;;  %v1608_v19 = vunpack.c.h.bf16 %v1833_v62 }
  0x58   : > { %1858 = vst [vmem:[#allocation3 + $0x18] sm:$0xff] %v1715_v11   ;;  %v441_v20 = vmul.f32 %v1607_v13, %v2267_v15  ;;  %v1671_v22 = vunpack.c.l.bf16 %v1849_v9  ;;  %v1672_v23 = vunpack.c.h.bf16 %v1849_v9  ;;  %v1575_v24 = vunpack.c.l.bf16 %v1825_v10  ;;  %1884 = vmatprep.subr.bf16.mxu0 %v2015_v14  ;;  %1945 = vmatprep.subr.bf16.mxu1 %v2015_v14 }
  0x59   : > { %v2016_v27 = vld [vmem:[#allocation3 + $0x20] sm:$0xff]   ;;  %v1750_v28 = vpack.c.bf16 %v578_v16, %v577_v12  ;;  %v561_v29 = vadd.f32 %v529_v17, %v427_v5  ;;  %v562_v30 = vadd.f32 %v530_v18, %v428_v6  ;;  %v1576_v31 = vunpack.c.h.bf16 %v1825_v10  ;;  %v2031_v18 = vld [vmem:[%s2202_s23 + $0x14] ss:$8 sps:$4 sm:$0xff]  }
  0x5a   : > { %v442_v32 = vmul.f32 %v1608_v19, %v2267_v15  ;;  %v543_v33 = vmul.f32 %v1671_v22, %v2275_v21  ;;  %v544_v34 = vmul.f32 %v1672_v23, %v2275_v21  ;;  %v425_v35 = vmul.f32 %v1575_v24, %v2267_v15  ;;  %1885 = vmatpush3.bf16.msra.mxu0 %v2016_v27  ;;  %v2025_v16 = vld [vmem:[%s2202_s23] ss:$8 sps:$4 sm:$0xff]   ;;  %v2033_v19 = vld [vmem:[%s2202_s23 + $0x54] ss:$8 sps:$4 sm:$0xff]   ;;  %v2036_v22 = vld [vmem:[%s2202_s23 + $0x50] ss:$8 sps:$4 sm:$0xff]  }
  0x5b   : > { %1953 = vmatpush3.bf16.msra.mxu1 %v2016_v27  ;;  %1865 = vst [vmem:[#allocation3 + $0x50] sm:$0xff] %v1750_v28   ;;  %v1710_v37 = vpack.c.bf16 %v562_v30, %v561_v29  ;;  %v426_v38 = vmul.f32 %v1576_v31, %v2267_v15  ;;  %v1639_v39 = vunpack.c.l.bf16 %v1841_v25  ;;  %v1640_v40 = vunpack.c.h.bf16 %v1841_v25  ;;  %v2028_v17 = vld [vmem:[%s2202_s23 + $0x40] ss:$8 sps:$4 sm:$0xff]   ;;  %v2037_v23 = vld [vmem:[%s2202_s23 + $0x24] ss:$8 sps:$4 sm:$0xff]  }
  0x5c   : > { %v2017_v42 = vld [vmem:[#allocation3 + $0x58] sm:$0xff]   ;;  %v575_v43 = vadd.f32 %v543_v33, %v441_v20  ;;  %v576_v44 = vadd.f32 %v544_v34, %v442_v32  ;;  %v1603_v45 = vunpack.c.l.bf16 %v1832_v26  ;;  %v1604_v46 = vunpack.c.h.bf16 %v1832_v26  ;;  %v2039_v24 = vld [vmem:[%s2202_s23 + $0x64] ss:$8 sps:$4 sm:$0xff]   ;;  %v2041_v25 = vld [vmem:[%s2202_s23 + $0x20] ss:$8 sps:$4 sm:$0xff]  }
  0x5d   : > { %1857 = vst [vmem:[#allocation3 + $0x10] sm:$0xff] %v1710_v37   ;;  %v527_v47 = vmul.f32 %v1639_v39, %v2275_v21  ;;  %v528_v48 = vmul.f32 %v1640_v40, %v2275_v21  ;;  %v1667_v49 = vunpack.c.l.bf16 %v1848_v36  ;;  %v1668_v50 = vunpack.c.h.bf16 %v1848_v36  ;;  %1886 = vmatprep.subr.bf16.mxu0 %v2017_v42  ;;  %1946 = vmatprep.subr.bf16.mxu1 %v2017_v42  ;;  %v2035_v20 = vld [vmem:[%s2202_s23 + $0x10] ss:$8 sps:$4 sm:$0xff]   ;;  %v2042_v26 = vld [vmem:[%s2202_s23 + $0x60] ss:$8 sps:$4 sm:$0xff]  }
  0x5e   : > { %v1745_v52 = vpack.c.bf16 %v576_v44, %v575_v43  ;;  %v439_v53 = vmul.f32 %v1603_v45, %v2267_v15  ;;  %v440_v54 = vmul.f32 %v1604_v46, %v2267_v15  ;;  %v1571_v55 = vunpack.c.l.bf16 %v1570_v41  ;;  %v2043_v27 = vld [vmem:[%s2202_s23 + $0x34] ss:$8 sps:$4 sm:$0xff]   ;;  %v2047_v29 = vld [vmem:[%s2202_s23 + $0x30] ss:$8 sps:$4 sm:$0xff]   ;;  %v750_v43 = vld [vmem:[#allocation2] sm:$0xff] }
  0x5f   : > { %v2018_v56 = vld [vmem:[#allocation3 + $0x18] sm:$0xff]   ;;  %v559_v57 = vadd.f32 %v527_v47, %v425_v35  ;;  %v560_v58 = vadd.f32 %v528_v48, %v426_v38  ;;  %v541_v59 = vmul.f32 %v1667_v49, %v2275_v21  ;;  %v542_v60 = vmul.f32 %v1668_v50, %v2275_v21  ;;  %v749_v33 = vld [vmem:[#allocation2 + $0x30] sm:$0xff]  ;;  %v757_v35 = vld [vmem:[#allocation2 + $0x40] sm:$0xff] }
  0x60   : > { %1864 = vst [vmem:[#allocation3 + $0x48] sm:$0xff] %v1745_v52   ;;  %v1572_v61 = vunpack.c.h.bf16 %v1570_v41  ;;  %v423_v62 = vmul.f32 %v1571_v55, %v2267_v15  ;;  %v1635_v63 = vunpack.c.l.bf16 %v1840_v51  ;;  %v1636_v0 = vunpack.c.h.bf16 %v1840_v51  ;;  %1887 = vmatpush3.bf16.msra.mxu0 %v2018_v56  ;;  %1954 = vmatpush3.bf16.msra.mxu1 %v2018_v56  ;;  %v2045_v28 = vld [vmem:[%s2202_s23 + $0x74] ss:$8 sps:$4 sm:$0xff]   ;;  %v2048_v30 = vld [vmem:[%s2202_s23 + $0x70] ss:$8 sps:$4 sm:$0xff]   ;;  %v758_v45 = vld [vmem:[#allocation2 + $0x20] sm:$0xff] }
  0x61   : > { %v1705_v1 = vpack.c.bf16 %v560_v58, %v559_v57  ;;  %v573_v2 = vadd.f32 %v541_v59, %v439_v53  ;;  %v574_v3 = vadd.f32 %v542_v60, %v440_v54  ;;  %v751_v53 = vld [vmem:[#allocation2 + $0x58] sm:$0xff]  ;;  %v759_v55 = vld [vmem:[#allocation2 + $0x10] sm:$0xff] }
  0x62   : > { %v2019_v4 = vld [vmem:[#allocation3 + $0x50] sm:$0xff]   ;;  %v424_v5 = vmul.f32 %v1572_v61, %v2267_v15  ;;  %v525_v7 = vmul.f32 %v1635_v63, %v2275_v21  ;;  %v526_v8 = vmul.f32 %v1636_v0, %v2275_v21  ;;  %v752_v63 = vld [vmem:[#allocation2 + $0x18] sm:$0xff] }
  0x63   : > { %1856 = vst [vmem:[#allocation3 + $0x8] sm:$0xff] %v1705_v1   ;;  %v1740_v9 = vpack.c.bf16 %v574_v3, %v573_v2  ;;  %1888 = vmatprep.subr.bf16.mxu0 %v2019_v4  ;;  %1947 = vmatprep.subr.bf16.mxu1 %v2019_v4  ;;  %v760_v1 = vld [vmem:[#allocation2 + $0x38] sm:$0xff] }
  0x64   : > { %v2020_v10 = vld [vmem:[#allocation3 + $0x10] sm:$0xff]   ;;  %v557_v11 = vadd.f32 %v525_v7, %v423_v62  ;;  %v558_v12 = vadd.f32 %v526_v8, %v424_v5 }
  0x65   : > { %1863 = vst [vmem:[#allocation3 + $0x40] sm:$0xff] %v1740_v9   ;;  %1889 = vmatpush3.bf16.msra.mxu0 %v2020_v10  ;;  %1955 = vmatpush3.bf16.msra.mxu1 %v2020_v10  ;;  %v753_v10 = vld [vmem:[#allocation2 + $0x50] sm:$0xff] }
  0x66   : > { %v1700_v6 = vpack.c.bf16 %v558_v12, %v557_v11  ;;  %v761_v12 = vld [vmem:[#allocation2 + $0x60] sm:$0xff] }
  0x67   : > { %v2021_v13 = vld [vmem:[#allocation3 + $0x48] sm:$0xff]  }
  0x68   : > { %1701 = vst [vmem:[#allocation3] sm:$0xff] %v1700_v6   ;;  %1890 = vmatprep.subr.bf16.mxu0 %v2021_v13  ;;  %1948 = vmatprep.subr.bf16.mxu1 %v2021_v13 }
  0x6a   : > { %v2022_v15 = vld [vmem:[#allocation3 + $0x8] sm:$0xff]  }
  0x6b   : > { %1891 = vmatpush3.bf16.msra.mxu0 %v2022_v15  ;;  %1956 = vmatpush3.bf16.msra.mxu1 %v2022_v15 }
  0x6c   : > { %v2023_v21 = vld [vmem:[#allocation3 + $0x40] sm:$0xff]  }
  0x6d   : > { %1892 = vmatprep.subr.bf16.mxu0 %v2023_v21  ;;  %1949 = vmatprep.subr.bf16.mxu1 %v2023_v21 }
  0x6f   : > { %v2024_v14 = vld [vmem:[#allocation3] sm:$0xff]  }
  0x70   : > { %1893 = vmatpush3.bf16.msra.mxu0 %v2024_v14  ;;  %1957 = vmatpush3.bf16.msra.mxu1 %v2024_v14 }
  0x73   : > { %1022 = vmatmul.mubr.bf16.vlgmr.msra.gmra.mxu0 %v2025_v16  ;;  %1054 = vmatmul.mubr.bf16.vlgmr.msra.gmra.mxu1 %v2028_v17 }
  0x74   : > { %1029 = vmatprep.mubr.bf16.mxu0 %v2031_v18  ;;  %1061 = vmatprep.mubr.bf16.mxu1 %v2033_v19  ;;  %v754_v18 = vld [vmem:[#allocation2 + $0x68] sm:$0xff] }
  0x7b   : > { %1030 = vmatmul.mubr.bf16.gmra.mxu0 %v2035_v20  ;;  %1062 = vmatmul.mubr.bf16.gmra.mxu1 %v2036_v22  ;;  %v762_v20 = vld [vmem:[#allocation2 + $0x70] sm:$0xff] }
  0x7c   : > { %1037 = vmatprep.mubr.bf16.mxu0 %v2037_v23  ;;  %1069 = vmatprep.mubr.bf16.mxu1 %v2039_v24 }
  0x83   : > { %1038 = vmatmul.mubr.bf16.gmra.mxu0 %v2041_v25  ;;  %1070 = vmatmul.mubr.bf16.gmra.mxu1 %v2042_v26 }
  0x84   : > { %1045 = vmatprep.mubr.bf16.mxu0 %v2043_v27  ;;  %1077 = vmatprep.mubr.bf16.mxu1 %v2045_v28 }
  0x8b   : > { %1046 = vmatmul.mubr.bf16.gmra.mxu0 %v2047_v29  ;;  %1078 = vmatmul.mubr.bf16.gmra.mxu1 %v2048_v30  ;;  %v755_v29 = vld [vmem:[#allocation2 + $0x8] sm:$0xff] }
 0x133   : > { %v1894_v31 = vpop.f32.mrf.mxu0  ;;  %v1918_v32 = vpop.f32.mrf.mxu1 }
 0x135   : > { %v1895_v34 = vpop.f32.mrf.mxu0  ;;  %v1919_v36 = vpop.f32.mrf.mxu1 }
 0x136   : > { %v1896_v37 = vadd.f32 %v1895_v34, %v1894_v31  ;;  %v1920_v38 = vadd.f32 %v1919_v36, %v1918_v32  ;;  %v763_v31 = vld [vmem:[#allocation2 + $0x78] sm:$0xff] }
 0x137   : > { %v1897_v39 = vpop.f32.mrf.mxu0  ;;  %v1921_v40 = vpop.f32.mrf.mxu1 }
 0x138   : > { %v1086_v41 = vadd.f32 %v1896_v37, %v749_v33  ;;  %v1094_v42 = vadd.f32 %v1920_v38, %v757_v35 }
 0x139   : > { %v1898_v44 = vpop.f32.mrf.mxu0  ;;  %v1922_v46 = vpop.f32.mrf.mxu1 }
 0x13a   : > { %1102 = vst [vmem:[#allocation2 + $0x30] sm:$0xff] %v1086_v41  ;;  %1110 = vst [vmem:[#allocation2 + $0x40] sm:$0xff] %v1094_v42  ;;  %v1899_v47 = vadd.f32 %v1898_v44, %v1897_v39  ;;  %v1923_v48 = vadd.f32 %v1922_v46, %v1921_v40  ;;  %v756_v39 = vld [vmem:[#allocation2 + $0x48] sm:$0xff] }
 0x13b   : > { %v1900_v49 = vpop.f32.mrf.mxu0  ;;  %v1924_v50 = vpop.f32.mrf.mxu1  ;;  %v764_v41 = vld [vmem:[#allocation2 + $0x28] sm:$0xff] }
 0x13c   : > { %v1087_v51 = vadd.f32 %v1899_v47, %v750_v43  ;;  %v1095_v52 = vadd.f32 %v1923_v48, %v758_v45 }
 0x13d   : > { %v1901_v54 = vpop.f32.mrf.mxu0  ;;  %v1925_v56 = vpop.f32.mrf.mxu1 }
 0x13e   : > { %1103 = vst [vmem:[#allocation2] sm:$0xff] %v1087_v51  ;;  %1111 = vst [vmem:[#allocation2 + $0x20] sm:$0xff] %v1095_v52  ;;  %v1902_v57 = vadd.f32 %v1901_v54, %v1900_v49  ;;  %v1926_v58 = vadd.f32 %v1925_v56, %v1924_v50 }
 0x13f   : > { %v1903_v59 = vpop.f32.mrf.mxu0  ;;  %v1927_v60 = vpop.f32.mrf.mxu1 }
 0x140   : > { %v1088_v61 = vadd.f32 %v1902_v57, %v751_v53  ;;  %v1096_v62 = vadd.f32 %v1926_v58, %v759_v55 }
 0x141   : > { %v1904_v0 = vpop.f32.mrf.mxu0  ;;  %v1928_v2 = vpop.f32.mrf.mxu1  ;;  %v1123_v47 = vld [vmem:[#allocation2 + $0x30] sm:$0xff] (%p1118_p3) }
 0x142   : > { %1104 = vst [vmem:[#allocation2 + $0x58] sm:$0xff] %v1088_v61  ;;  %1112 = vst [vmem:[#allocation2 + $0x10] sm:$0xff] %v1096_v62  ;;  %v1905_v3 = vadd.f32 %v1904_v0, %v1903_v59  ;;  %v1929_v4 = vadd.f32 %v1928_v2, %v1927_v60  ;;  %v1139_v50 = vmax.f32 (%p1118_p3), %v1123_v47, 0.0  ;;  %v1131_v61 = vld [vmem:[#allocation2 + $0x40] sm:$0xff] (%p1118_p3) }
 0x143   : > { %v1906_v5 = vpop.f32.mrf.mxu0  ;;  %v1930_v7 = vpop.f32.mrf.mxu1  ;;  %v1147_v2 = vmax.f32 (%p1118_p3), %v1131_v61, 0.0 }
 0x144   : > { %v1089_v8 = vadd.f32 %v1905_v3, %v752_v63  ;;  %v1097_v9 = vadd.f32 %v1929_v4, %v760_v1 }
 0x145   : > { %v1907_v11 = vpop.f32.mrf.mxu0  ;;  %v1931_v6 = vpop.f32.mrf.mxu1  ;;  %v1124_v48 = vld [vmem:[#allocation2] sm:$0xff] (%p1118_p3) }
 0x146   : > { %1105 = vst [vmem:[#allocation2 + $0x18] sm:$0xff] %v1089_v8  ;;  %1113 = vst [vmem:[#allocation2 + $0x38] sm:$0xff] %v1097_v9  ;;  %v1908_v13 = vadd.f32 %v1907_v11, %v1906_v5  ;;  %v1932_v15 = vadd.f32 %v1931_v6, %v1930_v7  ;;  %v1140_v51 = vmax.f32 (%p1118_p3), %v1124_v48, 0.0  ;;  %v1132_v1 = vld [vmem:[#allocation2 + $0x20] sm:$0xff] (%p1118_p3) }
 0x147   : > { %v1909_v21 = vpop.f32.mrf.mxu0  ;;  %v1933_v14 = vpop.f32.mrf.mxu1  ;;  %v1148_v8 = vmax.f32 (%p1118_p3), %v1132_v1, 0.0 }
 0x148   : > { %v1090_v16 = vadd.f32 %v1908_v13, %v753_v10  ;;  %v1098_v17 = vadd.f32 %v1932_v15, %v761_v12  ;;  %v1780_v62 = vpack.c.bf16 (%p1118_p3), %v1140_v51, %v1139_v50 }
 0x149   : > { %v1910_v19 = vpop.f32.mrf.mxu0  ;;  %v1934_v22 = vpop.f32.mrf.mxu1  ;;  %v1125_v49 = vld [vmem:[#allocation2 + $0x58] sm:$0xff] (%p1118_p3)  ;;  %v1133_v3 = vld [vmem:[#allocation2 + $0x10] sm:$0xff] (%p1118_p3) }
 0x14a   : > { %1106 = vst [vmem:[#allocation2 + $0x50] sm:$0xff] %v1090_v16  ;;  %1114 = vst [vmem:[#allocation2 + $0x60] sm:$0xff] %v1098_v17  ;;  %v1911_v23 = vadd.f32 %v1910_v19, %v1909_v21  ;;  %v1935_v24 = vadd.f32 %v1934_v22, %v1933_v14  ;;  %v1141_v53 = vmax.f32 (%p1118_p3), %v1125_v49, 0.0  ;;  %v1149_v9 = vmax.f32 (%p1118_p3), %v1133_v3, 0.0 }
 0x14b   : > { %v1912_v25 = vpop.f32.mrf.mxu0  ;;  %v1936_v26 = vpop.f32.mrf.mxu1  ;;  %1781 = vst [vmem:[%s2197_s12] sm:$0xff] (%p1118_p3), %v1780_v62   ;;  %v1800_v16 = vpack.c.bf16 (%p1118_p3), %v1148_v8, %v1147_v2 }
 0x14c   : > { %v1091_v27 = vadd.f32 %v1911_v23, %v754_v18  ;;  %v1099_v28 = vadd.f32 %v1935_v24, %v762_v20 }
 0x14d   : > { %v1913_v30 = vpop.f32.mrf.mxu0  ;;  %v1937_v32 = vpop.f32.mrf.mxu1  ;;  %v1126_v52 = vld [vmem:[#allocation2 + $0x18] sm:$0xff] (%p1118_p3)  ;;  %1874 = vst [vmem:[%s2197_s12 + $0x20] sm:$0xff] (%p1118_p3), %v1800_v16  }
 0x14e   : > { %1107 = vst [vmem:[#allocation2 + $0x68] sm:$0xff] %v1091_v27  ;;  %1115 = vst [vmem:[#allocation2 + $0x70] sm:$0xff] %v1099_v28  ;;  %v1914_v33 = vadd.f32 %v1913_v30, %v1912_v25  ;;  %v1938_v34 = vadd.f32 %v1937_v32, %v1936_v26  ;;  %v1142_v56 = vmax.f32 (%p1118_p3), %v1126_v52, 0.0  ;;  %v1134_v4 = vld [vmem:[#allocation2 + $0x38] sm:$0xff] (%p1118_p3) }
 0x14f   : > { %v1915_v35 = vpop.f32.mrf.mxu0  ;;  %v1939_v36 = vpop.f32.mrf.mxu1  ;;  %v1150_v13 = vmax.f32 (%p1118_p3), %v1134_v4, 0.0 }
 0x150   : > { %v1092_v37 = vadd.f32 %v1914_v33, %v755_v29  ;;  %v1100_v38 = vadd.f32 %v1938_v34, %v763_v31  ;;  %v1785_v5 = vpack.c.bf16 (%p1118_p3), %v1142_v56, %v1141_v53 }
 0x151   : > { %v1916_v40 = vpop.f32.mrf.mxu0  ;;  %v1940_v42 = vpop.f32.mrf.mxu1  ;;  %v1127_v54 = vld [vmem:[#allocation2 + $0x50] sm:$0xff] (%p1118_p3)  ;;  %v1135_v10 = vld [vmem:[#allocation2 + $0x60] sm:$0xff] (%p1118_p3)  ;;  %v1805_v19 = vpack.c.bf16 (%p1118_p3), %v1150_v13, %v1149_v9 }
 0x152   : > { %1108 = vst [vmem:[#allocation2 + $0x8] sm:$0xff] %v1092_v37  ;;  %1116 = vst [vmem:[#allocation2 + $0x78] sm:$0xff] %v1100_v38  ;;  %v1917_v43 = vadd.f32 %v1916_v40, %v1915_v35  ;;  %v1941_v44 = vadd.f32 %v1940_v42, %v1939_v36  ;;  %1122 = sbr.rel (!%p1118_p3) target bundleno = 356 (0x164), region = 48  ;;  %v1143_v57 = vmax.f32 (%p1118_p3), %v1127_v54, 0.0  ;;  %v1151_v15 = vmax.f32 (%p1118_p3), %v1135_v10, 0.0 }
 0x153   : > { %1871 = vst [vmem:[%s2197_s12 + $0x8] sm:$0xff] (%p1118_p3), %v1785_v5   ;;  %1875 = vst [vmem:[%s2197_s12 + $0x28] sm:$0xff] (%p1118_p3), %v1805_v19  }
 0x154   : > { %v1093_v45 = vadd.f32 %v1917_v43, %v756_v39  ;;  %v1101_v46 = vadd.f32 %v1941_v44, %v764_v41 }
 0x155   : > { %v1128_v55 = vld [vmem:[#allocation2 + $0x68] sm:$0xff] (%p1118_p3)  ;;  %v1136_v11 = vld [vmem:[#allocation2 + $0x70] sm:$0xff] (%p1118_p3) }
 0x156   : > { %1109 = vst [vmem:[#allocation2 + $0x48] sm:$0xff] %v1093_v45  ;;  %1117 = vst [vmem:[#allocation2 + $0x28] sm:$0xff] %v1101_v46  ;;  %v1144_v58 = vmax.f32 (%p1118_p3), %v1128_v55, 0.0  ;;  %v1152_v21 = vmax.f32 (%p1118_p3), %v1136_v11, 0.0 }
 0x158   : > { %v1790_v7 = vpack.c.bf16 %v1144_v58, %v1143_v57  ;;  %v1810_v20 = vpack.c.bf16 %v1152_v21, %v1151_v15 }
 0x159   : > { %v1129_v59 = vld [vmem:[#allocation2 + $0x8] sm:$0xff]  ;;  %v1137_v12 = vld [vmem:[#allocation2 + $0x78] sm:$0xff] }
 0x15a   : > { %v1145_v63 = vmax.f32 %v1129_v59, 0.0  ;;  %1872 = vst [vmem:[%s2197_s12 + $0x10] sm:$0xff] %v1790_v7   ;;  %v1153_v17 = vmax.f32 %v1137_v12, 0.0  ;;  %1876 = vst [vmem:[%s2197_s12 + $0x30] sm:$0xff] %v1810_v20  }
 0x15d   : > { %v1130_v60 = vld [vmem:[#allocation2 + $0x48] sm:$0xff] }
 0x15e   : > { %v1146_v0 = vmax.f32 %v1130_v60, 0.0  ;;  %v1138_v14 = vld [vmem:[#allocation2 + $0x28] sm:$0xff] }
 0x15f   : > { %v1154_v18 = vmax.f32 %v1138_v14, 0.0 }
 0x160   : > { %v1795_v6 = vpack.c.bf16 %v1146_v0, %v1145_v63 }
 0x161   : > { %v1815_v22 = vpack.c.bf16 %v1154_v18, %v1153_v17 }
 0x162   : > { %1873 = vst [vmem:[%s2197_s12 + $0x18] sm:$0xff] %v1795_v6  }
 0x163   : > { %1877 = vst [vmem:[%s2197_s12 + $0x38] sm:$0xff] %v1815_v22  }
 0x164 PF: > { %s15_s19 = sadd.s32 1, %s2106_s19   ;;  %s2443_s15 = smov %s2098_s17 }
 0x165   : > { %p12_p5 = scmp.ge.s32.totalorder %s15_s19, 10   ;;  %s2444_s16 = smov %s2102_s18 }
 0x166   : > { %s2445_s17 = smov %s2448_s21  ;;  %s2446_s18 = smov %s2452_s22 }
 0x167   :  { %14 = sbr.rel (!%p12_p5) target bundleno = 3 (0x3), region = 82 }
 0x16c   :  { %1257 = vsyncpa [#allocation5], 1 }
 0x16d   :  { %1259 = vsyncpa [#allocation5 + $0x1], 1 }

// kernel: rgcn_forward.9
= control target key start
LH: loop header
LB: loop body
LE: loop exit
PB: predicated region body
PF: predicated region fallthrough
CT: control target
= control target key end

     0   :  { %9 = vsyncpa [#allocation5], 0  ;;  %s1975_s15 = smov 0   ;;  %s1977_s16 = smov 0   ;;  %s2285_s0 = inlined_call_operand.vmem [shape: f32[4,2], index: 0, kind: input, shape index: {}]   ;;  %s2286_s1 = inlined_call_operand.vmem [shape: bf16[4,256,256], index: 1, kind: input, shape index: {}]   ;;  %s2287_s2 = inlined_call_operand.vmem [shape: bf16[3,256,128], index: 2, kind: input, shape index: {}]   ;;  %s2288_s3 = inlined_call_operand.vmem [shape: f32[1,128], index: 3, kind: input, shape index: {}]   ;;  %s2289_s4 = inlined_call_operand.vmem [shape: f32[256,128], index: 4, kind: output, shape index: {}]  }
   0x1   :  { %s1979_s17 = smov 0   ;;  %s1981_s18 = smov 0  }
   0x2   :  { %s1983_s19 = smov 0  }
   0x3 LB: > { %s1258_s20 = sadd.s32 4294967295, %s1947_s19   ;;  %s30_s21 = sadd.s32 1, %s1939_s17  ;;  %s1947_s19 = sphi %s1983_s19, %s15_s19   ;;  %s1943_s18 = sphi %s1981_s18, %s2295_s18   ;;  %s1939_s17 = sphi %s1979_s17, %s2294_s17   ;;  %s1935_s16 = sphi %s1977_s16, %s2293_s16   ;;  %s1931_s15 = sphi %s1975_s15, %s2292_s15  }
   0x4   : > { %p32_p0 = scmp.ge.s32.totalorder %s30_s21, 4  ;;  %s34_s22 = sadd.s32 1, %s1943_s18 }
   0x5   : > { %p1260_p1 = scmp.ge.s32.totalorder %s1947_s19, 1  ;;  %p158_p2 = scmp.lt.s32.totalorder %s1947_s19, 9 }
   0x6   : > { %s2297_s21 = smov (%p32_p0, %s30_s21), 0  ;;  %s2299_s22 = smov (!%p32_p0, %s34_s22), %s1943_s18 }
   0x7   : > { %p2008_p3 = pnand %p1260_p1, %p158_p2  ;;  %p36_p4 = scmp.ge.s32.totalorder %s2299_s22, 2 }
   0x8   : > { %p2012_p5 = scmp.eq.s32.totalorder %s1258_s20, 0  ;;  %s171_s27 = sshll.u32 %s2285_s0, 4  ;;  %s172_s27 = int_to_ptr.vmem [resolvable:$true] %s171_s27 }
   0x9   : > { %p1803_p6 = pneg %p2008_p3  ;;  %s2301_s22 = smov (%p36_p4, %s2299_s22), 0 }
   0xa   : > { %s1890_s28 = scalar_lea.vmem %s172_s27, 64  ;;  %p1898_p12 = scmp.lt.s32.totalorder %s172_s27, %s172_s27 }
   0xb   : > { %p1804_p7 = pnand %p2012_p5, %p1803_p6  ;;  %p1891_p8 = scmp.ne.s32.totalorder %s172_s27, %s1890_s28 }
   0xc   : > { %p1899_p13 = scmp.lt.s32.totalorder %s1890_s28, %s1890_s28 }
   0xd   : > { %p1892_p9 = pneg %p1804_p7 }
   0xe   : > { %p1900_p0 = por %p1899_p13, %p1898_p12 }
   0xf   : > { %p1893_p10 = pnand %p1892_p9, %p1891_p8 }
  0x11   : > { %p1894_p11 = pneg %p1893_p10 }
  0x13   : > { %p1901_p1 = pnand %p1900_p0, %p1894_p11 }
  0x15   : > { %1904 = shalt.err (!%p1901_p1)
}
  0x16   : > { %s1949_s29 = smov [#allocation4]   ;;  %209 = sbr.rel (%p2008_p3) target bundleno = 352 (0x160), region = 36 }
  0x17   : > { %1806 = dma.vmem_to_smem (!%p1804_p7), %s172_s27, 64, %s1949_s29, [#allocation5]  }
  0x1b   : > { %1926 = dma.done.wait (%p2012_p5), [#allocation5], 64  }
  0x1c   : > { %1928 = vsyncadd (%p2012_p5), [#allocation5], 4294967232 }
  0x1d   : > { %215 = sfence }
  0x1e   : > { %s1265_s30 = sshll.u32 %s1935_s16, 4  ;;  %p247_p2 = scmp.lt.s32.totalorder %s1931_s15, 3 }
  0x1f   : > { %p249_p4 = scmp.lt.s32.totalorder %s1265_s30, 31  ;;  %p268_p6 = scmp.eq.s32.totalorder %s1931_s15, 0 }
  0x20   : > { %s248_s5 = scalar_select %p247_p2, %s1931_s15, 3  ;;  %v1290_v0 = vld [vmem:[%s2288_s3] ss:$0 sm:$0xff] (%p268_p6) }
  0x21   : > { %s2303_s30 = smov (!%p249_p4, %s1265_s30), 31  ;;  %273 = sbr.rel (!%p268_p6) target bundleno = 54 (0x36), region = 44 }
  0x22   : > { %s1267_s6 = sshll.u32 %s248_s5, 6  ;;  %s1266_s7 = sshll.u32 %s2303_s30, 1 }
  0x23   : > { %s1270_s8 = sshll.u32 %s2303_s30, 3  ;;  %s256_s9 = sadd.s32 %s1267_s6, %s1266_s7 }
  0x24   : > { %s2038_s12 = scalar_lea.vmem %s2289_s4, %s1270_s8  ;;  %s1268_s13 = sshll.u32 %s256_s9, 2 }
  0x25   : > { %s2043_s23 = scalar_lea.vmem %s2286_s1, %s1268_s13  ;;  %s1272_s24 = sshll.u32 (%p268_p6), %s1935_s16, 7 }
  0x26   : > { %s275_s25 = sshra.s32 %s1272_s24, 3 }
  0x27   : > { %s1273_s26 = sshll.u32 %s275_s25, 2 }
  0x28   : > { %s1203_s29 = scalar_lea.vmem %s2287_s2, %s1273_s26 }
  0x29   : > { %v1665_v1 = vld [vmem:[%s1203_s29 + $0x100] sm:$0xff]   ;;  %v1666_v2 = vld [vmem:[%s1203_s29 + $0x108] sm:$0xff]   ;;  %v1667_v3 = vld [vmem:[%s1203_s29 + $0x110] sm:$0xff]  }
  0x2a   : > { %v1427_v4 = vunpack.c.l.bf16 %v1665_v1  ;;  %v1428_v5 = vunpack.c.h.bf16 %v1665_v1  ;;  %v1431_v6 = vunpack.c.l.bf16 %v1666_v2  ;;  %v1432_v7 = vunpack.c.h.bf16 %v1666_v2  ;;  %v1668_v8 = vld [vmem:[%s1203_s29 + $0x118] sm:$0xff]   ;;  %v1669_v13 = vld [vmem:[%s1203_s29 + $0x120] sm:$0xff]   ;;  %v1670_v14 = vld [vmem:[%s1203_s29 + $0x128] sm:$0xff]  }
  0x2b   : > { %v1435_v9 = vunpack.c.l.bf16 %v1667_v3  ;;  %v1436_v10 = vunpack.c.h.bf16 %v1667_v3  ;;  %v1439_v11 = vunpack.c.l.bf16 %v1668_v8  ;;  %v1440_v12 = vunpack.c.h.bf16 %v1668_v8  ;;  %v1671_v19 = vld [vmem:[%s1203_s29 + $0x130] sm:$0xff]   ;;  %v1672_v20 = vld [vmem:[%s1203_s29 + $0x138] sm:$0xff]  }
  0x2c   : > { %v319_v15 = vadd.f32 %v1427_v4, %v1290_v0  ;;  %v320_v16 = vadd.f32 %v1428_v5, %v1290_v0  ;;  %v321_v17 = vadd.f32 %v1431_v6, %v1290_v0  ;;  %v322_v18 = vadd.f32 %v1432_v7, %v1290_v0 }
  0x2d   : > { %v323_v21 = vadd.f32 %v1435_v9, %v1290_v0  ;;  %v324_v22 = vadd.f32 %v1436_v10, %v1290_v0  ;;  %v325_v23 = vadd.f32 %v1439_v11, %v1290_v0  ;;  %v326_v24 = vadd.f32 %v1440_v12, %v1290_v0 }
  0x2e   : > { %335 = vst [vmem:[#allocation2 + $0x30] sm:$0xff] %v319_v15  ;;  %336 = vst [vmem:[#allocation2] sm:$0xff] %v320_v16  ;;  %v1443_v25 = vunpack.c.l.bf16 %v1669_v13  ;;  %v1444_v26 = vunpack.c.h.bf16 %v1669_v13  ;;  %v1447_v27 = vunpack.c.l.bf16 %v1670_v14  ;;  %v1448_v28 = vunpack.c.h.bf16 %v1670_v14 }
  0x2f   : > { %337 = vst [vmem:[#allocation2 + $0x58] sm:$0xff] %v321_v17  ;;  %338 = vst [vmem:[#allocation2 + $0x18] sm:$0xff] %v322_v18  ;;  %v1451_v29 = vunpack.c.l.bf16 %v1671_v19  ;;  %v1452_v30 = vunpack.c.h.bf16 %v1671_v19  ;;  %v1455_v31 = vunpack.c.l.bf16 %v1672_v20  ;;  %v1456_v32 = vunpack.c.h.bf16 %v1672_v20 }
  0x30   : > { %339 = vst [vmem:[#allocation2 + $0x50] sm:$0xff] %v323_v21  ;;  %340 = vst [vmem:[#allocation2 + $0x68] sm:$0xff] %v324_v22  ;;  %v327_v33 = vadd.f32 %v1443_v25, %v1290_v0  ;;  %v328_v34 = vadd.f32 %v1444_v26, %v1290_v0  ;;  %v329_v35 = vadd.f32 %v1447_v27, %v1290_v0 }
  0x31   : > { %341 = vst [vmem:[#allocation2 + $0x8] sm:$0xff] %v325_v23  ;;  %342 = vst [vmem:[#allocation2 + $0x48] sm:$0xff] %v326_v24  ;;  %v330_v36 = vadd.f32 %v1448_v28, %v1290_v0  ;;  %v331_v37 = vadd.f32 %v1451_v29, %v1290_v0  ;;  %v332_v38 = vadd.f32 %v1452_v30, %v1290_v0 }
  0x32   : > { %v333_v39 = vadd.f32 %v1455_v31, %v1290_v0  ;;  %v334_v40 = vadd.f32 %v1456_v32, %v1290_v0  ;;  %343 = vst [vmem:[#allocation2 + $0x40] sm:$0xff] %v327_v33  ;;  %344 = vst [vmem:[#allocation2 + $0x20] sm:$0xff] %v328_v34 }
  0x33   : > { %345 = vst [vmem:[#allocation2 + $0x10] sm:$0xff] %v329_v35  ;;  %346 = vst [vmem:[#allocation2 + $0x38] sm:$0xff] %v330_v36 }
  0x34   : > { %347 = vst [vmem:[#allocation2 + $0x60] sm:$0xff] %v331_v37  ;;  %348 = vst [vmem:[#allocation2 + $0x70] sm:$0xff] %v332_v38 }
  0x35   : > { %349 = vst [vmem:[#allocation2 + $0x78] sm:$0xff] %v333_v39  ;;  %350 = vst [vmem:[#allocation2 + $0x28] sm:$0xff] %v334_v40 }
  0x36 PF: > { %s1291_s16 = sshll.u32 %s1931_s15, 7  ;;  %v1687_v41 = vld [vmem:[%s2287_s2 + $0x78] sm:$0xff]   ;;  %v1686_v49 = vld [vmem:[%s2287_s2 + $0x70] sm:$0xff]   ;;  %v1685_v57 = vld [vmem:[%s2287_s2 + $0x68] sm:$0xff]   ;;  %p1118_p3 = scmp.eq.s32.totalorder %s1931_s15, 3 }
  0x37   : > { %v1703_v42 = vld [vmem:[%s2287_s2 + $0xf8] sm:$0xff]   ;;  %s2062_s13 = sld [smem:[#allocation4 + %s1291_s16]]  ;;  %v1519_v44 = vunpack.c.l.bf16 %v1687_v41  ;;  %v1520_v45 = vunpack.c.h.bf16 %v1687_v41  ;;  %s455_s14 = sadd.s32 1, %s1291_s16  ;;  %v1702_v50 = vld [vmem:[%s2287_s2 + $0xf0] sm:$0xff]   ;;  %v1515_v58 = vunpack.c.l.bf16 %v1686_v49  ;;  %v1516_v59 = vunpack.c.h.bf16 %v1686_v49  ;;  %v1701_v62 = vld [vmem:[%s2287_s2 + $0xe8] sm:$0xff]  }
  0x38   : > { %v1679_v43 = vld [vmem:[%s2287_s2 + $0x38] sm:$0xff]   ;;  %v1583_v46 = vunpack.c.l.bf16 %v1703_v42  ;;  %v1584_v47 = vunpack.c.h.bf16 %v1703_v42  ;;  %s2073_s29 = sld [smem:[#allocation4 + %s455_s14]]  ;;  %v1678_v55 = vld [vmem:[%s2287_s2 + $0x30] sm:$0xff]   ;;  %v1579_v60 = vunpack.c.l.bf16 %v1702_v50  ;;  %v1580_v61 = vunpack.c.h.bf16 %v1702_v50  ;;  %v1677_v63 = vld [vmem:[%s2287_s2 + $0x28] sm:$0xff]  }
  0x39   : > { %v1695_v48 = vld [vmem:[%s2287_s2 + $0xb8] sm:$0xff]   ;;  %v1487_v51 = vunpack.c.l.bf16 %v1679_v43  ;;  %v1488_v52 = vunpack.c.h.bf16 %v1679_v43  ;;  %v1694_v56 = vld [vmem:[%s2287_s2 + $0xb0] sm:$0xff]   ;;  %v2093_v0 = vld [vmem:[%s2287_s2 + $0xa8] sm:$0xff]   ;;  %v1483_v1 = vunpack.c.l.bf16 %v1678_v55  ;;  %v1484_v2 = vunpack.c.h.bf16 %v1678_v55 }
  0x3a   : > { %v1551_v53 = vunpack.c.l.bf16 %v1695_v48  ;;  %v1552_v54 = vunpack.c.h.bf16 %v1695_v48  ;;  %v1547_v3 = vunpack.c.l.bf16 %v1694_v56  ;;  %v1548_v4 = vunpack.c.h.bf16 %v1694_v56  ;;  %v2098_v5 = vld [vmem:[%s2287_s2 + $0x60] sm:$0xff]  }
  0x3b   : > { %v2103_v6 = vld [vmem:[%s2287_s2 + $0xe0] sm:$0xff]   ;;  %v1511_v7 = vunpack.c.l.bf16 %v1685_v57  ;;  %v1512_v8 = vunpack.c.h.bf16 %v1685_v57  ;;  %v1575_v9 = vunpack.c.l.bf16 %v1701_v62  ;;  %v1576_v10 = vunpack.c.h.bf16 %v1701_v62 }
  0x3c   : > { %v1479_v11 = vunpack.c.l.bf16 %v1677_v63  ;;  %v1480_v12 = vunpack.c.h.bf16 %v1677_v63  ;;  %v1543_v13 = vunpack.c.l.bf16 %v2093_v0  ;;  %v1544_v14 = vunpack.c.h.bf16 %v2093_v0  ;;  %v1868_v35 = vld [vmem:[%s2043_s23 + $0x4] ss:$8 sps:$4 sm:$0xff]  }
  0x3d   : > { %v2108_v15 = vstv %s2062_s13  ;;  %v1507_v16 = vunpack.c.l.bf16 %v2098_v5  ;;  %v1508_v17 = vunpack.c.h.bf16 %v2098_v5  ;;  %v1571_v18 = vunpack.c.l.bf16 %v2103_v6  ;;  %1021 = vmatprep.mubr.bf16.mxu0 %v1868_v35  ;;  %v1676_v57 = vld [vmem:[%s2287_s2 + $0x20] sm:$0xff]  }
  0x3e   : > { %v453_v19 = vmul.f32 %v1519_v44, %v2108_v15  ;;  %v454_v20 = vmul.f32 %v1520_v45, %v2108_v15  ;;  %v2116_v21 = vstv %s2073_s29  ;;  %v437_v22 = vmul.f32 %v1487_v51, %v2108_v15  ;;  %v1871_v44 = vld [vmem:[%s2043_s23 + $0x44] ss:$8 sps:$4 sm:$0xff]  }
  0x3f   : > { %v555_v23 = vmul.f32 %v1583_v46, %v2116_v21  ;;  %v556_v24 = vmul.f32 %v1584_v47, %v2116_v21  ;;  %v438_v25 = vmul.f32 %v1488_v52, %v2108_v15  ;;  %v539_v26 = vmul.f32 %v1551_v53, %v2116_v21  ;;  %1053 = vmatprep.mubr.bf16.mxu1 %v1871_v44  ;;  %v1692_v62 = vld [vmem:[%s2287_s2 + $0xa0] sm:$0xff]  }
  0x40   : > { %v540_v27 = vmul.f32 %v1552_v54, %v2116_v21  ;;  %v451_v28 = vmul.f32 %v1515_v58, %v2108_v15  ;;  %v452_v29 = vmul.f32 %v1516_v59, %v2108_v15  ;;  %v553_v30 = vmul.f32 %v1579_v60, %v2116_v21 }
  0x41   : > { %v587_v31 = vadd.f32 %v555_v23, %v453_v19  ;;  %v588_v32 = vadd.f32 %v556_v24, %v454_v20  ;;  %v571_v33 = vadd.f32 %v539_v26, %v437_v22  ;;  %v554_v34 = vmul.f32 %v1580_v61, %v2116_v21  ;;  %v1691_v19 = vld [vmem:[%s2287_s2 + $0x98] sm:$0xff]   ;;  %v1682_v26 = vld [vmem:[%s2287_s2 + $0x50] sm:$0xff]  }
  0x42   : > { %v572_v36 = vadd.f32 %v540_v27, %v438_v25  ;;  %v585_v37 = vadd.f32 %v553_v30, %v451_v28  ;;  %v435_v38 = vmul.f32 %v1483_v1, %v2108_v15  ;;  %v436_v39 = vmul.f32 %v1484_v2, %v2108_v15 }
  0x43   : > { %v1663_v40 = vpack.c.bf16 %v588_v32, %v587_v31  ;;  %v586_v41 = vadd.f32 %v554_v34, %v452_v29  ;;  %v537_v42 = vmul.f32 %v1547_v3, %v2116_v21  ;;  %v538_v43 = vmul.f32 %v1548_v4, %v2116_v21  ;;  %v1683_v3 = vld [vmem:[%s2287_s2 + $0x58] sm:$0xff]  }
  0x44   : > { %v1623_v45 = vpack.c.bf16 %v572_v36, %v571_v33  ;;  %v449_v46 = vmul.f32 %v1511_v7, %v2108_v15  ;;  %v450_v47 = vmul.f32 %v1512_v8, %v2108_v15  ;;  %v551_v48 = vmul.f32 %v1575_v9, %v2116_v21 }
  0x45   : > { %1718 = vst [vmem:[#allocation3 + $0x78] sm:$0xff] %v1663_v40   ;;  %v1658_v49 = vpack.c.bf16 %v586_v41, %v585_v37  ;;  %v569_v50 = vadd.f32 %v537_v42, %v435_v38  ;;  %v570_v51 = vadd.f32 %v538_v43, %v436_v39  ;;  %v552_v52 = vmul.f32 %v1576_v10, %v2116_v21  ;;  %v1698_v41 = vld [vmem:[%s2287_s2 + $0xd0] sm:$0xff]  }
  0x46   : > { %1710 = vst [vmem:[#allocation3 + $0x38] sm:$0xff] %v1623_v45   ;;  %v583_v53 = vadd.f32 %v551_v48, %v449_v46  ;;  %v433_v54 = vmul.f32 %v1479_v11, %v2108_v15  ;;  %v434_v55 = vmul.f32 %v1480_v12, %v2108_v15  ;;  %v535_v56 = vmul.f32 %v1543_v13, %v2116_v21  ;;  %v1675_v13 = vld [vmem:[%s2287_s2 + $0x18] sm:$0xff]   ;;  %v1674_v42 = vld [vmem:[%s2287_s2 + $0x10] sm:$0xff]  }
  0x47   : > { %1717 = vst [vmem:[#allocation3 + $0x70] sm:$0xff] %v1658_v49   ;;  %v1618_v58 = vpack.c.bf16 %v570_v51, %v569_v50  ;;  %v584_v59 = vadd.f32 %v552_v52, %v450_v47  ;;  %v536_v60 = vmul.f32 %v1544_v14, %v2116_v21  ;;  %v447_v61 = vmul.f32 %v1507_v16, %v2108_v15  ;;  %v1690_v52 = vld [vmem:[%s2287_s2 + $0x90] sm:$0xff]  }
  0x48   : > { %v567_v63 = vadd.f32 %v535_v56, %v433_v54  ;;  %v448_v0 = vmul.f32 %v1508_v17, %v2108_v15  ;;  %v1572_v1 = vunpack.c.h.bf16 %v2103_v6  ;;  %v549_v2 = vmul.f32 %v1571_v18, %v2116_v21  ;;  %v1699_v6 = vld [vmem:[%s2287_s2 + $0xd8] sm:$0xff]  }
  0x49   : > { %1709 = vst [vmem:[#allocation3 + $0x30] sm:$0xff] %v1618_v58   ;;  %v1653_v4 = vpack.c.bf16 %v584_v59, %v583_v53  ;;  %v568_v5 = vadd.f32 %v536_v60, %v434_v55  ;;  %v1475_v7 = vunpack.c.l.bf16 %v1676_v57  ;;  %v1476_v8 = vunpack.c.h.bf16 %v1676_v57 }
  0x4a   : > { %v550_v9 = vmul.f32 %v1572_v1, %v2116_v21  ;;  %v581_v10 = vadd.f32 %v549_v2, %v447_v61  ;;  %v1539_v11 = vunpack.c.l.bf16 %v1692_v62  ;;  %v1540_v12 = vunpack.c.h.bf16 %v1692_v62  ;;  %v1681_v62 = vld [vmem:[%s2287_s2 + $0x48] sm:$0xff]  }
  0x4b   : > { %1716 = vst [vmem:[#allocation3 + $0x68] sm:$0xff] %v1653_v4   ;;  %v1613_v14 = vpack.c.bf16 %v568_v5, %v567_v63  ;;  %v431_v16 = vmul.f32 %v1475_v7, %v2108_v15  ;;  %v432_v17 = vmul.f32 %v1476_v8, %v2108_v15  ;;  %v1503_v18 = vunpack.c.l.bf16 %v1683_v3 }
  0x4c   : > { %v1850_v20 = vld [vmem:[#allocation3 + $0x78] sm:$0xff]   ;;  %v582_v22 = vadd.f32 %v550_v9, %v448_v0  ;;  %v533_v23 = vmul.f32 %v1539_v11, %v2116_v21  ;;  %v534_v24 = vmul.f32 %v1540_v12, %v2116_v21  ;;  %v1504_v25 = vunpack.c.h.bf16 %v1683_v3  ;;  %v1697_v9 = vld [vmem:[%s2287_s2 + $0xc8] sm:$0xff]  }
  0x4d   : > { %v1851_v27 = vld [vmem:[#allocation3 + $0x38] sm:$0xff]   ;;  %1708 = vst [vmem:[#allocation3 + $0x28] sm:$0xff] %v1613_v14   ;;  %v445_v28 = vmul.f32 %v1503_v18, %v2108_v15  ;;  %v1567_v29 = vunpack.c.l.bf16 %v1699_v6  ;;  %v1568_v30 = vunpack.c.h.bf16 %v1699_v6  ;;  %v1471_v31 = vunpack.c.l.bf16 %v1675_v13  ;;  %1719 = vmatprep.subr.bf16.mxu0 %v1850_v20  ;;  %1783 = vmatprep.subr.bf16.mxu1 %v1850_v20 }
  0x4e   : > { %v1852_v32 = vld [vmem:[#allocation3 + $0x70] sm:$0xff]   ;;  %v1648_v33 = vpack.c.bf16 %v582_v22, %v581_v10  ;;  %v565_v34 = vadd.f32 %v533_v23, %v431_v16  ;;  %v566_v35 = vadd.f32 %v534_v24, %v432_v17  ;;  %v1472_v36 = vunpack.c.h.bf16 %v1675_v13  ;;  %1720 = vmatpush3.bf16.msra.mxu0 %v1851_v27  ;;  %1791 = vmatpush3.bf16.msra.mxu1 %v1851_v27  ;;  %v1673_v10 = vld [vmem:[%s2287_s2 + $0x8] sm:$0xff]  }
  0x4f   : > { %v446_v37 = vmul.f32 %v1504_v25, %v2108_v15  ;;  %v547_v38 = vmul.f32 %v1567_v29, %v2116_v21  ;;  %v548_v39 = vmul.f32 %v1568_v30, %v2116_v21  ;;  %v1535_v40 = vunpack.c.l.bf16 %v1691_v19  ;;  %1721 = vmatprep.subr.bf16.mxu0 %v1852_v32  ;;  %1784 = vmatprep.subr.bf16.mxu1 %v1852_v32  ;;  %v1689_v25 = vld [vmem:[%s2287_s2 + $0x88] sm:$0xff]  }
  0x50   : > { %v1853_v43 = vld [vmem:[#allocation3 + $0x30] sm:$0xff]   ;;  %1715 = vst [vmem:[#allocation3 + $0x60] sm:$0xff] %v1648_v33   ;;  %v1608_v44 = vpack.c.bf16 %v566_v35, %v565_v34  ;;  %v429_v45 = vmul.f32 %v1471_v31, %v2108_v15  ;;  %v430_v46 = vmul.f32 %v1472_v36, %v2108_v15  ;;  %v1536_v47 = vunpack.c.h.bf16 %v1691_v19  ;;  %v1696_v36 = vld [vmem:[%s2287_s2 + $0xc0] sm:$0xff]  }
  0x51   : > { %v579_v48 = vadd.f32 %v547_v38, %v445_v28  ;;  %v580_v49 = vadd.f32 %v548_v39, %v446_v37  ;;  %v531_v50 = vmul.f32 %v1535_v40, %v2116_v21  ;;  %v1499_v51 = vunpack.c.l.bf16 %v1682_v26 }
  0x52   : > { %v1854_v53 = vld [vmem:[#allocation3 + $0x68] sm:$0xff]   ;;  %1707 = vst [vmem:[#allocation3 + $0x20] sm:$0xff] %v1608_v44   ;;  %v532_v54 = vmul.f32 %v1536_v47, %v2116_v21  ;;  %v1500_v55 = vunpack.c.h.bf16 %v1682_v26  ;;  %v1563_v56 = vunpack.c.l.bf16 %v1698_v41  ;;  %v1564_v57 = vunpack.c.h.bf16 %v1698_v41  ;;  %1722 = vmatpush3.bf16.msra.mxu0 %v1853_v43  ;;  %1792 = vmatpush3.bf16.msra.mxu1 %v1853_v43  ;;  %v1680_v26 = vld [vmem:[%s2287_s2 + $0x40] sm:$0xff]  }
  0x53   : > { %v1643_v58 = vpack.c.bf16 %v580_v49, %v579_v48  ;;  %v563_v59 = vadd.f32 %v531_v50, %v429_v45  ;;  %v443_v60 = vmul.f32 %v1499_v51, %v2108_v15  ;;  %v1467_v61 = vunpack.c.l.bf16 %v1674_v42  ;;  %1723 = vmatprep.subr.bf16.mxu0 %v1854_v53  ;;  %1785 = vmatprep.subr.bf16.mxu1 %v1854_v53  ;;  %v1458_v41 = vld [vmem:[%s2287_s2] sm:$0xff]  }
  0x54   : > { %v1855_v63 = vld [vmem:[#allocation3 + $0x28] sm:$0xff]   ;;  %v564_v0 = vadd.f32 %v532_v54, %v430_v46  ;;  %v444_v1 = vmul.f32 %v1500_v55, %v2108_v15  ;;  %v545_v2 = vmul.f32 %v1563_v56, %v2116_v21  ;;  %v1468_v3 = vunpack.c.h.bf16 %v1674_v42  ;;  %v1688_v51 = vld [vmem:[%s2287_s2 + $0x80] sm:$0xff]  }
  0x55   : > { %1714 = vst [vmem:[#allocation3 + $0x58] sm:$0xff] %v1643_v58   ;;  %v546_v4 = vmul.f32 %v1564_v57, %v2116_v21  ;;  %v427_v5 = vmul.f32 %v1467_v61, %v2108_v15  ;;  %v1531_v7 = vunpack.c.l.bf16 %v1690_v52  ;;  %v1532_v8 = vunpack.c.h.bf16 %v1690_v52 }
  0x56   : > { %v1603_v11 = vpack.c.bf16 %v564_v0, %v563_v59  ;;  %v577_v12 = vadd.f32 %v545_v2, %v443_v60  ;;  %v428_v6 = vmul.f32 %v1468_v3, %v2108_v15  ;;  %v1495_v13 = vunpack.c.l.bf16 %v1681_v62  ;;  %1724 = vmatpush3.bf16.msra.mxu0 %v1855_v63  ;;  %1793 = vmatpush3.bf16.msra.mxu1 %v1855_v63 }
  0x57   : > { %v1856_v14 = vld [vmem:[#allocation3 + $0x60] sm:$0xff]   ;;  %v578_v16 = vadd.f32 %v546_v4, %v444_v1  ;;  %v529_v17 = vmul.f32 %v1531_v7, %v2116_v21  ;;  %v530_v18 = vmul.f32 %v1532_v8, %v2116_v21  ;;  %v1496_v19 = vunpack.c.h.bf16 %v1681_v62 }
  0x58   : > { %1706 = vst [vmem:[#allocation3 + $0x18] sm:$0xff] %v1603_v11   ;;  %v441_v20 = vmul.f32 %v1495_v13, %v2108_v15  ;;  %v1559_v22 = vunpack.c.l.bf16 %v1697_v9  ;;  %v1560_v23 = vunpack.c.h.bf16 %v1697_v9  ;;  %v1463_v24 = vunpack.c.l.bf16 %v1673_v10  ;;  %1725 = vmatprep.subr.bf16.mxu0 %v1856_v14  ;;  %1786 = vmatprep.subr.bf16.mxu1 %v1856_v14 }
  0x59   : > { %v1857_v27 = vld [vmem:[#allocation3 + $0x20] sm:$0xff]   ;;  %v1638_v28 = vpack.c.bf16 %v578_v16, %v577_v12  ;;  %v561_v29 = vadd.f32 %v529_v17, %v427_v5  ;;  %v562_v30 = vadd.f32 %v530_v18, %v428_v6  ;;  %v1464_v31 = vunpack.c.h.bf16 %v1673_v10  ;;  %v1872_v18 = vld [vmem:[%s2043_s23 + $0x14] ss:$8 sps:$4 sm:$0xff]  }
  0x5a   : > { %v442_v32 = vmul.f32 %v1496_v19, %v2108_v15  ;;  %v543_v33 = vmul.f32 %v1559_v22, %v2116_v21  ;;  %v544_v34 = vmul.f32 %v1560_v23, %v2116_v21  ;;  %v425_v35 = vmul.f32 %v1463_v24, %v2108_v15  ;;  %1726 = vmatpush3.bf16.msra.mxu0 %v1857_v27  ;;  %v1866_v16 = vld [vmem:[%s2043_s23] ss:$8 sps:$4 sm:$0xff]   ;;  %v1874_v19 = vld [vmem:[%s2043_s23 + $0x54] ss:$8 sps:$4 sm:$0xff]   ;;  %v1877_v22 = vld [vmem:[%s2043_s23 + $0x50] ss:$8 sps:$4 sm:$0xff]  }
  0x5b   : > { %1794 = vmatpush3.bf16.msra.mxu1 %v1857_v27  ;;  %1713 = vst [vmem:[#allocation3 + $0x50] sm:$0xff] %v1638_v28   ;;  %v1598_v37 = vpack.c.bf16 %v562_v30, %v561_v29  ;;  %v426_v38 = vmul.f32 %v1464_v31, %v2108_v15  ;;  %v1527_v39 = vunpack.c.l.bf16 %v1689_v25  ;;  %v1528_v40 = vunpack.c.h.bf16 %v1689_v25  ;;  %v1869_v17 = vld [vmem:[%s2043_s23 + $0x40] ss:$8 sps:$4 sm:$0xff]   ;;  %v1878_v23 = vld [vmem:[%s2043_s23 + $0x24] ss:$8 sps:$4 sm:$0xff]  }
  0x5c   : > { %v1858_v42 = vld [vmem:[#allocation3 + $0x58] sm:$0xff]   ;;  %v575_v43 = vadd.f32 %v543_v33, %v441_v20  ;;  %v576_v44 = vadd.f32 %v544_v34, %v442_v32  ;;  %v1491_v45 = vunpack.c.l.bf16 %v1680_v26  ;;  %v1492_v46 = vunpack.c.h.bf16 %v1680_v26  ;;  %v1880_v24 = vld [vmem:[%s2043_s23 + $0x64] ss:$8 sps:$4 sm:$0xff]   ;;  %v1882_v25 = vld [vmem:[%s2043_s23 + $0x20] ss:$8 sps:$4 sm:$0xff]  }
  0x5d   : > { %1705 = vst [vmem:[#allocation3 + $0x10] sm:$0xff] %v1598_v37   ;;  %v527_v47 = vmul.f32 %v1527_v39, %v2116_v21  ;;  %v528_v48 = vmul.f32 %v1528_v40, %v2116_v21  ;;  %v1555_v49 = vunpack.c.l.bf16 %v1696_v36  ;;  %v1556_v50 = vunpack.c.h.bf16 %v1696_v36  ;;  %1727 = vmatprep.subr.bf16.mxu0 %v1858_v42  ;;  %1787 = vmatprep.subr.bf16.mxu1 %v1858_v42  ;;  %v1876_v20 = vld [vmem:[%s2043_s23 + $0x10] ss:$8 sps:$4 sm:$0xff]   ;;  %v1883_v26 = vld [vmem:[%s2043_s23 + $0x60] ss:$8 sps:$4 sm:$0xff]  }
  0x5e   : > { %v1633_v52 = vpack.c.bf16 %v576_v44, %v575_v43  ;;  %v439_v53 = vmul.f32 %v1491_v45, %v2108_v15  ;;  %v440_v54 = vmul.f32 %v1492_v46, %v2108_v15  ;;  %v1459_v55 = vunpack.c.l.bf16 %v1458_v41  ;;  %v1884_v27 = vld [vmem:[%s2043_s23 + $0x34] ss:$8 sps:$4 sm:$0xff]   ;;  %v1888_v29 = vld [vmem:[%s2043_s23 + $0x30] ss:$8 sps:$4 sm:$0xff]   ;;  %v750_v43 = vld [vmem:[#allocation2] sm:$0xff] }
  0x5f   : > { %v1859_v56 = vld [vmem:[#allocation3 + $0x18] sm:$0xff]   ;;  %v559_v57 = vadd.f32 %v527_v47, %v425_v35  ;;  %v560_v58 = vadd.f32 %v528_v48, %v426_v38  ;;  %v541_v59 = vmul.f32 %v1555_v49, %v2116_v21  ;;  %v542_v60 = vmul.f32 %v1556_v50, %v2116_v21  ;;  %v749_v33 = vld [vmem:[#allocation2 + $0x30] sm:$0xff]  ;;  %v757_v35 = vld [vmem:[#allocation2 + $0x40] sm:$0xff] }
  0x60   : > { %1712 = vst [vmem:[#allocation3 + $0x48] sm:$0xff] %v1633_v52   ;;  %v1460_v61 = vunpack.c.h.bf16 %v1458_v41  ;;  %v423_v62 = vmul.f32 %v1459_v55, %v2108_v15  ;;  %v1523_v63 = vunpack.c.l.bf16 %v1688_v51  ;;  %v1524_v0 = vunpack.c.h.bf16 %v1688_v51  ;;  %1728 = vmatpush3.bf16.msra.mxu0 %v1859_v56  ;;  %1795 = vmatpush3.bf16.msra.mxu1 %v1859_v56  ;;  %v1886_v28 = vld [vmem:[%s2043_s23 + $0x74] ss:$8 sps:$4 sm:$0xff]   ;;  %v1889_v30 = vld [vmem:[%s2043_s23 + $0x70] ss:$8 sps:$4 sm:$0xff]   ;;  %v758_v45 = vld [vmem:[#allocation2 + $0x20] sm:$0xff] }
  0x61   : > { %v1593_v1 = vpack.c.bf16 %v560_v58, %v559_v57  ;;  %v573_v2 = vadd.f32 %v541_v59, %v439_v53  ;;  %v574_v3 = vadd.f32 %v542_v60, %v440_v54  ;;  %v751_v53 = vld [vmem:[#allocation2 + $0x58] sm:$0xff]  ;;  %v759_v55 = vld [vmem:[#allocation2 + $0x10] sm:$0xff] }
  0x62   : > { %v1860_v4 = vld [vmem:[#allocation3 + $0x50] sm:$0xff]   ;;  %v424_v5 = vmul.f32 %v1460_v61, %v2108_v15  ;;  %v525_v7 = vmul.f32 %v1523_v63, %v2116_v21  ;;  %v526_v8 = vmul.f32 %v1524_v0, %v2116_v21  ;;  %v752_v63 = vld [vmem:[#allocation2 + $0x18] sm:$0xff] }
  0x63   : > { %1704 = vst [vmem:[#allocation3 + $0x8] sm:$0xff] %v1593_v1   ;;  %v1628_v9 = vpack.c.bf16 %v574_v3, %v573_v2  ;;  %1729 = vmatprep.subr.bf16.mxu0 %v1860_v4  ;;  %1788 = vmatprep.subr.bf16.mxu1 %v1860_v4  ;;  %v760_v1 = vld [vmem:[#allocation2 + $0x38] sm:$0xff] }
  0x64   : > { %v1861_v10 = vld [vmem:[#allocation3 + $0x10] sm:$0xff]   ;;  %v557_v11 = vadd.f32 %v525_v7, %v423_v62  ;;  %v558_v12 = vadd.f32 %v526_v8, %v424_v5 }
  0x65   : > { %1711 = vst [vmem:[#allocation3 + $0x40] sm:$0xff] %v1628_v9   ;;  %1730 = vmatpush3.bf16.msra.mxu0 %v1861_v10  ;;  %1796 = vmatpush3.bf16.msra.mxu1 %v1861_v10  ;;  %v753_v10 = vld [vmem:[#allocation2 + $0x50] sm:$0xff] }
  0x66   : > { %v1588_v6 = vpack.c.bf16 %v558_v12, %v557_v11  ;;  %v761_v12 = vld [vmem:[#allocation2 + $0x60] sm:$0xff] }
  0x67   : > { %v1862_v13 = vld [vmem:[#allocation3 + $0x48] sm:$0xff]  }
  0x68   : > { %1589 = vst [vmem:[#allocation3] sm:$0xff] %v1588_v6   ;;  %1731 = vmatprep.subr.bf16.mxu0 %v1862_v13  ;;  %1789 = vmatprep.subr.bf16.mxu1 %v1862_v13 }
  0x6a   : > { %v1863_v15 = vld [vmem:[#allocation3 + $0x8] sm:$0xff]  }
  0x6b   : > { %1732 = vmatpush3.bf16.msra.mxu0 %v1863_v15  ;;  %1797 = vmatpush3.bf16.msra.mxu1 %v1863_v15 }
  0x6c   : > { %v1864_v21 = vld [vmem:[#allocation3 + $0x40] sm:$0xff]  }
  0x6d   : > { %1733 = vmatprep.subr.bf16.mxu0 %v1864_v21  ;;  %1790 = vmatprep.subr.bf16.mxu1 %v1864_v21 }
  0x6f   : > { %v1865_v14 = vld [vmem:[#allocation3] sm:$0xff]  }
  0x70   : > { %1734 = vmatpush3.bf16.msra.mxu0 %v1865_v14  ;;  %1798 = vmatpush3.bf16.msra.mxu1 %v1865_v14 }
  0x73   : > { %1022 = vmatmul.mubr.bf16.vlgmr.msra.gmra.mxu0 %v1866_v16  ;;  %1054 = vmatmul.mubr.bf16.vlgmr.msra.gmra.mxu1 %v1869_v17 }
  0x74   : > { %1029 = vmatprep.mubr.bf16.mxu0 %v1872_v18  ;;  %1061 = vmatprep.mubr.bf16.mxu1 %v1874_v19  ;;  %v754_v18 = vld [vmem:[#allocation2 + $0x68] sm:$0xff] }
  0x7b   : > { %1030 = vmatmul.mubr.bf16.gmra.mxu0 %v1876_v20  ;;  %1062 = vmatmul.mubr.bf16.gmra.mxu1 %v1877_v22  ;;  %v762_v20 = vld [vmem:[#allocation2 + $0x70] sm:$0xff] }
  0x7c   : > { %1037 = vmatprep.mubr.bf16.mxu0 %v1878_v23  ;;  %1069 = vmatprep.mubr.bf16.mxu1 %v1880_v24 }
  0x83   : > { %1038 = vmatmul.mubr.bf16.gmra.mxu0 %v1882_v25  ;;  %1070 = vmatmul.mubr.bf16.gmra.mxu1 %v1883_v26 }
  0x84   : > { %1045 = vmatprep.mubr.bf16.mxu0 %v1884_v27  ;;  %1077 = vmatprep.mubr.bf16.mxu1 %v1886_v28 }
  0x8b   : > { %1046 = vmatmul.mubr.bf16.gmra.mxu0 %v1888_v29  ;;  %1078 = vmatmul.mubr.bf16.gmra.mxu1 %v1889_v30  ;;  %v755_v29 = vld [vmem:[#allocation2 + $0x8] sm:$0xff] }
 0x133   : > { %v1735_v31 = vpop.f32.mrf.mxu0  ;;  %v1759_v32 = vpop.f32.mrf.mxu1 }
 0x135   : > { %v1736_v34 = vpop.f32.mrf.mxu0  ;;  %v1760_v36 = vpop.f32.mrf.mxu1 }
 0x136   : > { %v1737_v37 = vadd.f32 %v1736_v34, %v1735_v31  ;;  %v1761_v38 = vadd.f32 %v1760_v36, %v1759_v32  ;;  %v763_v31 = vld [vmem:[#allocation2 + $0x78] sm:$0xff] }
 0x137   : > { %v1738_v39 = vpop.f32.mrf.mxu0  ;;  %v1762_v40 = vpop.f32.mrf.mxu1 }
 0x138   : > { %v1086_v41 = vadd.f32 %v1737_v37, %v749_v33  ;;  %v1094_v42 = vadd.f32 %v1761_v38, %v757_v35 }
 0x139   : > { %v1739_v44 = vpop.f32.mrf.mxu0  ;;  %v1763_v46 = vpop.f32.mrf.mxu1 }
 0x13a   : > { %1102 = vst [vmem:[#allocation2 + $0x30] sm:$0xff] %v1086_v41  ;;  %1110 = vst [vmem:[#allocation2 + $0x40] sm:$0xff] %v1094_v42  ;;  %v1740_v47 = vadd.f32 %v1739_v44, %v1738_v39  ;;  %v1764_v48 = vadd.f32 %v1763_v46, %v1762_v40  ;;  %v756_v39 = vld [vmem:[#allocation2 + $0x48] sm:$0xff] }
 0x13b   : > { %v1741_v49 = vpop.f32.mrf.mxu0  ;;  %v1765_v50 = vpop.f32.mrf.mxu1  ;;  %v764_v41 = vld [vmem:[#allocation2 + $0x28] sm:$0xff] }
 0x13c   : > { %v1087_v51 = vadd.f32 %v1740_v47, %v750_v43  ;;  %v1095_v52 = vadd.f32 %v1764_v48, %v758_v45 }
 0x13d   : > { %v1742_v54 = vpop.f32.mrf.mxu0  ;;  %v1766_v56 = vpop.f32.mrf.mxu1 }
 0x13e   : > { %1103 = vst [vmem:[#allocation2] sm:$0xff] %v1087_v51  ;;  %1111 = vst [vmem:[#allocation2 + $0x20] sm:$0xff] %v1095_v52  ;;  %v1743_v57 = vadd.f32 %v1742_v54, %v1741_v49  ;;  %v1767_v58 = vadd.f32 %v1766_v56, %v1765_v50 }
 0x13f   : > { %v1744_v59 = vpop.f32.mrf.mxu0  ;;  %v1768_v60 = vpop.f32.mrf.mxu1 }
 0x140   : > { %v1088_v61 = vadd.f32 %v1743_v57, %v751_v53  ;;  %v1096_v62 = vadd.f32 %v1767_v58, %v759_v55 }
 0x141   : > { %v1745_v0 = vpop.f32.mrf.mxu0  ;;  %v1769_v2 = vpop.f32.mrf.mxu1  ;;  %v1123_v47 = vld [vmem:[#allocation2 + $0x30] sm:$0xff] (%p1118_p3)  ;;  %v1131_v55 = vld [vmem:[#allocation2 + $0x40] sm:$0xff] (%p1118_p3) }
 0x142   : > { %1104 = vst [vmem:[#allocation2 + $0x58] sm:$0xff] %v1088_v61  ;;  %1112 = vst [vmem:[#allocation2 + $0x10] sm:$0xff] %v1096_v62  ;;  %v1746_v3 = vadd.f32 %v1745_v0, %v1744_v59  ;;  %v1770_v4 = vadd.f32 %v1769_v2, %v1768_v60 }
 0x143   : > { %v1747_v5 = vpop.f32.mrf.mxu0  ;;  %v1771_v7 = vpop.f32.mrf.mxu1  ;;  %1139 = vst [vmem:[%s2038_s12] sm:$0xff] (%p1118_p3), %v1123_v47  ;;  %1147 = vst [vmem:[%s2038_s12 + $0x40] sm:$0xff] (%p1118_p3), %v1131_v55 }
 0x144   : > { %v1089_v8 = vadd.f32 %v1746_v3, %v752_v63  ;;  %v1097_v9 = vadd.f32 %v1770_v4, %v760_v1 }
 0x145   : > { %v1748_v11 = vpop.f32.mrf.mxu0  ;;  %v1772_v6 = vpop.f32.mrf.mxu1  ;;  %v1124_v48 = vld [vmem:[#allocation2] sm:$0xff] (%p1118_p3) }
 0x146   : > { %1105 = vst [vmem:[#allocation2 + $0x18] sm:$0xff] %v1089_v8  ;;  %1113 = vst [vmem:[#allocation2 + $0x38] sm:$0xff] %v1097_v9  ;;  %v1749_v13 = vadd.f32 %v1748_v11, %v1747_v5  ;;  %v1773_v15 = vadd.f32 %v1772_v6, %v1771_v7  ;;  %v1132_v56 = vld [vmem:[#allocation2 + $0x20] sm:$0xff] (%p1118_p3) }
 0x147   : > { %v1750_v21 = vpop.f32.mrf.mxu0  ;;  %v1774_v14 = vpop.f32.mrf.mxu1  ;;  %1140 = vst [vmem:[%s2038_s12 + $0x8] sm:$0xff] (%p1118_p3), %v1124_v48  ;;  %1148 = vst [vmem:[%s2038_s12 + $0x48] sm:$0xff] (%p1118_p3), %v1132_v56 }
 0x148   : > { %v1090_v16 = vadd.f32 %v1749_v13, %v753_v10  ;;  %v1098_v17 = vadd.f32 %v1773_v15, %v761_v12 }
 0x149   : > { %v1751_v19 = vpop.f32.mrf.mxu0  ;;  %v1775_v22 = vpop.f32.mrf.mxu1  ;;  %v1125_v49 = vld [vmem:[#allocation2 + $0x58] sm:$0xff] (%p1118_p3)  ;;  %v1133_v57 = vld [vmem:[#allocation2 + $0x10] sm:$0xff] (%p1118_p3) }
 0x14a   : > { %1106 = vst [vmem:[#allocation2 + $0x50] sm:$0xff] %v1090_v16  ;;  %1114 = vst [vmem:[#allocation2 + $0x60] sm:$0xff] %v1098_v17  ;;  %v1752_v23 = vadd.f32 %v1751_v19, %v1750_v21  ;;  %v1776_v24 = vadd.f32 %v1775_v22, %v1774_v14 }
 0x14b   : > { %v1753_v25 = vpop.f32.mrf.mxu0  ;;  %v1777_v26 = vpop.f32.mrf.mxu1  ;;  %1141 = vst [vmem:[%s2038_s12 + $0x10] sm:$0xff] (%p1118_p3), %v1125_v49  ;;  %1149 = vst [vmem:[%s2038_s12 + $0x50] sm:$0xff] (%p1118_p3), %v1133_v57 }
 0x14c   : > { %v1091_v27 = vadd.f32 %v1752_v23, %v754_v18  ;;  %v1099_v28 = vadd.f32 %v1776_v24, %v762_v20 }
 0x14d   : > { %v1754_v30 = vpop.f32.mrf.mxu0  ;;  %v1778_v32 = vpop.f32.mrf.mxu1  ;;  %v1126_v50 = vld [vmem:[#allocation2 + $0x18] sm:$0xff] (%p1118_p3) }
 0x14e   : > { %1107 = vst [vmem:[#allocation2 + $0x68] sm:$0xff] %v1091_v27  ;;  %1115 = vst [vmem:[#allocation2 + $0x70] sm:$0xff] %v1099_v28  ;;  %v1755_v33 = vadd.f32 %v1754_v30, %v1753_v25  ;;  %v1779_v34 = vadd.f32 %v1778_v32, %v1777_v26  ;;  %v1134_v58 = vld [vmem:[#allocation2 + $0x38] sm:$0xff] (%p1118_p3) }
 0x14f   : > { %v1756_v35 = vpop.f32.mrf.mxu0  ;;  %v1780_v36 = vpop.f32.mrf.mxu1  ;;  %1142 = vst [vmem:[%s2038_s12 + $0x18] sm:$0xff] (%p1118_p3), %v1126_v50  ;;  %1150 = vst [vmem:[%s2038_s12 + $0x58] sm:$0xff] (%p1118_p3), %v1134_v58 }
 0x150   : > { %v1092_v37 = vadd.f32 %v1755_v33, %v755_v29  ;;  %v1100_v38 = vadd.f32 %v1779_v34, %v763_v31 }
 0x151   : > { %v1757_v40 = vpop.f32.mrf.mxu0  ;;  %v1781_v42 = vpop.f32.mrf.mxu1  ;;  %v1127_v51 = vld [vmem:[#allocation2 + $0x50] sm:$0xff] (%p1118_p3)  ;;  %v1135_v59 = vld [vmem:[#allocation2 + $0x60] sm:$0xff] (%p1118_p3) }
 0x152   : > { %1108 = vst [vmem:[#allocation2 + $0x8] sm:$0xff] %v1092_v37  ;;  %1116 = vst [vmem:[#allocation2 + $0x78] sm:$0xff] %v1100_v38  ;;  %v1758_v43 = vadd.f32 %v1757_v40, %v1756_v35  ;;  %v1782_v44 = vadd.f32 %v1781_v42, %v1780_v36  ;;  %1122 = sbr.rel (!%p1118_p3) target bundleno = 352 (0x160), region = 48 }
 0x153   : > { %1143 = vst [vmem:[%s2038_s12 + $0x20] sm:$0xff] (%p1118_p3), %v1127_v51  ;;  %1151 = vst [vmem:[%s2038_s12 + $0x60] sm:$0xff] (%p1118_p3), %v1135_v59 }
 0x154   : > { %v1093_v45 = vadd.f32 %v1758_v43, %v756_v39  ;;  %v1101_v46 = vadd.f32 %v1782_v44, %v764_v41 }
 0x155   : > { %v1128_v52 = vld [vmem:[#allocation2 + $0x68] sm:$0xff] (%p1118_p3)  ;;  %v1136_v60 = vld [vmem:[#allocation2 + $0x70] sm:$0xff] (%p1118_p3) }
 0x156   : > { %1109 = vst [vmem:[#allocation2 + $0x48] sm:$0xff] %v1093_v45  ;;  %1117 = vst [vmem:[#allocation2 + $0x28] sm:$0xff] %v1101_v46 }
 0x157   : > { %1144 = vst [vmem:[%s2038_s12 + $0x28] sm:$0xff] %v1128_v52  ;;  %1152 = vst [vmem:[%s2038_s12 + $0x68] sm:$0xff] %v1136_v60 }
 0x159   : > { %v1129_v53 = vld [vmem:[#allocation2 + $0x8] sm:$0xff]  ;;  %v1137_v61 = vld [vmem:[#allocation2 + $0x78] sm:$0xff] }
 0x15a   : > { %1145 = vst [vmem:[%s2038_s12 + $0x30] sm:$0xff] %v1129_v53  ;;  %1153 = vst [vmem:[%s2038_s12 + $0x70] sm:$0xff] %v1137_v61 }
 0x15d   : > { %v1130_v54 = vld [vmem:[#allocation2 + $0x48] sm:$0xff] }
 0x15e   : > { %1146 = vst [vmem:[%s2038_s12 + $0x38] sm:$0xff] %v1130_v54  ;;  %v1138_v62 = vld [vmem:[#allocation2 + $0x28] sm:$0xff] }
 0x15f   : > { %1154 = vst [vmem:[%s2038_s12 + $0x78] sm:$0xff] %v1138_v62 }
 0x160 PF: > { %s15_s19 = sadd.s32 1, %s1947_s19   ;;  %s2292_s15 = smov %s1939_s17 }
 0x161   : > { %p12_p5 = scmp.ge.s32.totalorder %s15_s19, 10   ;;  %s2293_s16 = smov %s1943_s18 }
 0x162   : > { %s2294_s17 = smov %s2297_s21  ;;  %s2295_s18 = smov %s2301_s22 }
 0x163   :  { %14 = sbr.rel (!%p12_p5) target bundleno = 3 (0x3), region = 82 }
 0x168   :  { %1177 = vsyncpa [#allocation5], 1 }
 0x169   :  { %1179 = vsyncpa [#allocation5 + $0x1], 1 }

// kernel: rgcn_forward.6
= control target key start
LH: loop header
LB: loop body
LE: loop exit
PB: predicated region body
PF: predicated region fallthrough
CT: control target
= control target key end

     0   :  { %s2932_s1 = inlined_call_operand.vmem [shape: bf16[3,128,128], index: 1, kind: input, shape index: {}]   ;;  %s2933_s0 = inlined_call_operand.vmem [shape: bf16[256,128], index: 0, kind: input, shape index: {}]   ;;  %s2934_s2 = inlined_call_operand.vmem [shape: bf16[3,256,128], index: 2, kind: output, shape index: {}]  }
   0x1   :  { %v2573_v0 = vld [vmem:[%s2932_s1 + $0x38] sm:$0xff]   ;;  %v2574_v1 = vld [vmem:[%s2932_s1 + $0x30] sm:$0xff]   ;;  %v2575_v2 = vld [vmem:[%s2932_s1 + $0x28] sm:$0xff]  }
   0x2   :  { %2413 = vmatprep.subr.bf16.mxu0 %v2573_v0  ;;  %2557 = vmatprep.subr.bf16.mxu1 %v2573_v0  ;;  %v2576_v3 = vld [vmem:[%s2932_s1 + $0x20] sm:$0xff]   ;;  %v2577_v6 = vld [vmem:[%s2932_s1 + $0x18] sm:$0xff]   ;;  %v2578_v7 = vld [vmem:[%s2932_s1 + $0x10] sm:$0xff]  }
   0x3   :  { %2414 = vmatpush3.bf16.msra.mxu0 %v2573_v0  ;;  %2565 = vmatpush3.bf16.msra.mxu1 %v2573_v0  ;;  %v2643_v4 = vld [vmem:[%s2933_s0] sm:$0xff]   ;;  %v2579_v8 = vld [vmem:[%s2932_s1 + $0x8] sm:$0xff]   ;;  %v2585_v10 = vld [vmem:[%s2932_s1 + $0x78] sm:$0xff]  }
   0x4   :  { %2415 = vmatprep.subr.bf16.mxu0 %v2574_v1  ;;  %2558 = vmatprep.subr.bf16.mxu1 %v2574_v1  ;;  %v2648_v5 = vld [vmem:[%s2933_s0 + $0x40] sm:$0xff]   ;;  %v2670_v11 = vld [vmem:[%s2933_s0 + $0x8] sm:$0xff]   ;;  %v2586_v12 = vld [vmem:[%s2932_s1 + $0xb8] sm:$0xff]  }
   0x5   :  { %2429 = vmatprep.mubr.bf16.mxu0 %v2643_v4  ;;  %2445 = vmatprep.mubr.bf16.mxu1 %v2648_v5  ;;  %v2580_v9 = vld [vmem:[%s2932_s1] sm:$0xff]   ;;  %v2678_v13 = vld [vmem:[%s2933_s0 + $0x48] sm:$0xff]   ;;  %v2587_v14 = vld [vmem:[%s2932_s1 + $0x70] sm:$0xff]  }
   0x6   :  { %v2588_v15 = vld [vmem:[%s2932_s1 + $0xb0] sm:$0xff]   ;;  %v2593_v18 = vld [vmem:[%s2932_s1 + $0x68] sm:$0xff]   ;;  %v2591_v20 = vld [vmem:[%s2933_s0 + $0x18] sm:$0xff]  }
   0x7   :  { %2416 = vmatpush3.bf16.msra.mxu0 %v2574_v1  ;;  %2566 = vmatpush3.bf16.msra.mxu1 %v2574_v1  ;;  %v2689_v16 = vld [vmem:[%s2933_s0 + $0x10] sm:$0xff]   ;;  %v2594_v19 = vld [vmem:[%s2932_s1 + $0xa8] sm:$0xff]   ;;  %v2712_v21 = vld [vmem:[%s2933_s0 + $0x58] sm:$0xff]  }
   0x8   :  { %2417 = vmatprep.subr.bf16.mxu0 %v2575_v2  ;;  %2559 = vmatprep.subr.bf16.mxu1 %v2575_v2  ;;  %v2694_v17 = vld [vmem:[%s2933_s0 + $0x50] sm:$0xff]   ;;  %v2595_v22 = vld [vmem:[%s2932_s1 + $0x60] sm:$0xff]   ;;  %v2601_v26 = vld [vmem:[%s2932_s1 + $0x58] sm:$0xff]  }
   0x9   :  { %v2596_v23 = vld [vmem:[%s2932_s1 + $0xa0] sm:$0xff]   ;;  %v2602_v27 = vld [vmem:[%s2932_s1 + $0x98] sm:$0xff]   ;;  %v2599_v28 = vld [vmem:[%s2933_s0 + $0x28] sm:$0xff]  }
   0xa   :  { %v2597_v24 = vld [vmem:[%s2933_s0 + $0x20] sm:$0xff]   ;;  %v2600_v29 = vld [vmem:[%s2933_s0 + $0x68] sm:$0xff]   ;;  %v2603_v30 = vld [vmem:[%s2932_s1 + $0x50] sm:$0xff]  }
   0xb   :  { %2418 = vmatpush3.bf16.msra.mxu0 %v2575_v2  ;;  %2567 = vmatpush3.bf16.msra.mxu1 %v2575_v2  ;;  %v2726_v25 = vld [vmem:[%s2933_s0 + $0x60] sm:$0xff]   ;;  %v2604_v31 = vld [vmem:[%s2932_s1 + $0x90] sm:$0xff]   ;;  %v2609_v34 = vld [vmem:[%s2932_s1 + $0x48] sm:$0xff]  }
   0xc   :  { %2419 = vmatprep.subr.bf16.mxu0 %v2576_v3  ;;  %2560 = vmatprep.subr.bf16.mxu1 %v2576_v3  ;;  %v2605_v32 = vld [vmem:[%s2933_s0 + $0x30] sm:$0xff]   ;;  %v2610_v35 = vld [vmem:[%s2932_s1 + $0x88] sm:$0xff]   ;;  %v2607_v36 = vld [vmem:[%s2933_s0 + $0x38] sm:$0xff]  }
   0xd   :  { %v2606_v33 = vld [vmem:[%s2933_s0 + $0x70] sm:$0xff]   ;;  %v2608_v37 = vld [vmem:[%s2933_s0 + $0x78] sm:$0xff]   ;;  %v2611_v38 = vld [vmem:[%s2932_s1 + $0x40] sm:$0xff]  }
   0xe   :  { %v2612_v39 = vld [vmem:[%s2932_s1 + $0x80] sm:$0xff]  }
   0xf   :  { %2420 = vmatpush3.bf16.msra.mxu0 %v2576_v3  ;;  %2568 = vmatpush3.bf16.msra.mxu1 %v2576_v3 }
  0x10   :  { %2421 = vmatprep.subr.bf16.mxu0 %v2577_v6  ;;  %2561 = vmatprep.subr.bf16.mxu1 %v2577_v6 }
  0x13   :  { %2422 = vmatpush3.bf16.msra.mxu0 %v2577_v6  ;;  %2569 = vmatpush3.bf16.msra.mxu1 %v2577_v6 }
  0x14   :  { %2423 = vmatprep.subr.bf16.mxu0 %v2578_v7  ;;  %2562 = vmatprep.subr.bf16.mxu1 %v2578_v7 }
  0x17   :  { %2424 = vmatpush3.bf16.msra.mxu0 %v2578_v7  ;;  %2570 = vmatpush3.bf16.msra.mxu1 %v2578_v7 }
  0x18   :  { %2425 = vmatprep.subr.bf16.mxu0 %v2579_v8  ;;  %2563 = vmatprep.subr.bf16.mxu1 %v2579_v8 }
  0x1b   :  { %2426 = vmatpush3.bf16.msra.mxu0 %v2579_v8  ;;  %2571 = vmatpush3.bf16.msra.mxu1 %v2579_v8 }
  0x1c   :  { %2427 = vmatprep.subr.bf16.mxu0 %v2580_v9  ;;  %2564 = vmatprep.subr.bf16.mxu1 %v2580_v9 }
  0x1f   :  { %2428 = vmatpush3.bf16.msra.mxu0 %v2580_v9  ;;  %2572 = vmatpush3.bf16.msra.mxu1 %v2580_v9 }
  0x20   :  { %2461 = vmatprep.subr.bf16.mxu1 %v2585_v10  ;;  %2509 = vmatprep.subr.bf16.mxu0 %v2586_v12 }
  0x22   :  { %2430 = vmatmul.mubr.bf16.vlgmr.msra.gmra.mxu0 %v2670_v11  ;;  %2446 = vmatmul.mubr.bf16.vlgmr.msra.gmra.mxu1 %v2678_v13 }
  0x23   :  { %2462 = vmatpush3.bf16.msra.mxu1 %v2585_v10  ;;  %2510 = vmatpush3.bf16.msra.mxu0 %v2586_v12 }
  0x24   :  { %2463 = vmatprep.subr.bf16.mxu1 %v2587_v14  ;;  %2511 = vmatprep.subr.bf16.mxu0 %v2588_v15 }
  0x25   :  { %2433 = vmatprep.mubr.bf16.mxu0 %v2689_v16  ;;  %2449 = vmatprep.mubr.bf16.mxu1 %v2694_v17 }
  0x27   :  { %2464 = vmatpush3.bf16.msra.mxu1 %v2587_v14  ;;  %2512 = vmatpush3.bf16.msra.mxu0 %v2588_v15 }
  0x28   :  { %2465 = vmatprep.subr.bf16.mxu1 %v2593_v18  ;;  %2513 = vmatprep.subr.bf16.mxu0 %v2594_v19 }
  0x2a   :  { %2434 = vmatmul.mubr.bf16.gmra.mxu0 %v2591_v20  ;;  %2450 = vmatmul.mubr.bf16.gmra.mxu1 %v2712_v21 }
  0x2b   :  { %2466 = vmatpush3.bf16.msra.mxu1 %v2593_v18  ;;  %2514 = vmatpush3.bf16.msra.mxu0 %v2594_v19 }
  0x2c   :  { %2467 = vmatprep.subr.bf16.mxu1 %v2595_v22  ;;  %2515 = vmatprep.subr.bf16.mxu0 %v2596_v23 }
  0x2d   :  { %2437 = vmatprep.mubr.bf16.mxu0 %v2597_v24  ;;  %2453 = vmatprep.mubr.bf16.mxu1 %v2726_v25 }
  0x2f   :  { %2468 = vmatpush3.bf16.msra.mxu1 %v2595_v22  ;;  %2516 = vmatpush3.bf16.msra.mxu0 %v2596_v23 }
  0x30   :  { %2469 = vmatprep.subr.bf16.mxu1 %v2601_v26  ;;  %2517 = vmatprep.subr.bf16.mxu0 %v2602_v27 }
  0x32   :  { %2438 = vmatmul.mubr.bf16.gmra.mxu0 %v2599_v28  ;;  %2454 = vmatmul.mubr.bf16.gmra.mxu1 %v2600_v29 }
  0x33   :  { %2470 = vmatpush3.bf16.msra.mxu1 %v2601_v26  ;;  %2518 = vmatpush3.bf16.msra.mxu0 %v2602_v27 }
  0x34   :  { %2471 = vmatprep.subr.bf16.mxu1 %v2603_v30  ;;  %2519 = vmatprep.subr.bf16.mxu0 %v2604_v31 }
  0x35   :  { %2441 = vmatprep.mubr.bf16.mxu0 %v2605_v32  ;;  %2457 = vmatprep.mubr.bf16.mxu1 %v2606_v33 }
  0x37   :  { %2472 = vmatpush3.bf16.msra.mxu1 %v2603_v30  ;;  %2520 = vmatpush3.bf16.msra.mxu0 %v2604_v31 }
  0x38   :  { %2473 = vmatprep.subr.bf16.mxu1 %v2609_v34  ;;  %2521 = vmatprep.subr.bf16.mxu0 %v2610_v35 }
  0x3a   :  { %2442 = vmatmul.mubr.bf16.gmra.mxu0 %v2607_v36  ;;  %2458 = vmatmul.mubr.bf16.gmra.mxu1 %v2608_v37 }
  0x3b   :  { %2474 = vmatpush3.bf16.msra.mxu1 %v2609_v34  ;;  %2522 = vmatpush3.bf16.msra.mxu0 %v2610_v35 }
  0x3c   :  { %2475 = vmatprep.subr.bf16.mxu1 %v2611_v38  ;;  %2523 = vmatprep.subr.bf16.mxu0 %v2612_v39 }
  0x3d   :  { %2477 = vmatprep.mubr.bf16.mxu1 %v2643_v4  ;;  %2525 = vmatprep.mubr.bf16.mxu0 %v2643_v4 }
  0x3f   :  { %2476 = vmatpush3.bf16.msra.mxu1 %v2611_v38  ;;  %2524 = vmatpush3.bf16.msra.mxu0 %v2612_v39 }
  0x42   :  { %2478 = vmatmul.mubr.bf16.vlgmr.msra.gmra.mxu1 %v2670_v11  ;;  %2526 = vmatmul.mubr.bf16.vlgmr.msra.gmra.mxu0 %v2670_v11 }
  0x43   :  { %2481 = vmatprep.mubr.bf16.mxu1 %v2689_v16  ;;  %2529 = vmatprep.mubr.bf16.mxu0 %v2689_v16 }
  0x4a   :  { %2482 = vmatmul.mubr.bf16.gmra.mxu1 %v2591_v20  ;;  %2530 = vmatmul.mubr.bf16.gmra.mxu0 %v2591_v20 }
  0x4b   :  { %2485 = vmatprep.mubr.bf16.mxu1 %v2597_v24  ;;  %2533 = vmatprep.mubr.bf16.mxu0 %v2597_v24 }
  0x52   :  { %2486 = vmatmul.mubr.bf16.gmra.mxu1 %v2599_v28  ;;  %2534 = vmatmul.mubr.bf16.gmra.mxu0 %v2599_v28 }
  0x53   :  { %2489 = vmatprep.mubr.bf16.mxu1 %v2605_v32  ;;  %2537 = vmatprep.mubr.bf16.mxu0 %v2605_v32 }
  0x5a   :  { %2490 = vmatmul.mubr.bf16.gmra.mxu1 %v2607_v36  ;;  %2538 = vmatmul.mubr.bf16.gmra.mxu0 %v2607_v36 }
  0x5b   :  { %2493 = vmatprep.mubr.bf16.mxu1 %v2648_v5  ;;  %2541 = vmatprep.mubr.bf16.mxu0 %v2648_v5 }
  0x62   :  { %2494 = vmatmul.mubr.bf16.gmra.mxu1 %v2678_v13  ;;  %2542 = vmatmul.mubr.bf16.gmra.mxu0 %v2678_v13 }
  0x63   :  { %2497 = vmatprep.mubr.bf16.mxu1 %v2694_v17  ;;  %2545 = vmatprep.mubr.bf16.mxu0 %v2694_v17 }
  0x6a   :  { %2498 = vmatmul.mubr.bf16.gmra.mxu1 %v2712_v21  ;;  %2546 = vmatmul.mubr.bf16.gmra.mxu0 %v2712_v21 }
  0x6b   :  { %2501 = vmatprep.mubr.bf16.mxu1 %v2726_v25  ;;  %2549 = vmatprep.mubr.bf16.mxu0 %v2726_v25 }
  0x72   :  { %2502 = vmatmul.mubr.bf16.gmra.mxu1 %v2600_v29  ;;  %2550 = vmatmul.mubr.bf16.gmra.mxu0 %v2600_v29 }
  0x73   :  { %2505 = vmatprep.mubr.bf16.mxu1 %v2606_v33  ;;  %2553 = vmatprep.mubr.bf16.mxu0 %v2606_v33 }
  0x7a   :  { %2506 = vmatmul.mubr.bf16.gmra.mxu1 %v2608_v37  ;;  %2554 = vmatmul.mubr.bf16.gmra.mxu0 %v2608_v37 }
  0xe2   :  { %v2431_v40 = vpop.f32.mrf.mxu0  ;;  %v2447_v41 = vpop.f32.mrf.mxu1 }
  0xe4   :  { %v370_v42 = vpop.f32.mrf.mxu0  ;;  %v434_v43 = vpop.f32.mrf.mxu1 }
  0xe6   :  { %v2432_v44 = vpop.f32.mrf.mxu0  ;;  %v2448_v45 = vpop.f32.mrf.mxu1 }
  0xe7   :  { %v2062_v46 = vpack.c.bf16 %v2432_v44, %v2431_v40  ;;  %v2102_v47 = vpack.c.bf16 %v2448_v45, %v2447_v41 }
  0xe8   :  { %v373_v48 = vpop.f32.mrf.mxu0  ;;  %v437_v49 = vpop.f32.mrf.mxu1 }
  0xe9   :  { %2294 = vst [vmem:[%s2934_s2 + $0x8] sm:$0xff] %v2062_v46   ;;  %2302 = vst [vmem:[%s2934_s2 + $0x48] sm:$0xff] %v2102_v47   ;;  %v2057_v50 = vpack.c.bf16 %v373_v48, %v370_v42  ;;  %v2097_v51 = vpack.c.bf16 %v437_v49, %v434_v43 }
  0xea   :  { %v2435_v52 = vpop.f32.mrf.mxu0  ;;  %v2451_v53 = vpop.f32.mrf.mxu1 }
  0xeb   :  { %2058 = vst [vmem:[%s2934_s2] sm:$0xff] %v2057_v50   ;;  %2301 = vst [vmem:[%s2934_s2 + $0x40] sm:$0xff] %v2097_v51  }
  0xec   :  { %v386_v54 = vpop.f32.mrf.mxu0  ;;  %v450_v55 = vpop.f32.mrf.mxu1 }
  0xee   :  { %v2436_v56 = vpop.f32.mrf.mxu0  ;;  %v2452_v57 = vpop.f32.mrf.mxu1 }
  0xef   :  { %v2072_v58 = vpack.c.bf16 %v2436_v56, %v2435_v52  ;;  %v2112_v59 = vpack.c.bf16 %v2452_v57, %v2451_v53 }
  0xf0   :  { %v389_v60 = vpop.f32.mrf.mxu0  ;;  %v453_v61 = vpop.f32.mrf.mxu1 }
  0xf1   :  { %2296 = vst [vmem:[%s2934_s2 + $0x18] sm:$0xff] %v2072_v58   ;;  %2304 = vst [vmem:[%s2934_s2 + $0x58] sm:$0xff] %v2112_v59   ;;  %v2067_v62 = vpack.c.bf16 %v389_v60, %v386_v54  ;;  %v2107_v63 = vpack.c.bf16 %v453_v61, %v450_v55 }
  0xf2   :  { %v2439_v0 = vpop.f32.mrf.mxu0  ;;  %v2455_v1 = vpop.f32.mrf.mxu1 }
  0xf3   :  { %2295 = vst [vmem:[%s2934_s2 + $0x10] sm:$0xff] %v2067_v62   ;;  %2303 = vst [vmem:[%s2934_s2 + $0x50] sm:$0xff] %v2107_v63  }
  0xf4   :  { %v402_v2 = vpop.f32.mrf.mxu0  ;;  %v466_v3 = vpop.f32.mrf.mxu1 }
  0xf6   :  { %v2440_v4 = vpop.f32.mrf.mxu0  ;;  %v2456_v5 = vpop.f32.mrf.mxu1 }
  0xf7   :  { %v2082_v6 = vpack.c.bf16 %v2440_v4, %v2439_v0  ;;  %v2122_v7 = vpack.c.bf16 %v2456_v5, %v2455_v1 }
  0xf8   :  { %v405_v8 = vpop.f32.mrf.mxu0  ;;  %v469_v9 = vpop.f32.mrf.mxu1 }
  0xf9   :  { %2298 = vst [vmem:[%s2934_s2 + $0x28] sm:$0xff] %v2082_v6   ;;  %2306 = vst [vmem:[%s2934_s2 + $0x68] sm:$0xff] %v2122_v7   ;;  %v2077_v10 = vpack.c.bf16 %v405_v8, %v402_v2  ;;  %v2117_v11 = vpack.c.bf16 %v469_v9, %v466_v3 }
  0xfa   :  { %v2443_v12 = vpop.f32.mrf.mxu0  ;;  %v2459_v13 = vpop.f32.mrf.mxu1 }
  0xfb   :  { %2297 = vst [vmem:[%s2934_s2 + $0x20] sm:$0xff] %v2077_v10   ;;  %2305 = vst [vmem:[%s2934_s2 + $0x60] sm:$0xff] %v2117_v11  }
  0xfc   :  { %v418_v14 = vpop.f32.mrf.mxu0  ;;  %v482_v15 = vpop.f32.mrf.mxu1 }
  0xfe   :  { %v2444_v16 = vpop.f32.mrf.mxu0  ;;  %v2460_v17 = vpop.f32.mrf.mxu1 }
  0xff   :  { %v2092_v18 = vpack.c.bf16 %v2444_v16, %v2443_v12  ;;  %v2132_v19 = vpack.c.bf16 %v2460_v17, %v2459_v13 }
 0x100   :  { %v421_v20 = vpop.f32.mrf.mxu0  ;;  %v485_v21 = vpop.f32.mrf.mxu1 }
 0x101   :  { %2300 = vst [vmem:[%s2934_s2 + $0x38] sm:$0xff] %v2092_v18   ;;  %2308 = vst [vmem:[%s2934_s2 + $0x78] sm:$0xff] %v2132_v19   ;;  %v2087_v22 = vpack.c.bf16 %v421_v20, %v418_v14  ;;  %v2127_v23 = vpack.c.bf16 %v485_v21, %v482_v15 }
 0x102   :  { %v2479_v24 = vpop.f32.mrf.mxu1  ;;  %v2527_v25 = vpop.f32.mrf.mxu0 }
 0x103   :  { %2299 = vst [vmem:[%s2934_s2 + $0x30] sm:$0xff] %v2087_v22   ;;  %2307 = vst [vmem:[%s2934_s2 + $0x70] sm:$0xff] %v2127_v23  }
 0x104   :  { %v693_v26 = vpop.f32.mrf.mxu1  ;;  %v1016_v27 = vpop.f32.mrf.mxu0 }
 0x106   :  { %v2480_v28 = vpop.f32.mrf.mxu1  ;;  %v2528_v29 = vpop.f32.mrf.mxu0 }
 0x107   :  { %v2142_v30 = vpack.c.bf16 %v2480_v28, %v2479_v24  ;;  %v2222_v31 = vpack.c.bf16 %v2528_v29, %v2527_v25 }
 0x108   :  { %v696_v32 = vpop.f32.mrf.mxu1  ;;  %v1019_v33 = vpop.f32.mrf.mxu0 }
 0x109   :  { %2310 = vst [vmem:[%s2934_s2 + $0x88] sm:$0xff] %v2142_v30   ;;  %2326 = vst [vmem:[%s2934_s2 + $0x108] sm:$0xff] %v2222_v31   ;;  %v2137_v34 = vpack.c.bf16 %v696_v32, %v693_v26  ;;  %v2217_v35 = vpack.c.bf16 %v1019_v33, %v1016_v27 }
 0x10a   :  { %v2483_v36 = vpop.f32.mrf.mxu1  ;;  %v2531_v37 = vpop.f32.mrf.mxu0 }
 0x10b   :  { %2309 = vst [vmem:[%s2934_s2 + $0x80] sm:$0xff] %v2137_v34   ;;  %2325 = vst [vmem:[%s2934_s2 + $0x100] sm:$0xff] %v2217_v35  }
 0x10c   :  { %v709_v38 = vpop.f32.mrf.mxu1  ;;  %v1032_v39 = vpop.f32.mrf.mxu0 }
 0x10e   :  { %v2484_v40 = vpop.f32.mrf.mxu1  ;;  %v2532_v41 = vpop.f32.mrf.mxu0 }
 0x10f   :  { %v2152_v42 = vpack.c.bf16 %v2484_v40, %v2483_v36  ;;  %v2232_v43 = vpack.c.bf16 %v2532_v41, %v2531_v37 }
 0x110   :  { %v712_v44 = vpop.f32.mrf.mxu1  ;;  %v1035_v45 = vpop.f32.mrf.mxu0 }
 0x111   :  { %2312 = vst [vmem:[%s2934_s2 + $0x98] sm:$0xff] %v2152_v42   ;;  %2328 = vst [vmem:[%s2934_s2 + $0x118] sm:$0xff] %v2232_v43   ;;  %v2147_v46 = vpack.c.bf16 %v712_v44, %v709_v38  ;;  %v2227_v47 = vpack.c.bf16 %v1035_v45, %v1032_v39 }
 0x112   :  { %v2487_v48 = vpop.f32.mrf.mxu1  ;;  %v2535_v49 = vpop.f32.mrf.mxu0 }
 0x113   :  { %2311 = vst [vmem:[%s2934_s2 + $0x90] sm:$0xff] %v2147_v46   ;;  %2327 = vst [vmem:[%s2934_s2 + $0x110] sm:$0xff] %v2227_v47  }
 0x114   :  { %v725_v50 = vpop.f32.mrf.mxu1  ;;  %v1048_v51 = vpop.f32.mrf.mxu0 }
 0x116   :  { %v2488_v52 = vpop.f32.mrf.mxu1  ;;  %v2536_v53 = vpop.f32.mrf.mxu0 }
 0x117   :  { %v2162_v54 = vpack.c.bf16 %v2488_v52, %v2487_v48  ;;  %v2242_v55 = vpack.c.bf16 %v2536_v53, %v2535_v49 }
 0x118   :  { %v728_v56 = vpop.f32.mrf.mxu1  ;;  %v1051_v57 = vpop.f32.mrf.mxu0 }
 0x119   :  { %2314 = vst [vmem:[%s2934_s2 + $0xa8] sm:$0xff] %v2162_v54   ;;  %2330 = vst [vmem:[%s2934_s2 + $0x128] sm:$0xff] %v2242_v55   ;;  %v2157_v58 = vpack.c.bf16 %v728_v56, %v725_v50  ;;  %v2237_v59 = vpack.c.bf16 %v1051_v57, %v1048_v51 }
 0x11a   :  { %v2491_v60 = vpop.f32.mrf.mxu1  ;;  %v2539_v61 = vpop.f32.mrf.mxu0 }
 0x11b   :  { %2313 = vst [vmem:[%s2934_s2 + $0xa0] sm:$0xff] %v2157_v58   ;;  %2329 = vst [vmem:[%s2934_s2 + $0x120] sm:$0xff] %v2237_v59  }
 0x11c   :  { %v741_v62 = vpop.f32.mrf.mxu1  ;;  %v1064_v63 = vpop.f32.mrf.mxu0 }
 0x11e   :  { %v2492_v0 = vpop.f32.mrf.mxu1  ;;  %v2540_v1 = vpop.f32.mrf.mxu0 }
 0x11f   :  { %v2172_v2 = vpack.c.bf16 %v2492_v0, %v2491_v60  ;;  %v2252_v3 = vpack.c.bf16 %v2540_v1, %v2539_v61 }
 0x120   :  { %v744_v4 = vpop.f32.mrf.mxu1  ;;  %v1067_v5 = vpop.f32.mrf.mxu0 }
 0x121   :  { %2316 = vst [vmem:[%s2934_s2 + $0xb8] sm:$0xff] %v2172_v2   ;;  %2332 = vst [vmem:[%s2934_s2 + $0x138] sm:$0xff] %v2252_v3   ;;  %v2167_v6 = vpack.c.bf16 %v744_v4, %v741_v62  ;;  %v2247_v7 = vpack.c.bf16 %v1067_v5, %v1064_v63 }
 0x122   :  { %v2495_v8 = vpop.f32.mrf.mxu1  ;;  %v2543_v9 = vpop.f32.mrf.mxu0 }
 0x123   :  { %2315 = vst [vmem:[%s2934_s2 + $0xb0] sm:$0xff] %v2167_v6   ;;  %2331 = vst [vmem:[%s2934_s2 + $0x130] sm:$0xff] %v2247_v7  }
 0x124   :  { %v757_v10 = vpop.f32.mrf.mxu1  ;;  %v1080_v11 = vpop.f32.mrf.mxu0 }
 0x126   :  { %v2496_v12 = vpop.f32.mrf.mxu1  ;;  %v2544_v13 = vpop.f32.mrf.mxu0 }
 0x127   :  { %v2182_v14 = vpack.c.bf16 %v2496_v12, %v2495_v8  ;;  %v2262_v15 = vpack.c.bf16 %v2544_v13, %v2543_v9 }
 0x128   :  { %v760_v16 = vpop.f32.mrf.mxu1  ;;  %v1083_v17 = vpop.f32.mrf.mxu0 }
 0x129   :  { %2318 = vst [vmem:[%s2934_s2 + $0xc8] sm:$0xff] %v2182_v14   ;;  %2334 = vst [vmem:[%s2934_s2 + $0x148] sm:$0xff] %v2262_v15   ;;  %v2177_v18 = vpack.c.bf16 %v760_v16, %v757_v10  ;;  %v2257_v19 = vpack.c.bf16 %v1083_v17, %v1080_v11 }
 0x12a   :  { %v2499_v20 = vpop.f32.mrf.mxu1  ;;  %v2547_v21 = vpop.f32.mrf.mxu0 }
 0x12b   :  { %2317 = vst [vmem:[%s2934_s2 + $0xc0] sm:$0xff] %v2177_v18   ;;  %2333 = vst [vmem:[%s2934_s2 + $0x140] sm:$0xff] %v2257_v19  }
 0x12c   :  { %v773_v22 = vpop.f32.mrf.mxu1  ;;  %v1096_v23 = vpop.f32.mrf.mxu0 }
 0x12e   :  { %v2500_v24 = vpop.f32.mrf.mxu1  ;;  %v2548_v25 = vpop.f32.mrf.mxu0 }
 0x12f   :  { %v2192_v26 = vpack.c.bf16 %v2500_v24, %v2499_v20  ;;  %v2272_v27 = vpack.c.bf16 %v2548_v25, %v2547_v21 }
 0x130   :  { %v776_v28 = vpop.f32.mrf.mxu1  ;;  %v1099_v29 = vpop.f32.mrf.mxu0 }
 0x131   :  { %2320 = vst [vmem:[%s2934_s2 + $0xd8] sm:$0xff] %v2192_v26   ;;  %2336 = vst [vmem:[%s2934_s2 + $0x158] sm:$0xff] %v2272_v27   ;;  %v2187_v30 = vpack.c.bf16 %v776_v28, %v773_v22  ;;  %v2267_v31 = vpack.c.bf16 %v1099_v29, %v1096_v23 }
 0x132   :  { %v2503_v32 = vpop.f32.mrf.mxu1  ;;  %v2551_v33 = vpop.f32.mrf.mxu0 }
 0x133   :  { %2319 = vst [vmem:[%s2934_s2 + $0xd0] sm:$0xff] %v2187_v30   ;;  %2335 = vst [vmem:[%s2934_s2 + $0x150] sm:$0xff] %v2267_v31  }
 0x134   :  { %v789_v34 = vpop.f32.mrf.mxu1  ;;  %v1112_v35 = vpop.f32.mrf.mxu0 }
 0x136   :  { %v2504_v36 = vpop.f32.mrf.mxu1  ;;  %v2552_v37 = vpop.f32.mrf.mxu0 }
 0x137   :  { %v2202_v38 = vpack.c.bf16 %v2504_v36, %v2503_v32  ;;  %v2282_v39 = vpack.c.bf16 %v2552_v37, %v2551_v33 }
 0x138   :  { %v792_v40 = vpop.f32.mrf.mxu1  ;;  %v1115_v41 = vpop.f32.mrf.mxu0 }
 0x139   :  { %2322 = vst [vmem:[%s2934_s2 + $0xe8] sm:$0xff] %v2202_v38   ;;  %2338 = vst [vmem:[%s2934_s2 + $0x168] sm:$0xff] %v2282_v39   ;;  %v2197_v42 = vpack.c.bf16 %v792_v40, %v789_v34  ;;  %v2277_v43 = vpack.c.bf16 %v1115_v41, %v1112_v35 }
 0x13a   :  { %v2507_v44 = vpop.f32.mrf.mxu1  ;;  %v2555_v45 = vpop.f32.mrf.mxu0 }
 0x13b   :  { %2321 = vst [vmem:[%s2934_s2 + $0xe0] sm:$0xff] %v2197_v42   ;;  %2337 = vst [vmem:[%s2934_s2 + $0x160] sm:$0xff] %v2277_v43  }
 0x13c   :  { %v805_v46 = vpop.f32.mrf.mxu1  ;;  %v1128_v47 = vpop.f32.mrf.mxu0 }
 0x13e   :  { %v2508_v48 = vpop.f32.mrf.mxu1  ;;  %v2556_v49 = vpop.f32.mrf.mxu0 }
 0x13f   :  { %v2212_v50 = vpack.c.bf16 %v2508_v48, %v2507_v44  ;;  %v2292_v51 = vpack.c.bf16 %v2556_v49, %v2555_v45 }
 0x140   :  { %v808_v52 = vpop.f32.mrf.mxu1  ;;  %v1131_v53 = vpop.f32.mrf.mxu0 }
 0x141   :  { %2324 = vst [vmem:[%s2934_s2 + $0xf8] sm:$0xff] %v2212_v50   ;;  %2340 = vst [vmem:[%s2934_s2 + $0x178] sm:$0xff] %v2292_v51   ;;  %v2207_v54 = vpack.c.bf16 %v808_v52, %v805_v46  ;;  %v2287_v55 = vpack.c.bf16 %v1131_v53, %v1128_v47 }
 0x143   :  { %2323 = vst [vmem:[%s2934_s2 + $0xf0] sm:$0xff] %v2207_v54   ;;  %2339 = vst [vmem:[%s2934_s2 + $0x170] sm:$0xff] %v2287_v55  }

</bundles_post_ra>
